<compile_context>
chip_gen: v7x
topology: tpu7x:2x2x1
jax: 0.10.0
libtpu: 0.0.40
codegen_flags: <defaults>
</compile_context>

<pallas_src>
import functools
import math

import jax
import jax.numpy as jnp
from jax.experimental import pallas as pl
from jax.experimental.pallas import tpu as pltpu

EPS = 1e-5                      # nn.BatchNorm2d default
VMEM_LIMIT = 32 * 1024 * 1024   # explicit scoped-VMEM cap (>= v5e's 16 MiB default, fits v7x)


def _row_tile(m, target=1024):
    if m <= target:
        return m
    t = (target // 8) * 8
    while t >= 8:
        if m % t == 0:
            return t
        t -= 8
    return m


# ----------------------------------------------------------------------------
# Lane-dense tiled per-channel sum / sum-of-squares reduction (block-0 BN1 only;
# every later BN gets its stats fused into the producing conv kernel).
# ----------------------------------------------------------------------------
def _bn_stats_kernel(x_ref, sum_ref, ssq_ref):
    @pl.when(pl.program_id(0) == 0)
    def _init():
        sum_ref[...] = jnp.zeros_like(sum_ref)
        ssq_ref[...] = jnp.zeros_like(ssq_ref)

    x = x_ref[...].astype(jnp.float32)
    sum_ref[...] += jnp.sum(x, axis=0, keepdims=True)
    ssq_ref[...] += jnp.sum(x * x, axis=0, keepdims=True)


def _bn_stats_lane_dense(x):
    """x: (N, M, C). Returns per-channel (sum, sumsq, count) using a lane-dense layout."""
    N, M, C = x.shape
    total = N * M
    G = 1
    if 128 % C == 0 and total % (128 // C) == 0:
        G = 128 // C                      # group G spatial positions -> 128 lanes
    R = total // G
    xs = x.reshape(R, G * C)
    tm = _row_tile(R)
    s, ss = pl.pallas_call(
        _bn_stats_kernel,
        out_shape=(jax.ShapeDtypeStruct((1, G * C), jnp.float32),
                   jax.ShapeDtypeStruct((1, G * C), jnp.float32)),
        grid=(R // tm,),
        in_specs=[pl.BlockSpec((tm, G * C), lambda i: (i, 0))],
        out_specs=(pl.BlockSpec((1, G * C), lambda i: (0, 0)),
                   pl.BlockSpec((1, G * C), lambda i: (0, 0))),
        compiler_params=pltpu.CompilerParams(
            dimension_semantics=("arbitrary",),
            vmem_limit_bytes=VMEM_LIMIT),
    )(xs)
    sum_c = s.reshape(G, C).sum(axis=0)
    ssq_c = ss.reshape(G, C).sum(axis=0)
    return sum_c, ssq_c, total


def _finalize_bn(sum_c, ssq_c, count, gamma, beta):
    """Fold batch stats + affine into a per-channel (scale, shift): bn(x) == x*scale+shift."""
    mean = sum_c / count
    var = jnp.maximum(ssq_c / count - mean * mean, 0.0)   # biased var (train-mode BN)
    scale = gamma * jax.lax.rsqrt(var + EPS)
    shift = beta - mean * scale
    return (scale.reshape(1, -1).astype(jnp.float32),
            shift.reshape(1, -1).astype(jnp.float32))


# ----------------------------------------------------------------------------
# Fused conv kernel: [BN scale/shift + ReLU] -> 3x3 conv (stride 1 or 2) ->
#   [+ residual] ; optional fused 1x1-conv shortcut ; optional (sum, sumsq) stats.
# ----------------------------------------------------------------------------
def _make_conv_kernel(H, W, Cin, Cout, stride, apply_bnrelu,
                      has_shortcut, has_residual, emit_stats):
    Ho, Wo = H // stride, W // stride
    # M-tiling keeps the f32 register accumulator small (write-out once per tile).
    if Ho * Wo <= 128:
        Hc = Ho
    else:
        Hc = max(1, 128 // Wo)
        while Ho % Hc:
            Hc -= 1
    n_chunks = Ho // Hc
    Mc = Hc * Wo

    def kernel(*refs):
        it = iter(refs)
        x_ref = next(it)                                  # (1, H*W, Cin)
        scale_ref = next(it)                              # (1, Cin)
        shift_ref = next(it)                              # (1, Cin)
        w_ref = next(it)                                  # (9, Cin, Cout) bf16
        wsc_ref = next(it) if has_shortcut else None      # (Cin, Cout) bf16
        res_ref = next(it) if has_residual else None      # (1, Ho*Wo, Cout)
        out_ref = next(it)                                # (1, Ho*Wo, Cout)
        sc_ref = next(it) if has_shortcut else None       # (1, Ho*Wo, Cout)
        stats_ref = next(it) if emit_stats else None      # (1, 2, Cout) f32
        if stride == 1:
            apad_ref = next(it)                           # (H+2, W+2, Cin) f32
        else:
            ae_ref = next(it)                             # (Ho+1, W+2, Cin) f32
            ao_ref = next(it)                             # (Ho+1, W+2, Cin) f32

        # --- fused BN (precomputed scale/shift) + ReLU prologue, f32 VPU math ---
        x = x_ref[0].astype(jnp.float32)                  # (H*W, Cin)
        if apply_bnrelu:
            act = jnp.maximum(x * scale_ref[...] + shift_ref[...], 0.0)
        else:
            act = x

        zrow = jnp.zeros((1, W + 2, Cin), jnp.float32)
        if stride == 1:
            act3 = act.reshape(H, W, Cin)
            zcol = jnp.zeros((H + 2, 1, Cin), jnp.float32)
            # Zero halo only (interior is fully overwritten by one bulk store).
            apad_ref[pl.ds(0, 1), :, :] = zrow
            apad_ref[pl.ds(H + 1, 1), :, :] = zrow
            apad_ref[:, pl.ds(0, 1), :] = zcol
            apad_ref[:, pl.ds(W + 1, 1), :] = zcol
            apad_ref[pl.ds(1, H), pl.ds(1, W), :] = act3

            def load_tap(kh, kw, oh0):
                t = apad_ref[pl.ds(oh0 + kh, Hc), pl.ds(kw, W), :]
                return t.reshape(Mc, Cin)
        else:
            # Polyphase row split (stride 2): every tap becomes a contiguous row
            # range + sublane-strided column slice -> only Ho*Wo outputs computed.
            a4 = act.reshape(Ho, 2, W, Cin)
            zcol = jnp.zeros((Ho + 1, 1, Cin), jnp.float32)
            # "ao" holds odd padded rows 1,3,...,H+1 (== even input rows + bottom halo)
            ao_ref[pl.ds(0, Ho), pl.ds(1, W), :] = a4[:, 0, :, :]
            ao_ref[pl.ds(Ho, 1), :, :] = zrow
            ao_ref[:, pl.ds(0, 1), :] = zcol
            ao_ref[:, pl.ds(W + 1, 1), :] = zcol
            # "ae" holds even padded rows 0,2,...,H (== top halo + odd input rows)
            ae_ref[pl.ds(1, Ho), pl.ds(1, W), :] = a4[:, 1, :, :]
            ae_ref[pl.ds(0, 1), :, :] = zrow
            ae_ref[:, pl.ds(0, 1), :] = zcol
            ae_ref[:, pl.ds(W + 1, 1), :] = zcol

            def load_tap(kh, kw, oh0):
                buf = ae_ref if kh % 2 == 0 else ao_ref
                r0 = kh // 2
                t = buf[pl.ds(r0 + oh0, Hc), pl.ds(kw, Wo, stride=2), :]
                return t.reshape(Mc, Cin)

        if emit_stats:
            ssum = jnp.zeros((1, Cout), jnp.float32)
            ssq = jnp.zeros((1, Cout), jnp.float32)

        for c in range(n_chunks):
            oh0 = c * Hc
            m0 = oh0 * Wo
            acc = None
            center = None
            # 9 taps, register-accumulated (single write-out per M-tile below).
            for kh in range(3):
                for kw in range(3):
                    t = load_tap(kh, kw, oh0).astype(jnp.bfloat16)  # bf16 only at the MXU
                    if has_shortcut and kh == 1 and kw == 1:
                        center = t
                    d = jnp.dot(t, w_ref[kh * 3 + kw],
                                preferred_element_type=jnp.float32)
                    acc = d if acc is None else acc + d
            if has_residual:
                acc = acc + res_ref[0, pl.ds(m0, Mc), :].astype(jnp.float32)
            out_ref[0, pl.ds(m0, Mc), :] = acc.astype(out_ref.dtype)
            if emit_stats:
                ssum = ssum + jnp.sum(acc, axis=0, keepdims=True)
                ssq = ssq + jnp.sum(acc * acc, axis=0, keepdims=True)
            if has_shortcut:
                # 1x1-conv shortcut on the activated input at the strided positions
                # == the center tap of the patch set (no extra gather needed).
                scv = jnp.dot(center, wsc_ref[...],
                              preferred_element_type=jnp.float32)
                sc_ref[0, pl.ds(m0, Mc), :] = scv.astype(sc_ref.dtype)

        if emit_stats:
            # Partial (sum, sumsq) of this image's output; reduced over N in the wrapper
            # so the consuming BN needs no extra HBM pass.
            stats_ref[0, pl.ds(0, 1), :] = ssum
            stats_ref[0, pl.ds(1, 1), :] = ssq

    return kernel


def _conv_block(x, scale, shift, w9, *, H, W, stride, wsc=None, residual=None,
                apply_bnrelu=True, emit_stats=True, out_dtype=jnp.bfloat16):
    """x: (N, H*W, Cin); w9: (9, Cin, Cout) bf16; wsc: (Cin, Cout) bf16 or None."""
    N, HW, Cin = x.shape
    assert HW == H * W and stride in (1, 2)
    Cout = w9.shape[-1]
    Ho, Wo = H // stride, W // stride
    M = Ho * Wo
    has_shortcut = wsc is not None
    has_residual = residual is not None

    kernel = _make_conv_kernel(H, W, Cin, Cout, stride, apply_bnrelu,
                               has_shortcut, has_residual, emit_stats)

    in_specs = [
        pl.BlockSpec((1, HW, Cin), lambda n: (n, 0, 0)),
        pl.BlockSpec((1, Cin), lambda n: (0, 0)),
        pl.BlockSpec((1, Cin), lambda n: (0, 0)),
        # constant block index -> 9-tap weight stays VMEM-resident across grid steps
        pl.BlockSpec((9, Cin, Cout), lambda n: (0, 0, 0)),
    ]
    args = [x, scale, shift, w9]
    if has_shortcut:
        in_specs.append(pl.BlockSpec((Cin, Cout), lambda n: (0, 0)))
        args.append(wsc)
    if has_residual:
        in_specs.append(pl.BlockSpec((1, M, Cout), lambda n: (n, 0, 0)))
        args.append(residual)

    out_shape = [jax.ShapeDtypeStruct((N, M, Cout), out_dtype)]
    out_specs = [pl.BlockSpec((1, M, Cout), lambda n: (n, 0, 0))]
    if has_shortcut:
        out_shape.append(jax.ShapeDtypeStruct((N, M, Cout), out_dtype))
        out_specs.append(pl.BlockSpec((1, M, Cout), lambda n: (n, 0, 0)))
    if emit_stats:
        out_shape.append(jax.ShapeDtypeStruct((N, 2, Cout), jnp.float32))
        out_specs.append(pl.BlockSpec((1, 2, Cout), lambda n: (n, 0, 0)))

    if stride == 1:
        scratch = [pltpu.VMEM((H + 2, W + 2, Cin), jnp.float32)]
    else:
        scratch = [pltpu.VMEM((Ho + 1, W + 2, Cin), jnp.float32),
                   pltpu.VMEM((Ho + 1, W + 2, Cin), jnp.float32)]

    return pl.pallas_call(
        kernel,
        out_shape=tuple(out_shape),
        grid=(N,),
        in_specs=in_specs,
        out_specs=tuple(out_specs),
        scratch_shapes=scratch,
        compiler_params=pltpu.CompilerParams(
            dimension_semantics=("parallel",),
            vmem_limit_bytes=VMEM_LIMIT),
    )(*args)


# ----------------------------------------------------------------------------
# BasicBlock / NetworkBlock forward (flat-spatial (N, H*W, C) internally)
# ----------------------------------------------------------------------------
def _basic_block_forward(x, x_stats, H, W, p, stride, equal_in_out,
                         skip_bnrelu, is_last):
    N, _, Cin = x.shape
    Cout = p["gamma2"].shape[0]
    Ho, Wo = H // stride, W // stride

    if skip_bnrelu:
        # TODO(synk): assumes the block's `no_bnrelu` flag skips bn1+relu1 only.
        scale1 = jnp.ones((1, Cin), jnp.float32)
        shift1 = jnp.zeros((1, Cin), jnp.float32)
    else:
        if x_stats is None:
            x_stats = _bn_stats_lane_dense(x)   # block-0 input only
        scale1, shift1 = _finalize_bn(x_stats[0], x_stats[1], x_stats[2],
                                      p["gamma1"], p["beta1"])

    outs = _conv_block(
        x, scale1, shift1, p["w1"], H=H, W=W, stride=stride,
        wsc=None if equal_in_out else p["w_sc"], residual=None,
        apply_bnrelu=not skip_bnrelu, emit_stats=True, out_dtype=jnp.bfloat16)
    if equal_in_out:
        out1, stats1 = outs
        shortcut = x                          # raw input is the residual
    else:
        out1, shortcut, stats1 = outs         # fused 1x1 conv on activated input

    count1 = N * Ho * Wo
    # NOTE: stats are taken from the f32 accumulator (pre-bf16 store); O(bf16 eps) skew.
    scale2, shift2 = _finalize_bn(stats1[:, 0, :].sum(axis=0),
                                  stats1[:, 1, :].sum(axis=0),
                                  count1, p["gamma2"], p["beta2"])

    # TODO(synk): dropout (dropRate > 0) not implemented; dropRate=0.0 -> no-op.
    emit_y_stats = not is_last
    y_dtype = jnp.float32 if is_last else jnp.bfloat16
    outs2 = _conv_block(
        out1, scale2, shift2, p["w2"], H=Ho, W=Wo, stride=1, wsc=None,
        residual=shortcut, apply_bnrelu=True, emit_stats=emit_y_stats,
        out_dtype=y_dtype)
    if emit_y_stats:
        y, ystats = outs2
        y_stats = (ystats[:, 0, :].sum(axis=0), ystats[:, 1, :].sum(axis=0),
                   N * Ho * Wo)
    else:
        (y,) = outs2
        y_stats = None
    return y, y_stats, Ho, Wo


@functools.partial(jax.jit, static_argnums=(2, 3))
def _network_block_fwd(x_nchw, params, meta, no_bnrelu):
    N, C, H, W = x_nchw.shape
    # NCHW -> (N, H*W, C): channels in lanes (lane-dense at real WRN widths >= 128).
    x = jnp.transpose(x_nchw, (0, 2, 3, 1)).reshape(N, H * W, C)
    x_stats = None
    h, w = H, W
    for i, p in enumerate(params):
        stride, equal = meta[i]
        is_last = (i == len(params) - 1)
        x, x_stats, h, w = _basic_block_forward(
            x, x_stats, h, w, p, stride, equal,
            skip_bnrelu=(no_bnrelu and i == 0), is_last=is_last)
    Cout = x.shape[-1]
    return jnp.transpose(x.reshape(N, h, w, Cout), (0, 3, 1, 2))   # -> NCHW


def network_block_forward(x_nchw, layers, no_bnrelu=False):
    params = tuple(p for (p, _, _) in layers)
    meta = tuple((int(st), bool(eq)) for (_, st, eq) in layers)
    return _network_block_fwd(x_nchw, params, meta, bool(no_bnrelu))


# ----------------------------------------------------------------------------
# Deterministic parameter init (shapes per NetworkBlock.__init__ / BasicBlock)
# TODO(synk): BN running_mean/running_var buffers are not produced/updated (train-mode
# normalization with batch statistics only).
# ----------------------------------------------------------------------------
def init_network_block_params(key, nb_layers, in_planes, out_planes, stride):
    layers = []
    for i in range(int(nb_layers)):
        ip = in_planes if i == 0 else out_planes
        st = stride if i == 0 else 1
        equal = (ip == out_planes)
        key, k1, k2, k3, k4, k5, k6, k7 = jax.random.split(key, 8)
        std = math.sqrt(2.0 / (9 * out_planes))
        p = {
            "gamma1": 1.0 + 0.1 * jax.random.normal(k1, (ip,), jnp.float32),
            "beta1": 0.1 * jax.random.normal(k2, (ip,), jnp.float32),
            # 3x3 conv weights stored as (9, Cin, Cout) bf16 (MXU input dtype).
            "w1": (std * jax.random.normal(k3, (3, 3, ip, out_planes), jnp.float32)
                   ).reshape(9, ip, out_planes).astype(jnp.bfloat16),
            "gamma2": 1.0 + 0.1 * jax.random.normal(k4, (out_planes,), jnp.float32),
            "beta2": 0.1 * jax.random.normal(k5, (out_planes,), jnp.float32),
            "w2": (std * jax.random.normal(k6, (3, 3, out_planes, out_planes),
                                           jnp.float32)
                   ).reshape(9, out_planes, out_planes).astype(jnp.bfloat16),
        }
        if not equal:
            p["w_sc"] = (math.sqrt(2.0 / out_planes)
                         * jax.random.normal(k7, (ip, out_planes), jnp.float32)
                         ).astype(jnp.bfloat16)
        layers.append((p, st, equal))
    return layers


if __name__ == "__main__":
    key = jax.random.PRNGKey(0)
    kx, kp = jax.random.split(key)

    # NetworkBlock(nb_layers=2, in_planes=4, out_planes=8, block=BasicBlock, stride=2)
    N, C_IN, H, W = 2, 4, 16, 16
    C_OUT, NB_LAYERS, STRIDE = 8, 2, 2

    x = jax.random.normal(kx, (N, C_IN, H, W), jnp.float32)   # NCHW like PyTorch
    layers = init_network_block_params(kp, NB_LAYERS, C_IN, C_OUT, STRIDE)

    out = network_block_forward(x, layers, no_bnrelu=False)
    out = jax.block_until_ready(out)

    assert out.shape == (N, C_OUT, H // STRIDE, W // STRIDE), out.shape
    assert bool(jnp.all(jnp.isfinite(out)))
    print("KERNEL_OK")
</pallas_src>

<mosaic_0001>
module attributes {stable_mosaic.version = 11 : i64} {
  func.func @_bn_stats_kernel(%arg0: i32, %arg1: memref<16x128xf32, #tpu.memory_space<vmem>>, %arg2: memref<1x128xf32, #tpu.memory_space<vmem>>, %arg3: memref<1x128xf32, #tpu.memory_space<vmem>>) attributes {dimension_semantics = [#tpu.dimension_semantics<arbitrary>], iteration_bounds = array<i64: 1>, scalar_prefetch = 0 : i64, scratch_operands = 0 : i64, tpu.core_type = #tpu.core_type<tc>, window_params = [{transform_indices = @transform_0, window_bounds = array<i64: 16, 128>}, {pipeline_mode = #tpu.pipeline_mode<synchronous>, transform_indices = @transform_1, window_bounds = array<i64: 1, 128>}, {pipeline_mode = #tpu.pipeline_mode<synchronous>, transform_indices = @transform_2, window_bounds = array<i64: 1, 128>}]} {
    %c0_i32 = arith.constant 0 : i32
    %0 = arith.cmpi eq, %arg0, %c0_i32 : i32
    %1 = arith.extui %0 : i1 to i32
    %c0_i32_0 = arith.constant 0 : i32
    %2 = arith.cmpi ne, %1, %c0_i32_0 : i32
    scf.if %2 {
      %cst_11 = arith.constant 0.000000e+00 : f32
      %15 = vector.broadcast %cst_11 : f32 to vector<1x128xf32>
      %c0_12 = arith.constant 0 : index
      %c0_13 = arith.constant 0 : index
      %16 = vector.load %arg2[%c0_12, %c0_13] : memref<1x128xf32, #tpu.memory_space<vmem>>, vector<1x128xf32>
      tpu.vector_store %arg2[%c0_12, %c0_13], %15 {strides = array<i32>} : memref<1x128xf32, #tpu.memory_space<vmem>>, vector<1x128xf32>,
      %cst_14 = arith.constant 0.000000e+00 : f32
      %17 = vector.broadcast %cst_14 : f32 to vector<1x128xf32>
      %c0_15 = arith.constant 0 : index
      %c0_16 = arith.constant 0 : index
      %18 = vector.load %arg3[%c0_15, %c0_16] : memref<1x128xf32, #tpu.memory_space<vmem>>, vector<1x128xf32>
      tpu.vector_store %arg3[%c0_15, %c0_16], %17 {strides = array<i32>} : memref<1x128xf32, #tpu.memory_space<vmem>>, vector<1x128xf32>,
    } else {
    }
    %c0 = arith.constant 0 : index
    %c0_1 = arith.constant 0 : index
    %3 = vector.load %arg1[%c0, %c0_1] : memref<16x128xf32, #tpu.memory_space<vmem>>, vector<16x128xf32>
    %c0_2 = arith.constant 0 : index
    %c0_3 = arith.constant 0 : index
    %4 = vector.load %arg2[%c0_2, %c0_3] : memref<1x128xf32, #tpu.memory_space<vmem>>, vector<1x128xf32>
    %cst = arith.constant dense<0.000000e+00> : vector<128xf32>
    %5 = vector.multi_reduction <add>, %3, %cst [0] : vector<16x128xf32> to vector<128xf32>
    %6 = vector.shape_cast %5 : vector<128xf32> to vector<1x128xf32>
    %7 = arith.addf %4, %6 : vector<1x128xf32>
    %c0_4 = arith.constant 0 : index
    %c0_5 = arith.constant 0 : index
    %8 = vector.load %arg2[%c0_4, %c0_5] : memref<1x128xf32, #tpu.memory_space<vmem>>, vector<1x128xf32>
    tpu.vector_store %arg2[%c0_4, %c0_5], %7 {strides = array<i32>} : memref<1x128xf32, #tpu.memory_space<vmem>>, vector<1x128xf32>,
    %c0_6 = arith.constant 0 : index
    %c0_7 = arith.constant 0 : index
    %9 = vector.load %arg3[%c0_6, %c0_7] : memref<1x128xf32, #tpu.memory_space<vmem>>, vector<1x128xf32>
    %10 = arith.mulf %3, %3 : vector<16x128xf32>
    %cst_8 = arith.constant dense<0.000000e+00> : vector<128xf32>
    %11 = vector.multi_reduction <add>, %10, %cst_8 [0] : vector<16x128xf32> to vector<128xf32>
    %12 = vector.shape_cast %11 : vector<128xf32> to vector<1x128xf32>
    %13 = arith.addf %9, %12 : vector<1x128xf32>
    %c0_9 = arith.constant 0 : index
    %c0_10 = arith.constant 0 : index
    %14 = vector.load %arg3[%c0_9, %c0_10] : memref<1x128xf32, #tpu.memory_space<vmem>>, vector<1x128xf32>
    tpu.vector_store %arg3[%c0_9, %c0_10], %13 {strides = array<i32>} : memref<1x128xf32, #tpu.memory_space<vmem>>, vector<1x128xf32>,
    return
  }
  func.func @transform_0(%arg0: i32) -> (i32, i32) {
    %c0_i32 = arith.constant 0 : i32
    %c0_i32_0 = arith.constant 0 : i32
    return %arg0, %c0_i32 : i32, i32
  }
  func.func @transform_1(%arg0: i32) -> (i32, i32) {
    %c0_i32 = arith.constant 0 : i32
    %c0_i32_0 = arith.constant 0 : i32
    %c0_i32_1 = arith.constant 0 : i32
    return %c0_i32, %c0_i32_0 : i32, i32
  }
  func.func @transform_2(%arg0: i32) -> (i32, i32) {
    %c0_i32 = arith.constant 0 : i32
    %c0_i32_0 = arith.constant 0 : i32
    %c0_i32_1 = arith.constant 0 : i32
    return %c0_i32, %c0_i32_0 : i32, i32
  }
}

module attributes {stable_mosaic.version = 11 : i64} {
  func.func @kernel(%arg0: i32, %arg1: memref<1x256x4xf32, #tpu.memory_space<vmem>>, %arg2: memref<1x4xf32, #tpu.memory_space<vmem>>, %arg3: memref<1x4xf32, #tpu.memory_space<vmem>>, %arg4: memref<9x4x8xbf16, #tpu.memory_space<vmem>>, %arg5: memref<4x8xbf16, #tpu.memory_space<vmem>>, %arg6: memref<1x64x8xbf16, #tpu.memory_space<vmem>>, %arg7: memref<1x64x8xbf16, #tpu.memory_space<vmem>>, %arg8: memref<1x2x8xf32, #tpu.memory_space<vmem>>, %arg9: memref<9x18x4xf32, #tpu.memory_space<vmem>>, %arg10: memref<9x18x4xf32, #tpu.memory_space<vmem>>) attributes {dimension_semantics = [#tpu.dimension_semantics<parallel>], iteration_bounds = array<i64: 2>, scalar_prefetch = 0 : i64, scratch_operands = 2 : i64, tpu.core_type = #tpu.core_type<tc>, window_params = [{transform_indices = @transform_0, window_bounds = array<i64: 1, 256, 4>}, {pipeline_mode = #tpu.pipeline_mode<synchronous>, transform_indices = @transform_1, window_bounds = array<i64: 1, 4>}, {pipeline_mode = #tpu.pipeline_mode<synchronous>, transform_indices = @transform_2, window_bounds = array<i64: 1, 4>}, {pipeline_mode = #tpu.pipeline_mode<synchronous>, transform_indices = @transform_3, window_bounds = array<i64: 9, 4, 8>}, {pipeline_mode = #tpu.pipeline_mode<synchronous>, transform_indices = @transform_4, window_bounds = array<i64: 4, 8>}, {transform_indices = @transform_5, window_bounds = array<i64: 1, 64, 8>}, {transform_indices = @transform_6, window_bounds = array<i64: 1, 64, 8>}, {transform_indices = @transform_7, window_bounds = array<i64: 1, 2, 8>}]} {
    %c0 = arith.constant 0 : index
    %c0_0 = arith.constant 0 : index
    %c0_1 = arith.constant 0 : index
    %0 = vector.load %arg1[%c0, %c0_0, %c0_1] : memref<1x256x4xf32, #tpu.memory_space<vmem>>, vector<1x256x4xf32>
    %1 = vector.shape_cast %0 : vector<1x256x4xf32> to vector<256x4xf32>
    %c0_2 = arith.constant 0 : index
    %c0_3 = arith.constant 0 : index
    %2 = vector.load %arg2[%c0_2, %c0_3] : memref<1x4xf32, #tpu.memory_space<vmem>>, vector<1x4xf32>
    %3 = vector.broadcast %2 : vector<1x4xf32> to vector<256x4xf32>
    %4 = arith.mulf %1, %3 : vector<256x4xf32>
    %c0_4 = arith.constant 0 : index
    %c0_5 = arith.constant 0 : index
    %5 = vector.load %arg3[%c0_4, %c0_5] : memref<1x4xf32, #tpu.memory_space<vmem>>, vector<1x4xf32>
    %6 = vector.broadcast %5 : vector<1x4xf32> to vector<256x4xf32>
    %7 = arith.addf %4, %6 : vector<256x4xf32>
    %cst = arith.constant 0.000000e+00 : f32
    %8 = vector.broadcast %cst : f32 to vector<256x4xf32>
    %9 = arith.maximumf %7, %8 : vector<256x4xf32>
    %cst_6 = arith.constant 0.000000e+00 : f32
    %10 = vector.broadcast %cst_6 : f32 to vector<1x18x4xf32>
    %11 = vector.shape_cast %9 : vector<256x4xf32> to vector<8x2x16x4xf32>
    %cst_7 = arith.constant 0.000000e+00 : f32
    %12 = vector.broadcast %cst_7 : f32 to vector<9x1x4xf32>
    %13 = vector.extract_strided_slice %11 {offsets = [0, 0, 0, 0], sizes = [8, 1, 16, 4], strides = [1, 1, 1, 1]} : vector<8x2x16x4xf32> to vector<8x1x16x4xf32>
    %14 = vector.shape_cast %13 : vector<8x1x16x4xf32> to vector<8x16x4xf32>
    %c0_8 = arith.constant 0 : index
    %c1 = arith.constant 1 : index
    %c0_9 = arith.constant 0 : index
    %15 = vector.load %arg10[%c0_8, %c1, %c0_9] : memref<9x18x4xf32, #tpu.memory_space<vmem>>, vector<8x16x4xf32>
    tpu.vector_store %arg10[%c0_8, %c1, %c0_9], %14 {strides = array<i32>} : memref<9x18x4xf32, #tpu.memory_space<vmem>>, vector<8x16x4xf32>,
    %c8 = arith.constant 8 : index
    %c0_10 = arith.constant 0 : index
    %c0_11 = arith.constant 0 : index
    %16 = vector.load %arg10[%c8, %c0_10, %c0_11] : memref<9x18x4xf32, #tpu.memory_space<vmem>>, vector<1x18x4xf32>
    tpu.vector_store %arg10[%c8, %c0_10, %c0_11], %10 {strides = array<i32>} : memref<9x18x4xf32, #tpu.memory_space<vmem>>, vector<1x18x4xf32>,
    %c0_12 = arith.constant 0 : index
    %c0_13 = arith.constant 0 : index
    %c0_14 = arith.constant 0 : index
    %17 = vector.load %arg10[%c0_12, %c0_13, %c0_14] : memref<9x18x4xf32, #tpu.memory_space<vmem>>, vector<9x1x4xf32>
    tpu.vector_store %arg10[%c0_12, %c0_13, %c0_14], %12 {strides = array<i32>} : memref<9x18x4xf32, #tpu.memory_space<vmem>>, vector<9x1x4xf32>,
    %c0_15 = arith.constant 0 : index
    %c17 = arith.constant 17 : index
    %c0_16 = arith.constant 0 : index
    %18 = vector.load %arg10[%c0_15, %c17, %c0_16] : memref<9x18x4xf32, #tpu.memory_space<vmem>>, vector<9x1x4xf32>
    tpu.vector_store %arg10[%c0_15, %c17, %c0_16], %12 {strides = array<i32>} : memref<9x18x4xf32, #tpu.memory_space<vmem>>, vector<9x1x4xf32>,
    %19 = vector.extract_strided_slice %11 {offsets = [0, 1, 0, 0], sizes = [8, 1, 16, 4], strides = [1, 1, 1, 1]} : vector<8x2x16x4xf32> to vector<8x1x16x4xf32>
    %20 = vector.shape_cast %19 : vector<8x1x16x4xf32> to vector<8x16x4xf32>
    %c1_17 = arith.constant 1 : index
    %c1_18 = arith.constant 1 : index
    %c0_19 = arith.constant 0 : index
    %21 = vector.load %arg9[%c1_17, %c1_18, %c0_19] : memref<9x18x4xf32, #tpu.memory_space<vmem>>, vector<8x16x4xf32>
    tpu.vector_store %arg9[%c1_17, %c1_18, %c0_19], %20 {strides = array<i32>} : memref<9x18x4xf32, #tpu.memory_space<vmem>>, vector<8x16x4xf32>,
    %c0_20 = arith.constant 0 : index
    %c0_21 = arith.constant 0 : index
    %c0_22 = arith.constant 0 : index
    %22 = vector.load %arg9[%c0_20, %c0_21, %c0_22] : memref<9x18x4xf32, #tpu.memory_space<vmem>>, vector<1x18x4xf32>
    tpu.vector_store %arg9[%c0_20, %c0_21, %c0_22], %10 {strides = array<i32>} : memref<9x18x4xf32, #tpu.memory_space<vmem>>, vector<1x18x4xf32>,
    %c0_23 = arith.constant 0 : index
    %c0_24 = arith.constant 0 : index
    %c0_25 = arith.constant 0 : index
    %23 = vector.load %arg9[%c0_23, %c0_24, %c0_25] : memref<9x18x4xf32, #tpu.memory_space<vmem>>, vector<9x1x4xf32>
    tpu.vector_store %arg9[%c0_23, %c0_24, %c0_25], %12 {strides = array<i32>} : memref<9x18x4xf32, #tpu.memory_space<vmem>>, vector<9x1x4xf32>,
    %c0_26 = arith.constant 0 : index
    %c17_27 = arith.constant 17 : index
    %c0_28 = arith.constant 0 : index
    %24 = vector.load %arg9[%c0_26, %c17_27, %c0_28] : memref<9x18x4xf32, #tpu.memory_space<vmem>>, vector<9x1x4xf32>
    tpu.vector_store %arg9[%c0_26, %c17_27, %c0_28], %12 {strides = array<i32>} : memref<9x18x4xf32, #tpu.memory_space<vmem>>, vector<9x1x4xf32>,
    %cst_29 = arith.constant 0.000000e+00 : f32
    %25 = vector.broadcast %cst_29 : f32 to vector<1x8xf32>
    %cst_30 = arith.constant 0.000000e+00 : f32
    %26 = vector.broadcast %cst_30 : f32 to vector<1x8xf32>
    %c0_31 = arith.constant 0 : index
    %c0_32 = arith.constant 0 : index
    %c0_33 = arith.constant 0 : index
    %27 = tpu.strided_load %arg9[%c0_31, %c0_32, %c0_33] {strides = array<i32: 1, 2, 1>} : memref<9x18x4xf32, #tpu.memory_space<vmem>>, vector<8x8x4xf32>
    %28 = vector.shape_cast %27 : vector<8x8x4xf32> to vector<64x4xf32>
    %29 = arith.truncf %28 : vector<64x4xf32> to vector<64x4xbf16>
    %c0_34 = arith.constant 0 : index
    %c0_35 = arith.constant 0 : index
    %c0_36 = arith.constant 0 : index
    %30 = vector.load %arg4[%c0_34, %c0_35, %c0_36] : memref<9x4x8xbf16, #tpu.memory_space<vmem>>, vector<1x4x8xbf16>
    %31 = vector.shape_cast %30 : vector<1x4x8xbf16> to vector<4x8xbf16>
    %cst_37 = arith.constant dense<0.000000e+00> : vector<64x8xf32>
    %32 = tpu.matmul %29, %31, %cst_37 {dimension_numbers = #tpu.dot_dimension_numbers<[1], [0], [0], [1], [0, 0, 1, 1], [], []>} : vector<64x4xbf16>, vector<4x8xbf16>, vector<64x8xf32> -> vector<64x8xf32>
    %c0_38 = arith.constant 0 : index
    %c1_39 = arith.constant 1 : index
    %c0_40 = arith.constant 0 : index
    %33 = tpu.strided_load %arg9[%c0_38, %c1_39, %c0_40] {strides = array<i32: 1, 2, 1>} : memref<9x18x4xf32, #tpu.memory_space<vmem>>, vector<8x8x4xf32>
    %34 = vector.shape_cast %33 : vector<8x8x4xf32> to vector<64x4xf32>
    %35 = arith.truncf %34 : vector<64x4xf32> to vector<64x4xbf16>
    %c1_41 = arith.constant 1 : index
    %c0_42 = arith.constant 0 : index
    %c0_43 = arith.constant 0 : index
    %36 = vector.load %arg4[%c1_41, %c0_42, %c0_43] : memref<9x4x8xbf16, #tpu.memory_space<vmem>>, vector<1x4x8xbf16>
    %37 = vector.shape_cast %36 : vector<1x4x8xbf16> to vector<4x8xbf16>
    %cst_44 = arith.constant dense<0.000000e+00> : vector<64x8xf32>
    %38 = tpu.matmul %35, %37, %cst_44 {dimension_numbers = #tpu.dot_dimension_numbers<[1], [0], [0], [1], [0, 0, 1, 1], [], []>} : vector<64x4xbf16>, vector<4x8xbf16>, vector<64x8xf32> -> vector<64x8xf32>
    %39 = arith.addf %32, %38 : vector<64x8xf32>
    %c0_45 = arith.constant 0 : index
    %c2 = arith.constant 2 : index
    %c0_46 = arith.constant 0 : index
    %40 = tpu.strided_load %arg9[%c0_45, %c2, %c0_46] {strides = array<i32: 1, 2, 1>} : memref<9x18x4xf32, #tpu.memory_space<vmem>>, vector<8x8x4xf32>
    %41 = vector.shape_cast %40 : vector<8x8x4xf32> to vector<64x4xf32>
    %42 = arith.truncf %41 : vector<64x4xf32> to vector<64x4xbf16>
    %c2_47 = arith.constant 2 : index
    %c0_48 = arith.constant 0 : index
    %c0_49 = arith.constant 0 : index
    %43 = vector.load %arg4[%c2_47, %c0_48, %c0_49] : memref<9x4x8xbf16, #tpu.memory_space<vmem>>, vector<1x4x8xbf16>
    %44 = vector.shape_cast %43 : vector<1x4x8xbf16> to vector<4x8xbf16>
    %cst_50 = arith.constant dense<0.000000e+00> : vector<64x8xf32>
    %45 = tpu.matmul %42, %44, %cst_50 {dimension_numbers = #tpu.dot_dimension_numbers<[1], [0], [0], [1], [0, 0, 1, 1], [], []>} : vector<64x4xbf16>, vector<4x8xbf16>, vector<64x8xf32> -> vector<64x8xf32>
    %46 = arith.addf %39, %45 : vector<64x8xf32>
    %c0_51 = arith.constant 0 : index
    %c0_52 = arith.constant 0 : index
    %c0_53 = arith.constant 0 : index
    %47 = tpu.strided_load %arg10[%c0_51, %c0_52, %c0_53] {strides = array<i32: 1, 2, 1>} : memref<9x18x4xf32, #tpu.memory_space<vmem>>, vector<8x8x4xf32>
    %48 = vector.shape_cast %47 : vector<8x8x4xf32> to vector<64x4xf32>
    %49 = arith.truncf %48 : vector<64x4xf32> to vector<64x4xbf16>
    %c3 = arith.constant 3 : index
    %c0_54 = arith.constant 0 : index
    %c0_55 = arith.constant 0 : index
    %50 = vector.load %arg4[%c3, %c0_54, %c0_55] : memref<9x4x8xbf16, #tpu.memory_space<vmem>>, vector<1x4x8xbf16>
    %51 = vector.shape_cast %50 : vector<1x4x8xbf16> to vector<4x8xbf16>
    %cst_56 = arith.constant dense<0.000000e+00> : vector<64x8xf32>
    %52 = tpu.matmul %49, %51, %cst_56 {dimension_numbers = #tpu.dot_dimension_numbers<[1], [0], [0], [1], [0, 0, 1, 1], [], []>} : vector<64x4xbf16>, vector<4x8xbf16>, vector<64x8xf32> -> vector<64x8xf32>
    %53 = arith.addf %46, %52 : vector<64x8xf32>
    %c0_57 = arith.constant 0 : index
    %c1_58 = arith.constant 1 : index
    %c0_59 = arith.constant 0 : index
    %54 = tpu.strided_load %arg10[%c0_57, %c1_58, %c0_59] {strides = array<i32: 1, 2, 1>} : memref<9x18x4xf32, #tpu.memory_space<vmem>>, vector<8x8x4xf32>
    %55 = vector.shape_cast %54 : vector<8x8x4xf32> to vector<64x4xf32>
    %56 = arith.truncf %55 : vector<64x4xf32> to vector<64x4xbf16>
    %c4 = arith.constant 4 : index
    %c0_60 = arith.constant 0 : index
    %c0_61 = arith.constant 0 : index
    %57 = vector.load %arg4[%c4, %c0_60, %c0_61] : memref<9x4x8xbf16, #tpu.memory_space<vmem>>, vector<1x4x8xbf16>
    %58 = vector.shape_cast %57 : vector<1x4x8xbf16> to vector<4x8xbf16>
    %cst_62 = arith.constant dense<0.000000e+00> : vector<64x8xf32>
    %59 = tpu.matmul %56, %58, %cst_62 {dimension_numbers = #tpu.dot_dimension_numbers<[1], [0], [0], [1], [0, 0, 1, 1], [], []>} : vector<64x4xbf16>, vector<4x8xbf16>, vector<64x8xf32> -> vector<64x8xf32>
    %60 = arith.addf %53, %59 : vector<64x8xf32>
    %c0_63 = arith.constant 0 : index
    %c2_64 = arith.constant 2 : index
    %c0_65 = arith.constant 0 : index
    %61 = tpu.strided_load %arg10[%c0_63, %c2_64, %c0_65] {strides = array<i32: 1, 2, 1>} : memref<9x18x4xf32, #tpu.memory_space<vmem>>, vector<8x8x4xf32>
    %62 = vector.shape_cast %61 : vector<8x8x4xf32> to vector<64x4xf32>
    %63 = arith.truncf %62 : vector<64x4xf32> to vector<64x4xbf16>
    %c5 = arith.constant 5 : index
    %c0_66 = arith.constant 0 : index
    %c0_67 = arith.constant 0 : index
    %64 = vector.load %arg4[%c5, %c0_66, %c0_67] : memref<9x4x8xbf16, #tpu.memory_space<vmem>>, vector<1x4x8xbf16>
    %65 = vector.shape_cast %64 : vector<1x4x8xbf16> to vector<4x8xbf16>
    %cst_68 = arith.constant dense<0.000000e+00> : vector<64x8xf32>
    %66 = tpu.matmul %63, %65, %cst_68 {dimension_numbers = #tpu.dot_dimension_numbers<[1], [0], [0], [1], [0, 0, 1, 1], [], []>} : vector<64x4xbf16>, vector<4x8xbf16>, vector<64x8xf32> -> vector<64x8xf32>
    %67 = arith.addf %60, %66 : vector<64x8xf32>
    %c1_69 = arith.constant 1 : index
    %c0_70 = arith.constant 0 : index
    %c0_71 = arith.constant 0 : index
    %68 = tpu.strided_load %arg9[%c1_69, %c0_70, %c0_71] {strides = array<i32: 1, 2, 1>} : memref<9x18x4xf32, #tpu.memory_space<vmem>>, vector<8x8x4xf32>
    %69 = vector.shape_cast %68 : vector<8x8x4xf32> to vector<64x4xf32>
    %70 = arith.truncf %69 : vector<64x4xf32> to vector<64x4xbf16>
    %c6 = arith.constant 6 : index
    %c0_72 = arith.constant 0 : index
    %c0_73 = arith.constant 0 : index
    %71 = vector.load %arg4[%c6, %c0_72, %c0_73] : memref<9x4x8xbf16, #tpu.memory_space<vmem>>, vector<1x4x8xbf16>
    %72 = vector.shape_cast %71 : vector<1x4x8xbf16> to vector<4x8xbf16>
    %cst_74 = arith.constant dense<0.000000e+00> : vector<64x8xf32>
    %73 = tpu.matmul %70, %72, %cst_74 {dimension_numbers = #tpu.dot_dimension_numbers<[1], [0], [0], [1], [0, 0, 1, 1], [], []>} : vector<64x4xbf16>, vector<4x8xbf16>, vector<64x8xf32> -> vector<64x8xf32>
    %74 = arith.addf %67, %73 : vector<64x8xf32>
    %c1_75 = arith.constant 1 : index
    %c1_76 = arith.constant 1 : index
    %c0_77 = arith.constant 0 : index
    %75 = tpu.strided_load %arg9[%c1_75, %c1_76, %c0_77] {strides = array<i32: 1, 2, 1>} : memref<9x18x4xf32, #tpu.memory_space<vmem>>, vector<8x8x4xf32>
    %76 = vector.shape_cast %75 : vector<8x8x4xf32> to vector<64x4xf32>
    %77 = arith.truncf %76 : vector<64x4xf32> to vector<64x4xbf16>
    %c7 = arith.constant 7 : index
    %c0_78 = arith.constant 0 : index
    %c0_79 = arith.constant 0 : index
    %78 = vector.load %arg4[%c7, %c0_78, %c0_79] : memref<9x4x8xbf16, #tpu.memory_space<vmem>>, vector<1x4x8xbf16>
    %79 = vector.shape_cast %78 : vector<1x4x8xbf16> to vector<4x8xbf16>
    %cst_80 = arith.constant dense<0.000000e+00> : vector<64x8xf32>
    %80 = tpu.matmul %77, %79, %cst_80 {dimension_numbers = #tpu.dot_dimension_numbers<[1], [0], [0], [1], [0, 0, 1, 1], [], []>} : vector<64x4xbf16>, vector<4x8xbf16>, vector<64x8xf32> -> vector<64x8xf32>
    %81 = arith.addf %74, %80 : vector<64x8xf32>
    %c1_81 = arith.constant 1 : index
    %c2_82 = arith.constant 2 : index
    %c0_83 = arith.constant 0 : index
    %82 = tpu.strided_load %arg9[%c1_81, %c2_82, %c0_83] {strides = array<i32: 1, 2, 1>} : memref<9x18x4xf32, #tpu.memory_space<vmem>>, vector<8x8x4xf32>
    %83 = vector.shape_cast %82 : vector<8x8x4xf32> to vector<64x4xf32>
    %84 = arith.truncf %83 : vector<64x4xf32> to vector<64x4xbf16>
    %c8_84 = arith.constant 8 : index
    %c0_85 = arith.constant 0 : index
    %c0_86 = arith.constant 0 : index
    %85 = vector.load %arg4[%c8_84, %c0_85, %c0_86] : memref<9x4x8xbf16, #tpu.memory_space<vmem>>, vector<1x4x8xbf16>
    %86 = vector.shape_cast %85 : vector<1x4x8xbf16> to vector<4x8xbf16>
    %cst_87 = arith.constant dense<0.000000e+00> : vector<64x8xf32>
    %87 = tpu.matmul %84, %86, %cst_87 {dimension_numbers = #tpu.dot_dimension_numbers<[1], [0], [0], [1], [0, 0, 1, 1], [], []>} : vector<64x4xbf16>, vector<4x8xbf16>, vector<64x8xf32> -> vector<64x8xf32>
    %88 = arith.addf %81, %87 : vector<64x8xf32>
    %89 = arith.truncf %88 : vector<64x8xf32> to vector<64x8xbf16>
    %c0_88 = arith.constant 0 : index
    %c0_89 = arith.constant 0 : index
    %c0_90 = arith.constant 0 : index
    %90 = vector.load %arg6[%c0_88, %c0_89, %c0_90] : memref<1x64x8xbf16, #tpu.memory_space<vmem>>, vector<1x64x8xbf16>
    %91 = vector.shape_cast %90 : vector<1x64x8xbf16> to vector<64x8xbf16>
    %92 = vector.shape_cast %89 : vector<64x8xbf16> to vector<1x64x8xbf16>
    tpu.vector_store %arg6[%c0_88, %c0_89, %c0_90], %92 {strides = array<i32>} : memref<1x64x8xbf16, #tpu.memory_space<vmem>>, vector<1x64x8xbf16>,
    %cst_91 = arith.constant dense<0.000000e+00> : vector<8xf32>
    %93 = vector.multi_reduction <add>, %88, %cst_91 [0] : vector<64x8xf32> to vector<8xf32>
    %94 = vector.shape_cast %93 : vector<8xf32> to vector<1x8xf32>
    %95 = arith.addf %25, %94 : vector<1x8xf32>
    %96 = arith.mulf %88, %88 : vector<64x8xf32>
    %cst_92 = arith.constant dense<0.000000e+00> : vector<8xf32>
    %97 = vector.multi_reduction <add>, %96, %cst_92 [0] : vector<64x8xf32> to vector<8xf32>
    %98 = vector.shape_cast %97 : vector<8xf32> to vector<1x8xf32>
    %99 = arith.addf %26, %98 : vector<1x8xf32>
    %c0_93 = arith.constant 0 : index
    %c0_94 = arith.constant 0 : index
    %100 = vector.load %arg5[%c0_93, %c0_94] : memref<4x8xbf16, #tpu.memory_space<vmem>>, vector<4x8xbf16>
    %cst_95 = arith.constant dense<0.000000e+00> : vector<64x8xf32>
    %101 = tpu.matmul %56, %100, %cst_95 {dimension_numbers = #tpu.dot_dimension_numbers<[1], [0], [0], [1], [0, 0, 1, 1], [], []>} : vector<64x4xbf16>, vector<4x8xbf16>, vector<64x8xf32> -> vector<64x8xf32>
    %102 = arith.truncf %101 : vector<64x8xf32> to vector<64x8xbf16>
    %c0_96 = arith.constant 0 : index
    %c0_97 = arith.constant 0 : index
    %c0_98 = arith.constant 0 : index
    %103 = vector.load %arg7[%c0_96, %c0_97, %c0_98] : memref<1x64x8xbf16, #tpu.memory_space<vmem>>, vector<1x64x8xbf16>
    %104 = vector.shape_cast %103 : vector<1x64x8xbf16> to vector<64x8xbf16>
    %105 = vector.shape_cast %102 : vector<64x8xbf16> to vector<1x64x8xbf16>
    tpu.vector_store %arg7[%c0_96, %c0_97, %c0_98], %105 {strides = array<i32>} : memref<1x64x8xbf16, #tpu.memory_space<vmem>>, vector<1x64x8xbf16>,
    %c0_99 = arith.constant 0 : index
    %c0_100 = arith.constant 0 : index
    %c0_101 = arith.constant 0 : index
    %106 = vector.load %arg8[%c0_99, %c0_100, %c0_101] : memref<1x2x8xf32, #tpu.memory_space<vmem>>, vector<1x1x8xf32>
    %107 = vector.shape_cast %106 : vector<1x1x8xf32> to vector<1x8xf32>
    %108 = vector.shape_cast %95 : vector<1x8xf32> to vector<1x1x8xf32>
    tpu.vector_store %arg8[%c0_99, %c0_100, %c0_101], %108 {strides = array<i32>} : memref<1x2x8xf32, #tpu.memory_space<vmem>>, vector<1x1x8xf32>,
    %c0_102 = arith.constant 0 : index
    %c1_103 = arith.constant 1 : index
    %c0_104 = arith.constant 0 : index
    %109 = vector.load %arg8[%c0_102, %c1_103, %c0_104] : memref<1x2x8xf32, #tpu.memory_space<vmem>>, vector<1x1x8xf32>
    %110 = vector.shape_cast %109 : vector<1x1x8xf32> to vector<1x8xf32>
    %111 = vector.shape_cast %99 : vector<1x8xf32> to vector<1x1x8xf32>
    tpu.vector_store %arg8[%c0_102, %c1_103, %c0_104], %111 {strides = array<i32>} : memref<1x2x8xf32, #tpu.memory_space<vmem>>, vector<1x1x8xf32>,
    return
  }
  func.func @transform_0(%arg0: i32) -> (i32, i32, i32) {
    %c0_i32 = arith.constant 0 : i32
    %c0_i32_0 = arith.constant 0 : i32
    %c0_i32_1 = arith.constant 0 : i32
    return %arg0, %c0_i32, %c0_i32_0 : i32, i32, i32
  }
  func.func @transform_1(%arg0: i32) -> (i32, i32) {
    %c0_i32 = arith.constant 0 : i32
    %c0_i32_0 = arith.constant 0 : i32
    %c0_i32_1 = arith.constant 0 : i32
    return %c0_i32, %c0_i32_0 : i32, i32
  }
  func.func @transform_2(%arg0: i32) -> (i32, i32) {
    %c0_i32 = arith.constant 0 : i32
    %c0_i32_0 = arith.constant 0 : i32
    %c0_i32_1 = arith.constant 0 : i32
    return %c0_i32, %c0_i32_0 : i32, i32
  }
  func.func @transform_3(%arg0: i32) -> (i32, i32, i32) {
    %c0_i32 = arith.constant 0 : i32
    %c0_i32_0 = arith.constant 0 : i32
    %c0_i32_1 = arith.constant 0 : i32
    %c0_i32_2 = arith.constant 0 : i32
    return %c0_i32, %c0_i32_0, %c0_i32_1 : i32, i32, i32
  }
  func.func @transform_4(%arg0: i32) -> (i32, i32) {
    %c0_i32 = arith.constant 0 : i32
    %c0_i32_0 = arith.constant 0 : i32
    %c0_i32_1 = arith.constant 0 : i32
    return %c0_i32, %c0_i32_0 : i32, i32
  }
  func.func @transform_5(%arg0: i32) -> (i32, i32, i32) {
    %c0_i32 = arith.constant 0 : i32
    %c0_i32_0 = arith.constant 0 : i32
    %c0_i32_1 = arith.constant 0 : i32
    return %arg0, %c0_i32, %c0_i32_0 : i32, i32, i32
  }
  func.func @transform_6(%arg0: i32) -> (i32, i32, i32) {
    %c0_i32 = arith.constant 0 : i32
    %c0_i32_0 = arith.constant 0 : i32
    %c0_i32_1 = arith.constant 0 : i32
    return %arg0, %c0_i32, %c0_i32_0 : i32, i32, i32
  }
  func.func @transform_7(%arg0: i32) -> (i32, i32, i32) {
    %c0_i32 = arith.constant 0 : i32
    %c0_i32_0 = arith.constant 0 : i32
    %c0_i32_1 = arith.constant 0 : i32
    return %arg0, %c0_i32, %c0_i32_0 : i32, i32, i32
  }
}

module attributes {stable_mosaic.version = 11 : i64} {
  func.func @kernel(%arg0: i32, %arg1: memref<1x64x8xbf16, #tpu.memory_space<vmem>>, %arg2: memref<1x8xf32, #tpu.memory_space<vmem>>, %arg3: memref<1x8xf32, #tpu.memory_space<vmem>>, %arg4: memref<9x8x8xbf16, #tpu.memory_space<vmem>>, %arg5: memref<1x64x8xbf16, #tpu.memory_space<vmem>>, %arg6: memref<1x2x8xf32, #tpu.memory_space<vmem>>, %arg7: memref<10x10x8xf32, #tpu.memory_space<vmem>>) attributes {dimension_semantics = [#tpu.dimension_semantics<parallel>], iteration_bounds = array<i64: 2>, scalar_prefetch = 0 : i64, scratch_operands = 1 : i64, tpu.core_type = #tpu.core_type<tc>, window_params = [{transform_indices = @transform_0, window_bounds = array<i64: 1, 64, 8>}, {pipeline_mode = #tpu.pipeline_mode<synchronous>, transform_indices = @transform_1, window_bounds = array<i64: 1, 8>}, {pipeline_mode = #tpu.pipeline_mode<synchronous>, transform_indices = @transform_2, window_bounds = array<i64: 1, 8>}, {pipeline_mode = #tpu.pipeline_mode<synchronous>, transform_indices = @transform_3, window_bounds = array<i64: 9, 8, 8>}, {transform_indices = @transform_4, window_bounds = array<i64: 1, 64, 8>}, {transform_indices = @transform_5, window_bounds = array<i64: 1, 2, 8>}]} {
    %c0 = arith.constant 0 : index
    %c0_0 = arith.constant 0 : index
    %c0_1 = arith.constant 0 : index
    %0 = vector.load %arg1[%c0, %c0_0, %c0_1] : memref<1x64x8xbf16, #tpu.memory_space<vmem>>, vector<1x64x8xbf16>
    %1 = vector.shape_cast %0 : vector<1x64x8xbf16> to vector<64x8xbf16>
    %2 = arith.extf %1 : vector<64x8xbf16> to vector<64x8xf32>
    %c0_2 = arith.constant 0 : index
    %c0_3 = arith.constant 0 : index
    %3 = vector.load %arg2[%c0_2, %c0_3] : memref<1x8xf32, #tpu.memory_space<vmem>>, vector<1x8xf32>
    %4 = vector.broadcast %3 : vector<1x8xf32> to vector<64x8xf32>
    %5 = arith.mulf %2, %4 : vector<64x8xf32>
    %c0_4 = arith.constant 0 : index
    %c0_5 = arith.constant 0 : index
    %6 = vector.load %arg3[%c0_4, %c0_5] : memref<1x8xf32, #tpu.memory_space<vmem>>, vector<1x8xf32>
    %7 = vector.broadcast %6 : vector<1x8xf32> to vector<64x8xf32>
    %8 = arith.addf %5, %7 : vector<64x8xf32>
    %cst = arith.constant 0.000000e+00 : f32
    %9 = vector.broadcast %cst : f32 to vector<64x8xf32>
    %10 = arith.maximumf %8, %9 : vector<64x8xf32>
    %cst_6 = arith.constant 0.000000e+00 : f32
    %11 = vector.broadcast %cst_6 : f32 to vector<1x10x8xf32>
    %12 = vector.shape_cast %10 : vector<64x8xf32> to vector<8x8x8xf32>
    %cst_7 = arith.constant 0.000000e+00 : f32
    %13 = vector.broadcast %cst_7 : f32 to vector<10x1x8xf32>
    %c0_8 = arith.constant 0 : index
    %c0_9 = arith.constant 0 : index
    %c0_10 = arith.constant 0 : index
    %14 = vector.load %arg7[%c0_8, %c0_9, %c0_10] : memref<10x10x8xf32, #tpu.memory_space<vmem>>, vector<1x10x8xf32>
    tpu.vector_store %arg7[%c0_8, %c0_9, %c0_10], %11 {strides = array<i32>} : memref<10x10x8xf32, #tpu.memory_space<vmem>>, vector<1x10x8xf32>,
    %c9 = arith.constant 9 : index
    %c0_11 = arith.constant 0 : index
    %c0_12 = arith.constant 0 : index
    %15 = vector.load %arg7[%c9, %c0_11, %c0_12] : memref<10x10x8xf32, #tpu.memory_space<vmem>>, vector<1x10x8xf32>
    tpu.vector_store %arg7[%c9, %c0_11, %c0_12], %11 {strides = array<i32>} : memref<10x10x8xf32, #tpu.memory_space<vmem>>, vector<1x10x8xf32>,
    %c0_13 = arith.constant 0 : index
    %c0_14 = arith.constant 0 : index
    %c0_15 = arith.constant 0 : index
    %16 = vector.load %arg7[%c0_13, %c0_14, %c0_15] : memref<10x10x8xf32, #tpu.memory_space<vmem>>, vector<10x1x8xf32>
    tpu.vector_store %arg7[%c0_13, %c0_14, %c0_15], %13 {strides = array<i32>} : memref<10x10x8xf32, #tpu.memory_space<vmem>>, vector<10x1x8xf32>,
    %c0_16 = arith.constant 0 : index
    %c9_17 = arith.constant 9 : index
    %c0_18 = arith.constant 0 : index
    %17 = vector.load %arg7[%c0_16, %c9_17, %c0_18] : memref<10x10x8xf32, #tpu.memory_space<vmem>>, vector<10x1x8xf32>
    tpu.vector_store %arg7[%c0_16, %c9_17, %c0_18], %13 {strides = array<i32>} : memref<10x10x8xf32, #tpu.memory_space<vmem>>, vector<10x1x8xf32>,
    %c1 = arith.constant 1 : index
    %c1_19 = arith.constant 1 : index
    %c0_20 = arith.constant 0 : index
    %18 = vector.load %arg7[%c1, %c1_19, %c0_20] : memref<10x10x8xf32, #tpu.memory_space<vmem>>, vector<8x8x8xf32>
    tpu.vector_store %arg7[%c1, %c1_19, %c0_20], %12 {strides = array<i32>} : memref<10x10x8xf32, #tpu.memory_space<vmem>>, vector<8x8x8xf32>,
    %cst_21 = arith.constant 0.000000e+00 : f32
    %19 = vector.broadcast %cst_21 : f32 to vector<1x8xf32>
    %cst_22 = arith.constant 0.000000e+00 : f32
    %20 = vector.broadcast %cst_22 : f32 to vector<1x8xf32>
    %c0_23 = arith.constant 0 : index
    %c0_24 = arith.constant 0 : index
    %c0_25 = arith.constant 0 : index
    %21 = vector.load %arg7[%c0_23, %c0_24, %c0_25] : memref<10x10x8xf32, #tpu.memory_space<vmem>>, vector<8x8x8xf32>
    %22 = vector.shape_cast %21 : vector<8x8x8xf32> to vector<64x8xf32>
    %23 = arith.truncf %22 : vector<64x8xf32> to vector<64x8xbf16>
    %c0_26 = arith.constant 0 : index
    %c0_27 = arith.constant 0 : index
    %c0_28 = arith.constant 0 : index
    %24 = vector.load %arg4[%c0_26, %c0_27, %c0_28] : memref<9x8x8xbf16, #tpu.memory_space<vmem>>, vector<1x8x8xbf16>
    %25 = vector.shape_cast %24 : vector<1x8x8xbf16> to vector<8x8xbf16>
    %cst_29 = arith.constant dense<0.000000e+00> : vector<64x8xf32>
    %26 = tpu.matmul %23, %25, %cst_29 {dimension_numbers = #tpu.dot_dimension_numbers<[1], [0], [0], [1], [0, 0, 1, 1], [], []>} : vector<64x8xbf16>, vector<8x8xbf16>, vector<64x8xf32> -> vector<64x8xf32>
    %c0_30 = arith.constant 0 : index
    %c1_31 = arith.constant 1 : index
    %c0_32 = arith.constant 0 : index
    %27 = vector.load %arg7[%c0_30, %c1_31, %c0_32] : memref<10x10x8xf32, #tpu.memory_space<vmem>>, vector<8x8x8xf32>
    %28 = vector.shape_cast %27 : vector<8x8x8xf32> to vector<64x8xf32>
    %29 = arith.truncf %28 : vector<64x8xf32> to vector<64x8xbf16>
    %c1_33 = arith.constant 1 : index
    %c0_34 = arith.constant 0 : index
    %c0_35 = arith.constant 0 : index
    %30 = vector.load %arg4[%c1_33, %c0_34, %c0_35] : memref<9x8x8xbf16, #tpu.memory_space<vmem>>, vector<1x8x8xbf16>
    %31 = vector.shape_cast %30 : vector<1x8x8xbf16> to vector<8x8xbf16>
    %cst_36 = arith.constant dense<0.000000e+00> : vector<64x8xf32>
    %32 = tpu.matmul %29, %31, %cst_36 {dimension_numbers = #tpu.dot_dimension_numbers<[1], [0], [0], [1], [0, 0, 1, 1], [], []>} : vector<64x8xbf16>, vector<8x8xbf16>, vector<64x8xf32> -> vector<64x8xf32>
    %33 = arith.addf %26, %32 : vector<64x8xf32>
    %c0_37 = arith.constant 0 : index
    %c2 = arith.constant 2 : index
    %c0_38 = arith.constant 0 : index
    %34 = vector.load %arg7[%c0_37, %c2, %c0_38] : memref<10x10x8xf32, #tpu.memory_space<vmem>>, vector<8x8x8xf32>
    %35 = vector.shape_cast %34 : vector<8x8x8xf32> to vector<64x8xf32>
    %36 = arith.truncf %35 : vector<64x8xf32> to vector<64x8xbf16>
    %c2_39 = arith.constant 2 : index
    %c0_40 = arith.constant 0 : index
    %c0_41 = arith.constant 0 : index
    %37 = vector.load %arg4[%c2_39, %c0_40, %c0_41] : memref<9x8x8xbf16, #tpu.memory_space<vmem>>, vector<1x8x8xbf16>
    %38 = vector.shape_cast %37 : vector<1x8x8xbf16> to vector<8x8xbf16>
    %cst_42 = arith.constant dense<0.000000e+00> : vector<64x8xf32>
    %39 = tpu.matmul %36, %38, %cst_42 {dimension_numbers = #tpu.dot_dimension_numbers<[1], [0], [0], [1], [0, 0, 1, 1], [], []>} : vector<64x8xbf16>, vector<8x8xbf16>, vector<64x8xf32> -> vector<64x8xf32>
    %40 = arith.addf %33, %39 : vector<64x8xf32>
    %c1_43 = arith.constant 1 : index
    %c0_44 = arith.constant 0 : index
    %c0_45 = arith.constant 0 : index
    %41 = vector.load %arg7[%c1_43, %c0_44, %c0_45] : memref<10x10x8xf32, #tpu.memory_space<vmem>>, vector<8x8x8xf32>
    %42 = vector.shape_cast %41 : vector<8x8x8xf32> to vector<64x8xf32>
    %43 = arith.truncf %42 : vector<64x8xf32> to vector<64x8xbf16>
    %c3 = arith.constant 3 : index
    %c0_46 = arith.constant 0 : index
    %c0_47 = arith.constant 0 : index
    %44 = vector.load %arg4[%c3, %c0_46, %c0_47] : memref<9x8x8xbf16, #tpu.memory_space<vmem>>, vector<1x8x8xbf16>
    %45 = vector.shape_cast %44 : vector<1x8x8xbf16> to vector<8x8xbf16>
    %cst_48 = arith.constant dense<0.000000e+00> : vector<64x8xf32>
    %46 = tpu.matmul %43, %45, %cst_48 {dimension_numbers = #tpu.dot_dimension_numbers<[1], [0], [0], [1], [0, 0, 1, 1], [], []>} : vector<64x8xbf16>, vector<8x8xbf16>, vector<64x8xf32> -> vector<64x8xf32>
    %47 = arith.addf %40, %46 : vector<64x8xf32>
    %c1_49 = arith.constant 1 : index
    %c1_50 = arith.constant 1 : index
    %c0_51 = arith.constant 0 : index
    %48 = vector.load %arg7[%c1_49, %c1_50, %c0_51] : memref<10x10x8xf32, #tpu.memory_space<vmem>>, vector<8x8x8xf32>
    %49 = vector.shape_cast %48 : vector<8x8x8xf32> to vector<64x8xf32>
    %50 = arith.truncf %49 : vector<64x8xf32> to vector<64x8xbf16>
    %c4 = arith.constant 4 : index
    %c0_52 = arith.constant 0 : index
    %c0_53 = arith.constant 0 : index
    %51 = vector.load %arg4[%c4, %c0_52, %c0_53] : memref<9x8x8xbf16, #tpu.memory_space<vmem>>, vector<1x8x8xbf16>
    %52 = vector.shape_cast %51 : vector<1x8x8xbf16> to vector<8x8xbf16>
    %cst_54 = arith.constant dense<0.000000e+00> : vector<64x8xf32>
    %53 = tpu.matmul %50, %52, %cst_54 {dimension_numbers = #tpu.dot_dimension_numbers<[1], [0], [0], [1], [0, 0, 1, 1], [], []>} : vector<64x8xbf16>, vector<8x8xbf16>, vector<64x8xf32> -> vector<64x8xf32>
    %54 = arith.addf %47, %53 : vector<64x8xf32>
    %c1_55 = arith.constant 1 : index
    %c2_56 = arith.constant 2 : index
    %c0_57 = arith.constant 0 : index
    %55 = vector.load %arg7[%c1_55, %c2_56, %c0_57] : memref<10x10x8xf32, #tpu.memory_space<vmem>>, vector<8x8x8xf32>
    %56 = vector.shape_cast %55 : vector<8x8x8xf32> to vector<64x8xf32>
    %57 = arith.truncf %56 : vector<64x8xf32> to vector<64x8xbf16>
    %c5 = arith.constant 5 : index
    %c0_58 = arith.constant 0 : index
    %c0_59 = arith.constant 0 : index
    %58 = vector.load %arg4[%c5, %c0_58, %c0_59] : memref<9x8x8xbf16, #tpu.memory_space<vmem>>, vector<1x8x8xbf16>
    %59 = vector.shape_cast %58 : vector<1x8x8xbf16> to vector<8x8xbf16>
    %cst_60 = arith.constant dense<0.000000e+00> : vector<64x8xf32>
    %60 = tpu.matmul %57, %59, %cst_60 {dimension_numbers = #tpu.dot_dimension_numbers<[1], [0], [0], [1], [0, 0, 1, 1], [], []>} : vector<64x8xbf16>, vector<8x8xbf16>, vector<64x8xf32> -> vector<64x8xf32>
    %61 = arith.addf %54, %60 : vector<64x8xf32>
    %c2_61 = arith.constant 2 : index
    %c0_62 = arith.constant 0 : index
    %c0_63 = arith.constant 0 : index
    %62 = vector.load %arg7[%c2_61, %c0_62, %c0_63] : memref<10x10x8xf32, #tpu.memory_space<vmem>>, vector<8x8x8xf32>
    %63 = vector.shape_cast %62 : vector<8x8x8xf32> to vector<64x8xf32>
    %64 = arith.truncf %63 : vector<64x8xf32> to vector<64x8xbf16>
    %c6 = arith.constant 6 : index
    %c0_64 = arith.constant 0 : index
    %c0_65 = arith.constant 0 : index
    %65 = vector.load %arg4[%c6, %c0_64, %c0_65] : memref<9x8x8xbf16, #tpu.memory_space<vmem>>, vector<1x8x8xbf16>
    %66 = vector.shape_cast %65 : vector<1x8x8xbf16> to vector<8x8xbf16>
    %cst_66 = arith.constant dense<0.000000e+00> : vector<64x8xf32>
    %67 = tpu.matmul %64, %66, %cst_66 {dimension_numbers = #tpu.dot_dimension_numbers<[1], [0], [0], [1], [0, 0, 1, 1], [], []>} : vector<64x8xbf16>, vector<8x8xbf16>, vector<64x8xf32> -> vector<64x8xf32>
    %68 = arith.addf %61, %67 : vector<64x8xf32>
    %c2_67 = arith.constant 2 : index
    %c1_68 = arith.constant 1 : index
    %c0_69 = arith.constant 0 : index
    %69 = vector.load %arg7[%c2_67, %c1_68, %c0_69] : memref<10x10x8xf32, #tpu.memory_space<vmem>>, vector<8x8x8xf32>
    %70 = vector.shape_cast %69 : vector<8x8x8xf32> to vector<64x8xf32>
    %71 = arith.truncf %70 : vector<64x8xf32> to vector<64x8xbf16>
    %c7 = arith.constant 7 : index
    %c0_70 = arith.constant 0 : index
    %c0_71 = arith.constant 0 : index
    %72 = vector.load %arg4[%c7, %c0_70, %c0_71] : memref<9x8x8xbf16, #tpu.memory_space<vmem>>, vector<1x8x8xbf16>
    %73 = vector.shape_cast %72 : vector<1x8x8xbf16> to vector<8x8xbf16>
    %cst_72 = arith.constant dense<0.000000e+00> : vector<64x8xf32>
    %74 = tpu.matmul %71, %73, %cst_72 {dimension_numbers = #tpu.dot_dimension_numbers<[1], [0], [0], [1], [0, 0, 1, 1], [], []>} : vector<64x8xbf16>, vector<8x8xbf16>, vector<64x8xf32> -> vector<64x8xf32>
    %75 = arith.addf %68, %74 : vector<64x8xf32>
    %c2_73 = arith.constant 2 : index
    %c2_74 = arith.constant 2 : index
    %c0_75 = arith.constant 0 : index
    %76 = vector.load %arg7[%c2_73, %c2_74, %c0_75] : memref<10x10x8xf32, #tpu.memory_space<vmem>>, vector<8x8x8xf32>
    %77 = vector.shape_cast %76 : vector<8x8x8xf32> to vector<64x8xf32>
    %78 = arith.truncf %77 : vector<64x8xf32> to vector<64x8xbf16>
    %c8 = arith.constant 8 : index
    %c0_76 = arith.constant 0 : index
    %c0_77 = arith.constant 0 : index
    %79 = vector.load %arg4[%c8, %c0_76, %c0_77] : memref<9x8x8xbf16, #tpu.memory_space<vmem>>, vector<1x8x8xbf16>
    %80 = vector.shape_cast %79 : vector<1x8x8xbf16> to vector<8x8xbf16>
    %cst_78 = arith.constant dense<0.000000e+00> : vector<64x8xf32>
    %81 = tpu.matmul %78, %80, %cst_78 {dimension_numbers = #tpu.dot_dimension_numbers<[1], [0], [0], [1], [0, 0, 1, 1], [], []>} : vector<64x8xbf16>, vector<8x8xbf16>, vector<64x8xf32> -> vector<64x8xf32>
    %82 = arith.addf %75, %81 : vector<64x8xf32>
    %83 = arith.truncf %82 : vector<64x8xf32> to vector<64x8xbf16>
    %c0_79 = arith.constant 0 : index
    %c0_80 = arith.constant 0 : index
    %c0_81 = arith.constant 0 : index
    %84 = vector.load %arg5[%c0_79, %c0_80, %c0_81] : memref<1x64x8xbf16, #tpu.memory_space<vmem>>, vector<1x64x8xbf16>
    %85 = vector.shape_cast %84 : vector<1x64x8xbf16> to vector<64x8xbf16>
    %86 = vector.shape_cast %83 : vector<64x8xbf16> to vector<1x64x8xbf16>
    tpu.vector_store %arg5[%c0_79, %c0_80, %c0_81], %86 {strides = array<i32>} : memref<1x64x8xbf16, #tpu.memory_space<vmem>>, vector<1x64x8xbf16>,
    %cst_82 = arith.constant dense<0.000000e+00> : vector<8xf32>
    %87 = vector.multi_reduction <add>, %82, %cst_82 [0] : vector<64x8xf32> to vector<8xf32>
    %88 = vector.shape_cast %87 : vector<8xf32> to vector<1x8xf32>
    %89 = arith.addf %19, %88 : vector<1x8xf32>
    %90 = arith.mulf %82, %82 : vector<64x8xf32>
    %cst_83 = arith.constant dense<0.000000e+00> : vector<8xf32>
    %91 = vector.multi_reduction <add>, %90, %cst_83 [0] : vector<64x8xf32> to vector<8xf32>
    %92 = vector.shape_cast %91 : vector<8xf32> to vector<1x8xf32>
    %93 = arith.addf %20, %92 : vector<1x8xf32>
    %c0_84 = arith.constant 0 : index
    %c0_85 = arith.constant 0 : index
    %c0_86 = arith.constant 0 : index
    %94 = vector.load %arg6[%c0_84, %c0_85, %c0_86] : memref<1x2x8xf32, #tpu.memory_space<vmem>>, vector<1x1x8xf32>
    %95 = vector.shape_cast %94 : vector<1x1x8xf32> to vector<1x8xf32>
    %96 = vector.shape_cast %89 : vector<1x8xf32> to vector<1x1x8xf32>
    tpu.vector_store %arg6[%c0_84, %c0_85, %c0_86], %96 {strides = array<i32>} : memref<1x2x8xf32, #tpu.memory_space<vmem>>, vector<1x1x8xf32>,
    %c0_87 = arith.constant 0 : index
    %c1_88 = arith.constant 1 : index
    %c0_89 = arith.constant 0 : index
    %97 = vector.load %arg6[%c0_87, %c1_88, %c0_89] : memref<1x2x8xf32, #tpu.memory_space<vmem>>, vector<1x1x8xf32>
    %98 = vector.shape_cast %97 : vector<1x1x8xf32> to vector<1x8xf32>
    %99 = vector.shape_cast %93 : vector<1x8xf32> to vector<1x1x8xf32>
    tpu.vector_store %arg6[%c0_87, %c1_88, %c0_89], %99 {strides = array<i32>} : memref<1x2x8xf32, #tpu.memory_space<vmem>>, vector<1x1x8xf32>,
    return
  }
  func.func @transform_0(%arg0: i32) -> (i32, i32, i32) {
    %c0_i32 = arith.constant 0 : i32
    %c0_i32_0 = arith.constant 0 : i32
    %c0_i32_1 = arith.constant 0 : i32
    return %arg0, %c0_i32, %c0_i32_0 : i32, i32, i32
  }
  func.func @transform_1(%arg0: i32) -> (i32, i32) {
    %c0_i32 = arith.constant 0 : i32
    %c0_i32_0 = arith.constant 0 : i32
    %c0_i32_1 = arith.constant 0 : i32
    return %c0_i32, %c0_i32_0 : i32, i32
  }
  func.func @transform_2(%arg0: i32) -> (i32, i32) {
    %c0_i32 = arith.constant 0 : i32
    %c0_i32_0 = arith.constant 0 : i32
    %c0_i32_1 = arith.constant 0 : i32
    return %c0_i32, %c0_i32_0 : i32, i32
  }
  func.func @transform_3(%arg0: i32) -> (i32, i32, i32) {
    %c0_i32 = arith.constant 0 : i32
    %c0_i32_0 = arith.constant 0 : i32
    %c0_i32_1 = arith.constant 0 : i32
    %c0_i32_2 = arith.constant 0 : i32
    return %c0_i32, %c0_i32_0, %c0_i32_1 : i32, i32, i32
  }
  func.func @transform_4(%arg0: i32) -> (i32, i32, i32) {
    %c0_i32 = arith.constant 0 : i32
    %c0_i32_0 = arith.constant 0 : i32
    %c0_i32_1 = arith.constant 0 : i32
    return %arg0, %c0_i32, %c0_i32_0 : i32, i32, i32
  }
  func.func @transform_5(%arg0: i32) -> (i32, i32, i32) {
    %c0_i32 = arith.constant 0 : i32
    %c0_i32_0 = arith.constant 0 : i32
    %c0_i32_1 = arith.constant 0 : i32
    return %arg0, %c0_i32, %c0_i32_0 : i32, i32, i32
  }
}

module attributes {stable_mosaic.version = 11 : i64} {
  func.func @kernel(%arg0: i32, %arg1: memref<1x64x8xbf16, #tpu.memory_space<vmem>>, %arg2: memref<1x8xf32, #tpu.memory_space<vmem>>, %arg3: memref<1x8xf32, #tpu.memory_space<vmem>>, %arg4: memref<9x8x8xbf16, #tpu.memory_space<vmem>>, %arg5: memref<1x64x8xbf16, #tpu.memory_space<vmem>>, %arg6: memref<1x64x8xf32, #tpu.memory_space<vmem>>, %arg7: memref<10x10x8xf32, #tpu.memory_space<vmem>>) attributes {dimension_semantics = [#tpu.dimension_semantics<parallel>], iteration_bounds = array<i64: 2>, scalar_prefetch = 0 : i64, scratch_operands = 1 : i64, tpu.core_type = #tpu.core_type<tc>, window_params = [{transform_indices = @transform_0, window_bounds = array<i64: 1, 64, 8>}, {pipeline_mode = #tpu.pipeline_mode<synchronous>, transform_indices = @transform_1, window_bounds = array<i64: 1, 8>}, {pipeline_mode = #tpu.pipeline_mode<synchronous>, transform_indices = @transform_2, window_bounds = array<i64: 1, 8>}, {pipeline_mode = #tpu.pipeline_mode<synchronous>, transform_indices = @transform_3, window_bounds = array<i64: 9, 8, 8>}, {transform_indices = @transform_4, window_bounds = array<i64: 1, 64, 8>}, {transform_indices = @transform_5, window_bounds = array<i64: 1, 64, 8>}]} {
    %c0 = arith.constant 0 : index
    %c0_0 = arith.constant 0 : index
    %c0_1 = arith.constant 0 : index
    %0 = vector.load %arg1[%c0, %c0_0, %c0_1] : memref<1x64x8xbf16, #tpu.memory_space<vmem>>, vector<1x64x8xbf16>
    %1 = vector.shape_cast %0 : vector<1x64x8xbf16> to vector<64x8xbf16>
    %2 = arith.extf %1 : vector<64x8xbf16> to vector<64x8xf32>
    %c0_2 = arith.constant 0 : index
    %c0_3 = arith.constant 0 : index
    %3 = vector.load %arg2[%c0_2, %c0_3] : memref<1x8xf32, #tpu.memory_space<vmem>>, vector<1x8xf32>
    %4 = vector.broadcast %3 : vector<1x8xf32> to vector<64x8xf32>
    %5 = arith.mulf %2, %4 : vector<64x8xf32>
    %c0_4 = arith.constant 0 : index
    %c0_5 = arith.constant 0 : index
    %6 = vector.load %arg3[%c0_4, %c0_5] : memref<1x8xf32, #tpu.memory_space<vmem>>, vector<1x8xf32>
    %7 = vector.broadcast %6 : vector<1x8xf32> to vector<64x8xf32>
    %8 = arith.addf %5, %7 : vector<64x8xf32>
    %cst = arith.constant 0.000000e+00 : f32
    %9 = vector.broadcast %cst : f32 to vector<64x8xf32>
    %10 = arith.maximumf %8, %9 : vector<64x8xf32>
    %cst_6 = arith.constant 0.000000e+00 : f32
    %11 = vector.broadcast %cst_6 : f32 to vector<1x10x8xf32>
    %12 = vector.shape_cast %10 : vector<64x8xf32> to vector<8x8x8xf32>
    %cst_7 = arith.constant 0.000000e+00 : f32
    %13 = vector.broadcast %cst_7 : f32 to vector<10x1x8xf32>
    %c0_8 = arith.constant 0 : index
    %c0_9 = arith.constant 0 : index
    %c0_10 = arith.constant 0 : index
    %14 = vector.load %arg7[%c0_8, %c0_9, %c0_10] : memref<10x10x8xf32, #tpu.memory_space<vmem>>, vector<1x10x8xf32>
    tpu.vector_store %arg7[%c0_8, %c0_9, %c0_10], %11 {strides = array<i32>} : memref<10x10x8xf32, #tpu.memory_space<vmem>>, vector<1x10x8xf32>,
    %c9 = arith.constant 9 : index
    %c0_11 = arith.constant 0 : index
    %c0_12 = arith.constant 0 : index
    %15 = vector.load %arg7[%c9, %c0_11, %c0_12] : memref<10x10x8xf32, #tpu.memory_space<vmem>>, vector<1x10x8xf32>
    tpu.vector_store %arg7[%c9, %c0_11, %c0_12], %11 {strides = array<i32>} : memref<10x10x8xf32, #tpu.memory_space<vmem>>, vector<1x10x8xf32>,
    %c0_13 = arith.constant 0 : index
    %c0_14 = arith.constant 0 : index
    %c0_15 = arith.constant 0 : index
    %16 = vector.load %arg7[%c0_13, %c0_14, %c0_15] : memref<10x10x8xf32, #tpu.memory_space<vmem>>, vector<10x1x8xf32>
    tpu.vector_store %arg7[%c0_13, %c0_14, %c0_15], %13 {strides = array<i32>} : memref<10x10x8xf32, #tpu.memory_space<vmem>>, vector<10x1x8xf32>,
    %c0_16 = arith.constant 0 : index
    %c9_17 = arith.constant 9 : index
    %c0_18 = arith.constant 0 : index
    %17 = vector.load %arg7[%c0_16, %c9_17, %c0_18] : memref<10x10x8xf32, #tpu.memory_space<vmem>>, vector<10x1x8xf32>
    tpu.vector_store %arg7[%c0_16, %c9_17, %c0_18], %13 {strides = array<i32>} : memref<10x10x8xf32, #tpu.memory_space<vmem>>, vector<10x1x8xf32>,
    %c1 = arith.constant 1 : index
    %c1_19 = arith.constant 1 : index
    %c0_20 = arith.constant 0 : index
    %18 = vector.load %arg7[%c1, %c1_19, %c0_20] : memref<10x10x8xf32, #tpu.memory_space<vmem>>, vector<8x8x8xf32>
    tpu.vector_store %arg7[%c1, %c1_19, %c0_20], %12 {strides = array<i32>} : memref<10x10x8xf32, #tpu.memory_space<vmem>>, vector<8x8x8xf32>,
    %c0_21 = arith.constant 0 : index
    %c0_22 = arith.constant 0 : index
    %c0_23 = arith.constant 0 : index
    %19 = vector.load %arg7[%c0_21, %c0_22, %c0_23] : memref<10x10x8xf32, #tpu.memory_space<vmem>>, vector<8x8x8xf32>
    %20 = vector.shape_cast %19 : vector<8x8x8xf32> to vector<64x8xf32>
    %21 = arith.truncf %20 : vector<64x8xf32> to vector<64x8xbf16>
    %c0_24 = arith.constant 0 : index
    %c0_25 = arith.constant 0 : index
    %c0_26 = arith.constant 0 : index
    %22 = vector.load %arg4[%c0_24, %c0_25, %c0_26] : memref<9x8x8xbf16, #tpu.memory_space<vmem>>, vector<1x8x8xbf16>
    %23 = vector.shape_cast %22 : vector<1x8x8xbf16> to vector<8x8xbf16>
    %cst_27 = arith.constant dense<0.000000e+00> : vector<64x8xf32>
    %24 = tpu.matmul %21, %23, %cst_27 {dimension_numbers = #tpu.dot_dimension_numbers<[1], [0], [0], [1], [0, 0, 1, 1], [], []>} : vector<64x8xbf16>, vector<8x8xbf16>, vector<64x8xf32> -> vector<64x8xf32>
    %c0_28 = arith.constant 0 : index
    %c1_29 = arith.constant 1 : index
    %c0_30 = arith.constant 0 : index
    %25 = vector.load %arg7[%c0_28, %c1_29, %c0_30] : memref<10x10x8xf32, #tpu.memory_space<vmem>>, vector<8x8x8xf32>
    %26 = vector.shape_cast %25 : vector<8x8x8xf32> to vector<64x8xf32>
    %27 = arith.truncf %26 : vector<64x8xf32> to vector<64x8xbf16>
    %c1_31 = arith.constant 1 : index
    %c0_32 = arith.constant 0 : index
    %c0_33 = arith.constant 0 : index
    %28 = vector.load %arg4[%c1_31, %c0_32, %c0_33] : memref<9x8x8xbf16, #tpu.memory_space<vmem>>, vector<1x8x8xbf16>
    %29 = vector.shape_cast %28 : vector<1x8x8xbf16> to vector<8x8xbf16>
    %cst_34 = arith.constant dense<0.000000e+00> : vector<64x8xf32>
    %30 = tpu.matmul %27, %29, %cst_34 {dimension_numbers = #tpu.dot_dimension_numbers<[1], [0], [0], [1], [0, 0, 1, 1], [], []>} : vector<64x8xbf16>, vector<8x8xbf16>, vector<64x8xf32> -> vector<64x8xf32>
    %31 = arith.addf %24, %30 : vector<64x8xf32>
    %c0_35 = arith.constant 0 : index
    %c2 = arith.constant 2 : index
    %c0_36 = arith.constant 0 : index
    %32 = vector.load %arg7[%c0_35, %c2, %c0_36] : memref<10x10x8xf32, #tpu.memory_space<vmem>>, vector<8x8x8xf32>
    %33 = vector.shape_cast %32 : vector<8x8x8xf32> to vector<64x8xf32>
    %34 = arith.truncf %33 : vector<64x8xf32> to vector<64x8xbf16>
    %c2_37 = arith.constant 2 : index
    %c0_38 = arith.constant 0 : index
    %c0_39 = arith.constant 0 : index
    %35 = vector.load %arg4[%c2_37, %c0_38, %c0_39] : memref<9x8x8xbf16, #tpu.memory_space<vmem>>, vector<1x8x8xbf16>
    %36 = vector.shape_cast %35 : vector<1x8x8xbf16> to vector<8x8xbf16>
    %cst_40 = arith.constant dense<0.000000e+00> : vector<64x8xf32>
    %37 = tpu.matmul %34, %36, %cst_40 {dimension_numbers = #tpu.dot_dimension_numbers<[1], [0], [0], [1], [0, 0, 1, 1], [], []>} : vector<64x8xbf16>, vector<8x8xbf16>, vector<64x8xf32> -> vector<64x8xf32>
    %38 = arith.addf %31, %37 : vector<64x8xf32>
    %c1_41 = arith.constant 1 : index
    %c0_42 = arith.constant 0 : index
    %c0_43 = arith.constant 0 : index
    %39 = vector.load %arg7[%c1_41, %c0_42, %c0_43] : memref<10x10x8xf32, #tpu.memory_space<vmem>>, vector<8x8x8xf32>
    %40 = vector.shape_cast %39 : vector<8x8x8xf32> to vector<64x8xf32>
    %41 = arith.truncf %40 : vector<64x8xf32> to vector<64x8xbf16>
    %c3 = arith.constant 3 : index
    %c0_44 = arith.constant 0 : index
    %c0_45 = arith.constant 0 : index
    %42 = vector.load %arg4[%c3, %c0_44, %c0_45] : memref<9x8x8xbf16, #tpu.memory_space<vmem>>, vector<1x8x8xbf16>
    %43 = vector.shape_cast %42 : vector<1x8x8xbf16> to vector<8x8xbf16>
    %cst_46 = arith.constant dense<0.000000e+00> : vector<64x8xf32>
    %44 = tpu.matmul %41, %43, %cst_46 {dimension_numbers = #tpu.dot_dimension_numbers<[1], [0], [0], [1], [0, 0, 1, 1], [], []>} : vector<64x8xbf16>, vector<8x8xbf16>, vector<64x8xf32> -> vector<64x8xf32>
    %45 = arith.addf %38, %44 : vector<64x8xf32>
    %c1_47 = arith.constant 1 : index
    %c1_48 = arith.constant 1 : index
    %c0_49 = arith.constant 0 : index
    %46 = vector.load %arg7[%c1_47, %c1_48, %c0_49] : memref<10x10x8xf32, #tpu.memory_space<vmem>>, vector<8x8x8xf32>
    %47 = vector.shape_cast %46 : vector<8x8x8xf32> to vector<64x8xf32>
    %48 = arith.truncf %47 : vector<64x8xf32> to vector<64x8xbf16>
    %c4 = arith.constant 4 : index
    %c0_50 = arith.constant 0 : index
    %c0_51 = arith.constant 0 : index
    %49 = vector.load %arg4[%c4, %c0_50, %c0_51] : memref<9x8x8xbf16, #tpu.memory_space<vmem>>, vector<1x8x8xbf16>
    %50 = vector.shape_cast %49 : vector<1x8x8xbf16> to vector<8x8xbf16>
    %cst_52 = arith.constant dense<0.000000e+00> : vector<64x8xf32>
    %51 = tpu.matmul %48, %50, %cst_52 {dimension_numbers = #tpu.dot_dimension_numbers<[1], [0], [0], [1], [0, 0, 1, 1], [], []>} : vector<64x8xbf16>, vector<8x8xbf16>, vector<64x8xf32> -> vector<64x8xf32>
    %52 = arith.addf %45, %51 : vector<64x8xf32>
    %c1_53 = arith.constant 1 : index
    %c2_54 = arith.constant 2 : index
    %c0_55 = arith.constant 0 : index
    %53 = vector.load %arg7[%c1_53, %c2_54, %c0_55] : memref<10x10x8xf32, #tpu.memory_space<vmem>>, vector<8x8x8xf32>
    %54 = vector.shape_cast %53 : vector<8x8x8xf32> to vector<64x8xf32>
    %55 = arith.truncf %54 : vector<64x8xf32> to vector<64x8xbf16>
    %c5 = arith.constant 5 : index
    %c0_56 = arith.constant 0 : index
    %c0_57 = arith.constant 0 : index
    %56 = vector.load %arg4[%c5, %c0_56, %c0_57] : memref<9x8x8xbf16, #tpu.memory_space<vmem>>, vector<1x8x8xbf16>
    %57 = vector.shape_cast %56 : vector<1x8x8xbf16> to vector<8x8xbf16>
    %cst_58 = arith.constant dense<0.000000e+00> : vector<64x8xf32>
    %58 = tpu.matmul %55, %57, %cst_58 {dimension_numbers = #tpu.dot_dimension_numbers<[1], [0], [0], [1], [0, 0, 1, 1], [], []>} : vector<64x8xbf16>, vector<8x8xbf16>, vector<64x8xf32> -> vector<64x8xf32>
    %59 = arith.addf %52, %58 : vector<64x8xf32>
    %c2_59 = arith.constant 2 : index
    %c0_60 = arith.constant 0 : index
    %c0_61 = arith.constant 0 : index
    %60 = vector.load %arg7[%c2_59, %c0_60, %c0_61] : memref<10x10x8xf32, #tpu.memory_space<vmem>>, vector<8x8x8xf32>
    %61 = vector.shape_cast %60 : vector<8x8x8xf32> to vector<64x8xf32>
    %62 = arith.truncf %61 : vector<64x8xf32> to vector<64x8xbf16>
    %c6 = arith.constant 6 : index
    %c0_62 = arith.constant 0 : index
    %c0_63 = arith.constant 0 : index
    %63 = vector.load %arg4[%c6, %c0_62, %c0_63] : memref<9x8x8xbf16, #tpu.memory_space<vmem>>, vector<1x8x8xbf16>
    %64 = vector.shape_cast %63 : vector<1x8x8xbf16> to vector<8x8xbf16>
    %cst_64 = arith.constant dense<0.000000e+00> : vector<64x8xf32>
    %65 = tpu.matmul %62, %64, %cst_64 {dimension_numbers = #tpu.dot_dimension_numbers<[1], [0], [0], [1], [0, 0, 1, 1], [], []>} : vector<64x8xbf16>, vector<8x8xbf16>, vector<64x8xf32> -> vector<64x8xf32>
    %66 = arith.addf %59, %65 : vector<64x8xf32>
    %c2_65 = arith.constant 2 : index
    %c1_66 = arith.constant 1 : index
    %c0_67 = arith.constant 0 : index
    %67 = vector.load %arg7[%c2_65, %c1_66, %c0_67] : memref<10x10x8xf32, #tpu.memory_space<vmem>>, vector<8x8x8xf32>
    %68 = vector.shape_cast %67 : vector<8x8x8xf32> to vector<64x8xf32>
    %69 = arith.truncf %68 : vector<64x8xf32> to vector<64x8xbf16>
    %c7 = arith.constant 7 : index
    %c0_68 = arith.constant 0 : index
    %c0_69 = arith.constant 0 : index
    %70 = vector.load %arg4[%c7, %c0_68, %c0_69] : memref<9x8x8xbf16, #tpu.memory_space<vmem>>, vector<1x8x8xbf16>
    %71 = vector.shape_cast %70 : vector<1x8x8xbf16> to vector<8x8xbf16>
    %cst_70 = arith.constant dense<0.000000e+00> : vector<64x8xf32>
    %72 = tpu.matmul %69, %71, %cst_70 {dimension_numbers = #tpu.dot_dimension_numbers<[1], [0], [0], [1], [0, 0, 1, 1], [], []>} : vector<64x8xbf16>, vector<8x8xbf16>, vector<64x8xf32> -> vector<64x8xf32>
    %73 = arith.addf %66, %72 : vector<64x8xf32>
    %c2_71 = arith.constant 2 : index
    %c2_72 = arith.constant 2 : index
    %c0_73 = arith.constant 0 : index
    %74 = vector.load %arg7[%c2_71, %c2_72, %c0_73] : memref<10x10x8xf32, #tpu.memory_space<vmem>>, vector<8x8x8xf32>
    %75 = vector.shape_cast %74 : vector<8x8x8xf32> to vector<64x8xf32>
    %76 = arith.truncf %75 : vector<64x8xf32> to vector<64x8xbf16>
    %c8 = arith.constant 8 : index
    %c0_74 = arith.constant 0 : index
    %c0_75 = arith.constant 0 : index
    %77 = vector.load %arg4[%c8, %c0_74, %c0_75] : memref<9x8x8xbf16, #tpu.memory_space<vmem>>, vector<1x8x8xbf16>
    %78 = vector.shape_cast %77 : vector<1x8x8xbf16> to vector<8x8xbf16>
    %cst_76 = arith.constant dense<0.000000e+00> : vector<64x8xf32>
    %79 = tpu.matmul %76, %78, %cst_76 {dimension_numbers = #tpu.dot_dimension_numbers<[1], [0], [0], [1], [0, 0, 1, 1], [], []>} : vector<64x8xbf16>, vector<8x8xbf16>, vector<64x8xf32> -> vector<64x8xf32>
    %80 = arith.addf %73, %79 : vector<64x8xf32>
    %c0_77 = arith.constant 0 : index
    %c0_78 = arith.constant 0 : index
    %c0_79 = arith.constant 0 : index
    %81 = vector.load %arg5[%c0_77, %c0_78, %c0_79] : memref<1x64x8xbf16, #tpu.memory_space<vmem>>, vector<1x64x8xbf16>
    %82 = vector.shape_cast %81 : vector<1x64x8xbf16> to vector<64x8xbf16>
    %83 = arith.extf %82 : vector<64x8xbf16> to vector<64x8xf32>
    %84 = arith.addf %80, %83 : vector<64x8xf32>
    %c0_80 = arith.constant 0 : index
    %c0_81 = arith.constant 0 : index
    %c0_82 = arith.constant 0 : index
    %85 = vector.load %arg6[%c0_80, %c0_81, %c0_82] : memref<1x64x8xf32, #tpu.memory_space<vmem>>, vector<1x64x8xf32>
    %86 = vector.shape_cast %85 : vector<1x64x8xf32> to vector<64x8xf32>
    %87 = vector.shape_cast %84 : vector<64x8xf32> to vector<1x64x8xf32>
    tpu.vector_store %arg6[%c0_80, %c0_81, %c0_82], %87 {strides = array<i32>} : memref<1x64x8xf32, #tpu.memory_space<vmem>>, vector<1x64x8xf32>,
    return
  }
  func.func @transform_0(%arg0: i32) -> (i32, i32, i32) {
    %c0_i32 = arith.constant 0 : i32
    %c0_i32_0 = arith.constant 0 : i32
    %c0_i32_1 = arith.constant 0 : i32
    return %arg0, %c0_i32, %c0_i32_0 : i32, i32, i32
  }
  func.func @transform_1(%arg0: i32) -> (i32, i32) {
    %c0_i32 = arith.constant 0 : i32
    %c0_i32_0 = arith.constant 0 : i32
    %c0_i32_1 = arith.constant 0 : i32
    return %c0_i32, %c0_i32_0 : i32, i32
  }
  func.func @transform_2(%arg0: i32) -> (i32, i32) {
    %c0_i32 = arith.constant 0 : i32
    %c0_i32_0 = arith.constant 0 : i32
    %c0_i32_1 = arith.constant 0 : i32
    return %c0_i32, %c0_i32_0 : i32, i32
  }
  func.func @transform_3(%arg0: i32) -> (i32, i32, i32) {
    %c0_i32 = arith.constant 0 : i32
    %c0_i32_0 = arith.constant 0 : i32
    %c0_i32_1 = arith.constant 0 : i32
    %c0_i32_2 = arith.constant 0 : i32
    return %c0_i32, %c0_i32_0, %c0_i32_1 : i32, i32, i32
  }
  func.func @transform_4(%arg0: i32) -> (i32, i32, i32) {
    %c0_i32 = arith.constant 0 : i32
    %c0_i32_0 = arith.constant 0 : i32
    %c0_i32_1 = arith.constant 0 : i32
    return %arg0, %c0_i32, %c0_i32_0 : i32, i32, i32
  }
  func.func @transform_5(%arg0: i32) -> (i32, i32, i32) {
    %c0_i32 = arith.constant 0 : i32
    %c0_i32_0 = arith.constant 0 : i32
    %c0_i32_1 = arith.constant 0 : i32
    return %arg0, %c0_i32, %c0_i32_0 : i32, i32, i32
  }
}

module attributes {stable_mosaic.version = 11 : i64} {
  func.func @kernel(%arg0: i32, %arg1: memref<1x64x8xbf16, #tpu.memory_space<vmem>>, %arg2: memref<1x8xf32, #tpu.memory_space<vmem>>, %arg3: memref<1x8xf32, #tpu.memory_space<vmem>>, %arg4: memref<9x8x8xbf16, #tpu.memory_space<vmem>>, %arg5: memref<1x64x8xbf16, #tpu.memory_space<vmem>>, %arg6: memref<1x64x8xbf16, #tpu.memory_space<vmem>>, %arg7: memref<1x2x8xf32, #tpu.memory_space<vmem>>, %arg8: memref<10x10x8xf32, #tpu.memory_space<vmem>>) attributes {dimension_semantics = [#tpu.dimension_semantics<parallel>], iteration_bounds = array<i64: 2>, scalar_prefetch = 0 : i64, scratch_operands = 1 : i64, tpu.core_type = #tpu.core_type<tc>, window_params = [{transform_indices = @transform_0, window_bounds = array<i64: 1, 64, 8>}, {pipeline_mode = #tpu.pipeline_mode<synchronous>, transform_indices = @transform_1, window_bounds = array<i64: 1, 8>}, {pipeline_mode = #tpu.pipeline_mode<synchronous>, transform_indices = @transform_2, window_bounds = array<i64: 1, 8>}, {pipeline_mode = #tpu.pipeline_mode<synchronous>, transform_indices = @transform_3, window_bounds = array<i64: 9, 8, 8>}, {transform_indices = @transform_4, window_bounds = array<i64: 1, 64, 8>}, {transform_indices = @transform_5, window_bounds = array<i64: 1, 64, 8>}, {transform_indices = @transform_6, window_bounds = array<i64: 1, 2, 8>}]} {
    %c0 = arith.constant 0 : index
    %c0_0 = arith.constant 0 : index
    %c0_1 = arith.constant 0 : index
    %0 = vector.load %arg1[%c0, %c0_0, %c0_1] : memref<1x64x8xbf16, #tpu.memory_space<vmem>>, vector<1x64x8xbf16>
    %1 = vector.shape_cast %0 : vector<1x64x8xbf16> to vector<64x8xbf16>
    %2 = arith.extf %1 : vector<64x8xbf16> to vector<64x8xf32>
    %c0_2 = arith.constant 0 : index
    %c0_3 = arith.constant 0 : index
    %3 = vector.load %arg2[%c0_2, %c0_3] : memref<1x8xf32, #tpu.memory_space<vmem>>, vector<1x8xf32>
    %4 = vector.broadcast %3 : vector<1x8xf32> to vector<64x8xf32>
    %5 = arith.mulf %2, %4 : vector<64x8xf32>
    %c0_4 = arith.constant 0 : index
    %c0_5 = arith.constant 0 : index
    %6 = vector.load %arg3[%c0_4, %c0_5] : memref<1x8xf32, #tpu.memory_space<vmem>>, vector<1x8xf32>
    %7 = vector.broadcast %6 : vector<1x8xf32> to vector<64x8xf32>
    %8 = arith.addf %5, %7 : vector<64x8xf32>
    %cst = arith.constant 0.000000e+00 : f32
    %9 = vector.broadcast %cst : f32 to vector<64x8xf32>
    %10 = arith.maximumf %8, %9 : vector<64x8xf32>
    %cst_6 = arith.constant 0.000000e+00 : f32
    %11 = vector.broadcast %cst_6 : f32 to vector<1x10x8xf32>
    %12 = vector.shape_cast %10 : vector<64x8xf32> to vector<8x8x8xf32>
    %cst_7 = arith.constant 0.000000e+00 : f32
    %13 = vector.broadcast %cst_7 : f32 to vector<10x1x8xf32>
    %c0_8 = arith.constant 0 : index
    %c0_9 = arith.constant 0 : index
    %c0_10 = arith.constant 0 : index
    %14 = vector.load %arg8[%c0_8, %c0_9, %c0_10] : memref<10x10x8xf32, #tpu.memory_space<vmem>>, vector<1x10x8xf32>
    tpu.vector_store %arg8[%c0_8, %c0_9, %c0_10], %11 {strides = array<i32>} : memref<10x10x8xf32, #tpu.memory_space<vmem>>, vector<1x10x8xf32>,
    %c9 = arith.constant 9 : index
    %c0_11 = arith.constant 0 : index
    %c0_12 = arith.constant 0 : index
    %15 = vector.load %arg8[%c9, %c0_11, %c0_12] : memref<10x10x8xf32, #tpu.memory_space<vmem>>, vector<1x10x8xf32>
    tpu.vector_store %arg8[%c9, %c0_11, %c0_12], %11 {strides = array<i32>} : memref<10x10x8xf32, #tpu.memory_space<vmem>>, vector<1x10x8xf32>,
    %c0_13 = arith.constant 0 : index
    %c0_14 = arith.constant 0 : index
    %c0_15 = arith.constant 0 : index
    %16 = vector.load %arg8[%c0_13, %c0_14, %c0_15] : memref<10x10x8xf32, #tpu.memory_space<vmem>>, vector<10x1x8xf32>
    tpu.vector_store %arg8[%c0_13, %c0_14, %c0_15], %13 {strides = array<i32>} : memref<10x10x8xf32, #tpu.memory_space<vmem>>, vector<10x1x8xf32>,
    %c0_16 = arith.constant 0 : index
    %c9_17 = arith.constant 9 : index
    %c0_18 = arith.constant 0 : index
    %17 = vector.load %arg8[%c0_16, %c9_17, %c0_18] : memref<10x10x8xf32, #tpu.memory_space<vmem>>, vector<10x1x8xf32>
    tpu.vector_store %arg8[%c0_16, %c9_17, %c0_18], %13 {strides = array<i32>} : memref<10x10x8xf32, #tpu.memory_space<vmem>>, vector<10x1x8xf32>,
    %c1 = arith.constant 1 : index
    %c1_19 = arith.constant 1 : index
    %c0_20 = arith.constant 0 : index
    %18 = vector.load %arg8[%c1, %c1_19, %c0_20] : memref<10x10x8xf32, #tpu.memory_space<vmem>>, vector<8x8x8xf32>
    tpu.vector_store %arg8[%c1, %c1_19, %c0_20], %12 {strides = array<i32>} : memref<10x10x8xf32, #tpu.memory_space<vmem>>, vector<8x8x8xf32>,
    %cst_21 = arith.constant 0.000000e+00 : f32
    %19 = vector.broadcast %cst_21 : f32 to vector<1x8xf32>
    %cst_22 = arith.constant 0.000000e+00 : f32
    %20 = vector.broadcast %cst_22 : f32 to vector<1x8xf32>
    %c0_23 = arith.constant 0 : index
    %c0_24 = arith.constant 0 : index
    %c0_25 = arith.constant 0 : index
    %21 = vector.load %arg8[%c0_23, %c0_24, %c0_25] : memref<10x10x8xf32, #tpu.memory_space<vmem>>, vector<8x8x8xf32>
    %22 = vector.shape_cast %21 : vector<8x8x8xf32> to vector<64x8xf32>
    %23 = arith.truncf %22 : vector<64x8xf32> to vector<64x8xbf16>
    %c0_26 = arith.constant 0 : index
    %c0_27 = arith.constant 0 : index
    %c0_28 = arith.constant 0 : index
    %24 = vector.load %arg4[%c0_26, %c0_27, %c0_28] : memref<9x8x8xbf16, #tpu.memory_space<vmem>>, vector<1x8x8xbf16>
    %25 = vector.shape_cast %24 : vector<1x8x8xbf16> to vector<8x8xbf16>
    %cst_29 = arith.constant dense<0.000000e+00> : vector<64x8xf32>
    %26 = tpu.matmul %23, %25, %cst_29 {dimension_numbers = #tpu.dot_dimension_numbers<[1], [0], [0], [1], [0, 0, 1, 1], [], []>} : vector<64x8xbf16>, vector<8x8xbf16>, vector<64x8xf32> -> vector<64x8xf32>
    %c0_30 = arith.constant 0 : index
    %c1_31 = arith.constant 1 : index
    %c0_32 = arith.constant 0 : index
    %27 = vector.load %arg8[%c0_30, %c1_31, %c0_32] : memref<10x10x8xf32, #tpu.memory_space<vmem>>, vector<8x8x8xf32>
    %28 = vector.shape_cast %27 : vector<8x8x8xf32> to vector<64x8xf32>
    %29 = arith.truncf %28 : vector<64x8xf32> to vector<64x8xbf16>
    %c1_33 = arith.constant 1 : index
    %c0_34 = arith.constant 0 : index
    %c0_35 = arith.constant 0 : index
    %30 = vector.load %arg4[%c1_33, %c0_34, %c0_35] : memref<9x8x8xbf16, #tpu.memory_space<vmem>>, vector<1x8x8xbf16>
    %31 = vector.shape_cast %30 : vector<1x8x8xbf16> to vector<8x8xbf16>
    %cst_36 = arith.constant dense<0.000000e+00> : vector<64x8xf32>
    %32 = tpu.matmul %29, %31, %cst_36 {dimension_numbers = #tpu.dot_dimension_numbers<[1], [0], [0], [1], [0, 0, 1, 1], [], []>} : vector<64x8xbf16>, vector<8x8xbf16>, vector<64x8xf32> -> vector<64x8xf32>
    %33 = arith.addf %26, %32 : vector<64x8xf32>
    %c0_37 = arith.constant 0 : index
    %c2 = arith.constant 2 : index
    %c0_38 = arith.constant 0 : index
    %34 = vector.load %arg8[%c0_37, %c2, %c0_38] : memref<10x10x8xf32, #tpu.memory_space<vmem>>, vector<8x8x8xf32>
    %35 = vector.shape_cast %34 : vector<8x8x8xf32> to vector<64x8xf32>
    %36 = arith.truncf %35 : vector<64x8xf32> to vector<64x8xbf16>
    %c2_39 = arith.constant 2 : index
    %c0_40 = arith.constant 0 : index
    %c0_41 = arith.constant 0 : index
    %37 = vector.load %arg4[%c2_39, %c0_40, %c0_41] : memref<9x8x8xbf16, #tpu.memory_space<vmem>>, vector<1x8x8xbf16>
    %38 = vector.shape_cast %37 : vector<1x8x8xbf16> to vector<8x8xbf16>
    %cst_42 = arith.constant dense<0.000000e+00> : vector<64x8xf32>
    %39 = tpu.matmul %36, %38, %cst_42 {dimension_numbers = #tpu.dot_dimension_numbers<[1], [0], [0], [1], [0, 0, 1, 1], [], []>} : vector<64x8xbf16>, vector<8x8xbf16>, vector<64x8xf32> -> vector<64x8xf32>
    %40 = arith.addf %33, %39 : vector<64x8xf32>
    %c1_43 = arith.constant 1 : index
    %c0_44 = arith.constant 0 : index
    %c0_45 = arith.constant 0 : index
    %41 = vector.load %arg8[%c1_43, %c0_44, %c0_45] : memref<10x10x8xf32, #tpu.memory_space<vmem>>, vector<8x8x8xf32>
    %42 = vector.shape_cast %41 : vector<8x8x8xf32> to vector<64x8xf32>
    %43 = arith.truncf %42 : vector<64x8xf32> to vector<64x8xbf16>
    %c3 = arith.constant 3 : index
    %c0_46 = arith.constant 0 : index
    %c0_47 = arith.constant 0 : index
    %44 = vector.load %arg4[%c3, %c0_46, %c0_47] : memref<9x8x8xbf16, #tpu.memory_space<vmem>>, vector<1x8x8xbf16>
    %45 = vector.shape_cast %44 : vector<1x8x8xbf16> to vector<8x8xbf16>
    %cst_48 = arith.constant dense<0.000000e+00> : vector<64x8xf32>
    %46 = tpu.matmul %43, %45, %cst_48 {dimension_numbers = #tpu.dot_dimension_numbers<[1], [0], [0], [1], [0, 0, 1, 1], [], []>} : vector<64x8xbf16>, vector<8x8xbf16>, vector<64x8xf32> -> vector<64x8xf32>
    %47 = arith.addf %40, %46 : vector<64x8xf32>
    %c1_49 = arith.constant 1 : index
    %c1_50 = arith.constant 1 : index
    %c0_51 = arith.constant 0 : index
    %48 = vector.load %arg8[%c1_49, %c1_50, %c0_51] : memref<10x10x8xf32, #tpu.memory_space<vmem>>, vector<8x8x8xf32>
    %49 = vector.shape_cast %48 : vector<8x8x8xf32> to vector<64x8xf32>
    %50 = arith.truncf %49 : vector<64x8xf32> to vector<64x8xbf16>
    %c4 = arith.constant 4 : index
    %c0_52 = arith.constant 0 : index
    %c0_53 = arith.constant 0 : index
    %51 = vector.load %arg4[%c4, %c0_52, %c0_53] : memref<9x8x8xbf16, #tpu.memory_space<vmem>>, vector<1x8x8xbf16>
    %52 = vector.shape_cast %51 : vector<1x8x8xbf16> to vector<8x8xbf16>
    %cst_54 = arith.constant dense<0.000000e+00> : vector<64x8xf32>
    %53 = tpu.matmul %50, %52, %cst_54 {dimension_numbers = #tpu.dot_dimension_numbers<[1], [0], [0], [1], [0, 0, 1, 1], [], []>} : vector<64x8xbf16>, vector<8x8xbf16>, vector<64x8xf32> -> vector<64x8xf32>
    %54 = arith.addf %47, %53 : vector<64x8xf32>
    %c1_55 = arith.constant 1 : index
    %c2_56 = arith.constant 2 : index
    %c0_57 = arith.constant 0 : index
    %55 = vector.load %arg8[%c1_55, %c2_56, %c0_57] : memref<10x10x8xf32, #tpu.memory_space<vmem>>, vector<8x8x8xf32>
    %56 = vector.shape_cast %55 : vector<8x8x8xf32> to vector<64x8xf32>
    %57 = arith.truncf %56 : vector<64x8xf32> to vector<64x8xbf16>
    %c5 = arith.constant 5 : index
    %c0_58 = arith.constant 0 : index
    %c0_59 = arith.constant 0 : index
    %58 = vector.load %arg4[%c5, %c0_58, %c0_59] : memref<9x8x8xbf16, #tpu.memory_space<vmem>>, vector<1x8x8xbf16>
    %59 = vector.shape_cast %58 : vector<1x8x8xbf16> to vector<8x8xbf16>
    %cst_60 = arith.constant dense<0.000000e+00> : vector<64x8xf32>
    %60 = tpu.matmul %57, %59, %cst_60 {dimension_numbers = #tpu.dot_dimension_numbers<[1], [0], [0], [1], [0, 0, 1, 1], [], []>} : vector<64x8xbf16>, vector<8x8xbf16>, vector<64x8xf32> -> vector<64x8xf32>
    %61 = arith.addf %54, %60 : vector<64x8xf32>
    %c2_61 = arith.constant 2 : index
    %c0_62 = arith.constant 0 : index
    %c0_63 = arith.constant 0 : index
    %62 = vector.load %arg8[%c2_61, %c0_62, %c0_63] : memref<10x10x8xf32, #tpu.memory_space<vmem>>, vector<8x8x8xf32>
    %63 = vector.shape_cast %62 : vector<8x8x8xf32> to vector<64x8xf32>
    %64 = arith.truncf %63 : vector<64x8xf32> to vector<64x8xbf16>
    %c6 = arith.constant 6 : index
    %c0_64 = arith.constant 0 : index
    %c0_65 = arith.constant 0 : index
    %65 = vector.load %arg4[%c6, %c0_64, %c0_65] : memref<9x8x8xbf16, #tpu.memory_space<vmem>>, vector<1x8x8xbf16>
    %66 = vector.shape_cast %65 : vector<1x8x8xbf16> to vector<8x8xbf16>
    %cst_66 = arith.constant dense<0.000000e+00> : vector<64x8xf32>
    %67 = tpu.matmul %64, %66, %cst_66 {dimension_numbers = #tpu.dot_dimension_numbers<[1], [0], [0], [1], [0, 0, 1, 1], [], []>} : vector<64x8xbf16>, vector<8x8xbf16>, vector<64x8xf32> -> vector<64x8xf32>
    %68 = arith.addf %61, %67 : vector<64x8xf32>
    %c2_67 = arith.constant 2 : index
    %c1_68 = arith.constant 1 : index
    %c0_69 = arith.constant 0 : index
    %69 = vector.load %arg8[%c2_67, %c1_68, %c0_69] : memref<10x10x8xf32, #tpu.memory_space<vmem>>, vector<8x8x8xf32>
    %70 = vector.shape_cast %69 : vector<8x8x8xf32> to vector<64x8xf32>
    %71 = arith.truncf %70 : vector<64x8xf32> to vector<64x8xbf16>
    %c7 = arith.constant 7 : index
    %c0_70 = arith.constant 0 : index
    %c0_71 = arith.constant 0 : index
    %72 = vector.load %arg4[%c7, %c0_70, %c0_71] : memref<9x8x8xbf16, #tpu.memory_space<vmem>>, vector<1x8x8xbf16>
    %73 = vector.shape_cast %72 : vector<1x8x8xbf16> to vector<8x8xbf16>
    %cst_72 = arith.constant dense<0.000000e+00> : vector<64x8xf32>
    %74 = tpu.matmul %71, %73, %cst_72 {dimension_numbers = #tpu.dot_dimension_numbers<[1], [0], [0], [1], [0, 0, 1, 1], [], []>} : vector<64x8xbf16>, vector<8x8xbf16>, vector<64x8xf32> -> vector<64x8xf32>
    %75 = arith.addf %68, %74 : vector<64x8xf32>
    %c2_73 = arith.constant 2 : index
    %c2_74 = arith.constant 2 : index
    %c0_75 = arith.constant 0 : index
    %76 = vector.load %arg8[%c2_73, %c2_74, %c0_75] : memref<10x10x8xf32, #tpu.memory_space<vmem>>, vector<8x8x8xf32>
    %77 = vector.shape_cast %76 : vector<8x8x8xf32> to vector<64x8xf32>
    %78 = arith.truncf %77 : vector<64x8xf32> to vector<64x8xbf16>
    %c8 = arith.constant 8 : index
    %c0_76 = arith.constant 0 : index
    %c0_77 = arith.constant 0 : index
    %79 = vector.load %arg4[%c8, %c0_76, %c0_77] : memref<9x8x8xbf16, #tpu.memory_space<vmem>>, vector<1x8x8xbf16>
    %80 = vector.shape_cast %79 : vector<1x8x8xbf16> to vector<8x8xbf16>
    %cst_78 = arith.constant dense<0.000000e+00> : vector<64x8xf32>
    %81 = tpu.matmul %78, %80, %cst_78 {dimension_numbers = #tpu.dot_dimension_numbers<[1], [0], [0], [1], [0, 0, 1, 1], [], []>} : vector<64x8xbf16>, vector<8x8xbf16>, vector<64x8xf32> -> vector<64x8xf32>
    %82 = arith.addf %75, %81 : vector<64x8xf32>
    %c0_79 = arith.constant 0 : index
    %c0_80 = arith.constant 0 : index
    %c0_81 = arith.constant 0 : index
    %83 = vector.load %arg5[%c0_79, %c0_80, %c0_81] : memref<1x64x8xbf16, #tpu.memory_space<vmem>>, vector<1x64x8xbf16>
    %84 = vector.shape_cast %83 : vector<1x64x8xbf16> to vector<64x8xbf16>
    %85 = arith.extf %84 : vector<64x8xbf16> to vector<64x8xf32>
    %86 = arith.addf %82, %85 : vector<64x8xf32>
    %87 = arith.truncf %86 : vector<64x8xf32> to vector<64x8xbf16>
    %c0_82 = arith.constant 0 : index
    %c0_83 = arith.constant 0 : index
    %c0_84 = arith.constant 0 : index
    %88 = vector.load %arg6[%c0_82, %c0_83, %c0_84] : memref<1x64x8xbf16, #tpu.memory_space<vmem>>, vector<1x64x8xbf16>
    %89 = vector.shape_cast %88 : vector<1x64x8xbf16> to vector<64x8xbf16>
    %90 = vector.shape_cast %87 : vector<64x8xbf16> to vector<1x64x8xbf16>
    tpu.vector_store %arg6[%c0_82, %c0_83, %c0_84], %90 {strides = array<i32>} : memref<1x64x8xbf16, #tpu.memory_space<vmem>>, vector<1x64x8xbf16>,
    %cst_85 = arith.constant dense<0.000000e+00> : vector<8xf32>
    %91 = vector.multi_reduction <add>, %86, %cst_85 [0] : vector<64x8xf32> to vector<8xf32>
    %92 = vector.shape_cast %91 : vector<8xf32> to vector<1x8xf32>
    %93 = arith.addf %19, %92 : vector<1x8xf32>
    %94 = arith.mulf %86, %86 : vector<64x8xf32>
    %cst_86 = arith.constant dense<0.000000e+00> : vector<8xf32>
    %95 = vector.multi_reduction <add>, %94, %cst_86 [0] : vector<64x8xf32> to vector<8xf32>
    %96 = vector.shape_cast %95 : vector<8xf32> to vector<1x8xf32>
    %97 = arith.addf %20, %96 : vector<1x8xf32>
    %c0_87 = arith.constant 0 : index
    %c0_88 = arith.constant 0 : index
    %c0_89 = arith.constant 0 : index
    %98 = vector.load %arg7[%c0_87, %c0_88, %c0_89] : memref<1x2x8xf32, #tpu.memory_space<vmem>>, vector<1x1x8xf32>
    %99 = vector.shape_cast %98 : vector<1x1x8xf32> to vector<1x8xf32>
    %100 = vector.shape_cast %93 : vector<1x8xf32> to vector<1x1x8xf32>
    tpu.vector_store %arg7[%c0_87, %c0_88, %c0_89], %100 {strides = array<i32>} : memref<1x2x8xf32, #tpu.memory_space<vmem>>, vector<1x1x8xf32>,
    %c0_90 = arith.constant 0 : index
    %c1_91 = arith.constant 1 : index
    %c0_92 = arith.constant 0 : index
    %101 = vector.load %arg7[%c0_90, %c1_91, %c0_92] : memref<1x2x8xf32, #tpu.memory_space<vmem>>, vector<1x1x8xf32>
    %102 = vector.shape_cast %101 : vector<1x1x8xf32> to vector<1x8xf32>
    %103 = vector.shape_cast %97 : vector<1x8xf32> to vector<1x1x8xf32>
    tpu.vector_store %arg7[%c0_90, %c1_91, %c0_92], %103 {strides = array<i32>} : memref<1x2x8xf32, #tpu.memory_space<vmem>>, vector<1x1x8xf32>,
    return
  }
  func.func @transform_0(%arg0: i32) -> (i32, i32, i32) {
    %c0_i32 = arith.constant 0 : i32
    %c0_i32_0 = arith.constant 0 : i32
    %c0_i32_1 = arith.constant 0 : i32
    return %arg0, %c0_i32, %c0_i32_0 : i32, i32, i32
  }
  func.func @transform_1(%arg0: i32) -> (i32, i32) {
    %c0_i32 = arith.constant 0 : i32
    %c0_i32_0 = arith.constant 0 : i32
    %c0_i32_1 = arith.constant 0 : i32
    return %c0_i32, %c0_i32_0 : i32, i32
  }
  func.func @transform_2(%arg0: i32) -> (i32, i32) {
    %c0_i32 = arith.constant 0 : i32
    %c0_i32_0 = arith.constant 0 : i32
    %c0_i32_1 = arith.constant 0 : i32
    return %c0_i32, %c0_i32_0 : i32, i32
  }
  func.func @transform_3(%arg0: i32) -> (i32, i32, i32) {
    %c0_i32 = arith.constant 0 : i32
    %c0_i32_0 = arith.constant 0 : i32
    %c0_i32_1 = arith.constant 0 : i32
    %c0_i32_2 = arith.constant 0 : i32
    return %c0_i32, %c0_i32_0, %c0_i32_1 : i32, i32, i32
  }
  func.func @transform_4(%arg0: i32) -> (i32, i32, i32) {
    %c0_i32 = arith.constant 0 : i32
    %c0_i32_0 = arith.constant 0 : i32
    %c0_i32_1 = arith.constant 0 : i32
    return %arg0, %c0_i32, %c0_i32_0 : i32, i32, i32
  }
  func.func @transform_5(%arg0: i32) -> (i32, i32, i32) {
    %c0_i32 = arith.constant 0 : i32
    %c0_i32_0 = arith.constant 0 : i32
    %c0_i32_1 = arith.constant 0 : i32
    return %arg0, %c0_i32, %c0_i32_0 : i32, i32, i32
  }
  func.func @transform_6(%arg0: i32) -> (i32, i32, i32) {
    %c0_i32 = arith.constant 0 : i32
    %c0_i32_0 = arith.constant 0 : i32
    %c0_i32_1 = arith.constant 0 : i32
    return %arg0, %c0_i32, %c0_i32_0 : i32, i32, i32
  }
}

</mosaic_0001>

<bundles_post_ra>
// kernel: _network_block_fwd.5
= control target key start
LH: loop header
LB: loop body
LE: loop exit
PB: predicated region body
PF: predicated region fallthrough
CT: control target
= control target key end

     0   :  { %v49_v0 = vmov 0.0   ;;  %s89_s1 = inlined_call_operand.vmem [shape: f32[1,128], index: 1, kind: output, shape index: {0}]   ;;  %s90_s2 = inlined_call_operand.vmem [shape: f32[1,128], index: 2, kind: output, shape index: {1}]   ;;  %s91_s0 = inlined_call_operand.vmem [shape: f32[16,128], index: 0, kind: input, shape index: {}]  }
   0x1   :  { %14 = vst [vmem:[%s89_s1] sm:$0x1] %v49_v0  ;;  %15 = vst [vmem:[%s90_s2] sm:$0x1] %v49_v0  ;;  %v16_v1 = vld [vmem:[%s91_s0] sm:$0xff]  ;;  %v17_v2 = vld [vmem:[%s91_s0 + $0x8] sm:$0xff] }
   0x2   :  { %v19_v3 = vadd.f32 %v17_v2, %v16_v1  ;;  %v29_v4 = vmul.f32 %v16_v1, %v16_v1  ;;  %v30_v5 = vmul.f32 %v17_v2, %v17_v2 }
   0x4   :  { %v20_v6 = vrot.slane %v19_v3, 4  ;;  %v31_v7 = vadd.f32 %v30_v5, %v29_v4 }
   0x6   :  { %v21_v8 = vadd.f32 %v20_v6, %v19_v3  ;;  %v32_v9 = vrot.slane %v31_v7, 4 }
   0x8   :  { %v22_v10 = vrot.slane %v21_v8, 2  ;;  %v33_v11 = vadd.f32 %v32_v9, %v31_v7  ;;  %v18_v16 = vld [vmem:[%s89_s1] sm:$0x1] }
   0x9   :  { %v28_v19 = vld [vmem:[%s90_s2] sm:$0x1] }
   0xa   :  { %v23_v12 = vadd.f32 %v22_v10, %v21_v8  ;;  %v34_v13 = vrot.slane %v33_v11, 2 }
   0xc   :  { %v24_v14 = vrot.slane %v23_v12, 1  ;;  %v35_v15 = vadd.f32 %v34_v13, %v33_v11 }
   0xe   :  { %v25_v17 = vadd.f32 %v24_v14, %v23_v12  ;;  %v36_v18 = vrot.slane %v35_v15, 1 }
  0x10   :  { %v26_v20 = vadd.f32 %v25_v17, %v18_v16  ;;  %v37_v21 = vadd.f32 %v36_v18, %v35_v15 }
  0x12   :  { %27 = vst [vmem:[%s89_s1] sm:$0x1] %v26_v20  ;;  %v38_v22 = vadd.f32 %v37_v21, %v28_v19 }
  0x14   :  { %39 = vst [vmem:[%s90_s2] sm:$0x1] %v38_v22 }

// kernel: _network_block_fwd.9
= control target key start
LH: loop header
LB: loop body
LE: loop exit
PB: predicated region body
PF: predicated region fallthrough
CT: control target
= control target key end

     0   :  { %s1698_s18 = smov 0   ;;  %s1911_s0 = inlined_call_operand.vmem [shape: bf16[2,64,8], index: 0, kind: input, shape index: {}]   ;;  %s1912_s1 = inlined_call_operand.vmem [shape: f32[1,8], index: 1, kind: input, shape index: {}]   ;;  %s1913_s2 = inlined_call_operand.vmem [shape: f32[1,8], index: 2, kind: input, shape index: {}]   ;;  %s1914_s3 = inlined_call_operand.vmem [shape: bf16[9,8,8], index: 3, kind: input, shape index: {}]   ;;  %s1915_s4 = inlined_call_operand.vmem [shape: bf16[2,64,8], index: 4, kind: input, shape index: {}]   ;;  %s1916_s5 = inlined_call_operand.vmem [shape: f32[2,64,8], index: 5, kind: output, shape index: {}]  }
   0x1 LB: > { %s1339_s19 = sadd.s32 4294967295, %s1665_s18   ;;  %p1343_p0 = scmp.ge.s32.totalorder %s1665_s18, 1  ;;  %s1665_s18 = sphi %s1698_s18, %s15_s18  }
   0x2   : > { %p197_p1 = scmp.lt.s32.totalorder %s1665_s18, 3 }
   0x4   : > { %p198_p2 = pnand %p1343_p0, %p197_p1 }
   0x5   : > { %v1352_v0 = vld [vmem:[%s1914_s3 + $0x4] sm:$0xf] (!%p198_p2)  ;;  %vm376_vm0 = vcmask (!%p198_p2), 1043456   ;;  %v1712_v1 = vld [vmem:[%s1914_s3 + $0x10] sm:$0xf] (!%p198_p2)  ;;  %p230_p3 = scmp.lt.s32.totalorder (!%p198_p2), %s1339_s19, 1 }
   0x6   : > { %201 = sbr.rel (%p198_p2) target bundleno = 324 (0x144), region = 40  ;;  %1640 = vmatprep.subr.msk.bf16.mxu1 (!%p198_p2), %vm376_vm0, %v1352_v0  ;;  %1644 = vmatprep.subr.msk.bf16.mxu0 (!%p198_p2), %vm376_vm0, %v1712_v1  ;;  %v378_v2 = vsel (!%p198_p2), %vm376_vm0, %v1352_v0, 0  ;;  %v1720_v3 = vsel (!%p198_p2), %vm376_vm0, %v1712_v1, 0  ;;  %vm300_vm1 = vcmask (!%p198_p2), 64512   ;;  %vm302_vm2 = vcmask (!%p198_p2), 58368  }
   0x7   : > { %1485 = vmatpush3.bf16.msra.mxu1 (!%p198_p2), %v378_v2  ;;  %1525 = vmatpush3.bf16.msra.mxu0 (!%p198_p2), %v1720_v3  ;;  %vm307_vm3 = vcmask (!%p198_p2), 57344   ;;  %v1667_v4 = vmov (!%p198_p2), 0.0   ;;  %v1746_v5 = vld [vmem:[%s1914_s3] sm:$0xf] (!%p198_p2)  ;;  %v1751_v6 = vld [vmem:[%s1914_s3 + $0x14] sm:$0xf] (!%p198_p2) }
   0x8   : > { %301 = vst.msk [vmem:[#allocation2] sm:$0xff] (!%p198_p2), %vm300_vm1, %v1667_v4  ;;  %305 = vst.msk [vmem:[#allocation2 + $0x90] sm:$0xff] (!%p198_p2), %vm300_vm1, %v1667_v4  ;;  %1641 = vmatprep.subr.msk.bf16.mxu1 (!%p198_p2), %vm376_vm0, %v1746_v5  ;;  %1646 = vmatprep.subr.msk.bf16.mxu0 (!%p198_p2), %vm376_vm0, %v1751_v6  ;;  %v1350_v7 = vld [vmem:[%s1912_s1] ss:$0 sm:$0xff] (!%p198_p2)  ;;  %v458_v54 = vsel (!%p198_p2), %vm376_vm0, %v1746_v5, 0  ;;  %v858_v56 = vsel (!%p198_p2), %vm376_vm0, %v1751_v6, 0 }
   0x9   : > { %303 = vst.msk [vmem:[#allocation2 + $0x8] sm:$0x3] (!%p198_p2), %vm302_vm2, %v1667_v4  ;;  %306 = vst.msk [vmem:[#allocation2 + $0x98] sm:$0x3] (!%p198_p2), %vm302_vm2, %v1667_v4  ;;  %v1351_v16 = vld [vmem:[%s1913_s2] ss:$0 sm:$0xff] (!%p198_p2) }
   0xa   : > { %309 = vst.msk [vmem:[#allocation2 + $0x10] sm:$0x1] (!%p198_p2), %vm307_vm3, %v1667_v4  ;;  %310 = vst.msk [vmem:[#allocation2 + $0x20] sm:$0x1] (!%p198_p2), %vm307_vm3, %v1667_v4  ;;  %v1381_v61 = vld [vmem:[%s1914_s3 + $0x18] sm:$0xf] (!%p198_p2) }
   0xb   : > { %311 = vst.msk [vmem:[#allocation2 + $0x30] sm:$0x1] (!%p198_p2), %vm307_vm3, %v1667_v4  ;;  %312 = vst.msk [vmem:[#allocation2 + $0x40] sm:$0x1] (!%p198_p2), %vm307_vm3, %v1667_v4  ;;  %v1361_v62 = vld [vmem:[%s1914_s3 + $0x8] sm:$0xf] (!%p198_p2) }
   0xc   : > { %313 = vst.msk [vmem:[#allocation2 + $0x50] sm:$0x1] (!%p198_p2), %vm307_vm3, %v1667_v4  ;;  %314 = vst.msk [vmem:[#allocation2 + $0x60] sm:$0x1] (!%p198_p2), %vm307_vm3, %v1667_v4 }
   0xd   : > { %s1918_s19 = smov (!%p230_p3, %s1339_s19), 1  ;;  %315 = vst.msk [vmem:[#allocation2 + $0x70] sm:$0x1] %vm307_vm3, %v1667_v4  ;;  %316 = vst.msk [vmem:[#allocation2 + $0x80] sm:$0x1] %vm307_vm3, %v1667_v4 }
   0xe   : > { %319 = vst.msk [vmem:[#allocation2 + $0x19] sm:$0x1] %vm307_vm3, %v1667_v4  ;;  %320 = vst.msk [vmem:[#allocation2 + $0x29] sm:$0x1] %vm307_vm3, %v1667_v4  ;;  %s1398_s28 = sshll.u32 %s1918_s19, 5  ;;  %s1400_s26 = sshll.u32 %s1918_s19, 6 }
   0xf   : > { %321 = vst.msk [vmem:[#allocation2 + $0x39] sm:$0x1] %vm307_vm3, %v1667_v4  ;;  %322 = vst.msk [vmem:[#allocation2 + $0x49] sm:$0x1] %vm307_vm3, %v1667_v4  ;;  %s234_s6 = scalar_lea.vmem %s1911_s0, %s1398_s28  ;;  %s239_s25 = scalar_lea.vmem %s1915_s4, %s1398_s28 }
  0x10   : > { %323 = vst.msk [vmem:[#allocation2 + $0x59] sm:$0x1] %vm307_vm3, %v1667_v4  ;;  %324 = vst.msk [vmem:[#allocation2 + $0x69] sm:$0x1] %vm307_vm3, %v1667_v4  ;;  %v1402_v8 = vld [vmem:[%s234_s6] sm:$0xff]   ;;  %v1433_v9 = vld [vmem:[%s234_s6 + $0x8] sm:$0xff]   ;;  %s1890_s30 = scalar_lea.vmem %s1916_s5, %s1400_s26 }
  0x11   : > { %325 = vst.msk [vmem:[#allocation2 + $0x79] sm:$0x1] %vm307_vm3, %v1667_v4  ;;  %326 = vst.msk [vmem:[#allocation2 + $0x89] sm:$0x1] %vm307_vm3, %v1667_v4  ;;  %v1434_v10 = vld [vmem:[%s234_s6 + $0x10] sm:$0xff]   ;;  %v1403_v11 = vunpack.c.l.bf16 %v1402_v8  ;;  %v1404_v12 = vunpack.c.h.bf16 %v1402_v8  ;;  %v1407_v13 = vunpack.c.l.bf16 %v1433_v9  ;;  %v1408_v14 = vunpack.c.h.bf16 %v1433_v9  ;;  %v1435_v15 = vld [vmem:[%s234_s6 + $0x18] sm:$0xff]  }
  0x12   : > { %308 = vst.msk [vmem:[#allocation2] sm:$0x1] %vm307_vm3, %v1667_v4  ;;  %318 = vst.msk [vmem:[#allocation2 + $0x9] sm:$0x1] %vm307_vm3, %v1667_v4  ;;  %v1411_v17 = vunpack.c.l.bf16 %v1434_v10  ;;  %v1412_v18 = vunpack.c.h.bf16 %v1434_v10  ;;  %v1415_v19 = vunpack.c.l.bf16 %v1435_v15  ;;  %v1416_v20 = vunpack.c.h.bf16 %v1435_v15  ;;  %v350_v45 = vld [vmem:[#allocation2 + $0x1] sm:$0xff] }
  0x13   : > { %327 = vst.msk [vmem:[#allocation2 + $0x99] sm:$0x1] %vm307_vm3, %v1667_v4  ;;  %317 = vst.msk [vmem:[#allocation2 + $0x90] sm:$0x1] %vm307_vm3, %v1667_v4  ;;  %v269_v21 = vmul.f32 %v1403_v11, %v1350_v7  ;;  %v270_v22 = vmul.f32 %v1404_v12, %v1350_v7  ;;  %v271_v23 = vmul.f32 %v1407_v13, %v1350_v7  ;;  %v961_v15 = vsel %vm376_vm0, %v1381_v61, 0 }
  0x14   : > { %v272_v24 = vmul.f32 %v1408_v14, %v1350_v7  ;;  %v273_v25 = vmul.f32 %v1411_v17, %v1350_v7  ;;  %v274_v26 = vmul.f32 %v1412_v18, %v1350_v7  ;;  %v275_v27 = vmul.f32 %v1415_v19, %v1350_v7  ;;  %v1386_v18 = vld [vmem:[%s1914_s3 + $0x1c] sm:$0xf] }
  0x15   : > { %v276_v28 = vmul.f32 %v1416_v20, %v1350_v7  ;;  %v284_v29 = vadd.f32 %v1351_v16, %v269_v21  ;;  %v285_v30 = vadd.f32 %v1351_v16, %v270_v22  ;;  %v286_v31 = vadd.f32 %v1351_v16, %v271_v23 }
  0x16   : > { %v287_v32 = vadd.f32 %v1351_v16, %v272_v24  ;;  %v288_v33 = vadd.f32 %v1351_v16, %v273_v25  ;;  %v289_v34 = vadd.f32 %v1351_v16, %v274_v26  ;;  %v290_v35 = vadd.f32 %v1351_v16, %v275_v27  ;;  %v1366_v24 = vld [vmem:[%s1914_s3 + $0xc] sm:$0xf] }
  0x17   : > { %v291_v36 = vadd.f32 %v1351_v16, %v276_v28  ;;  %v292_v37 = vmax.f32 %v284_v29, 0.0  ;;  %v293_v38 = vmax.f32 %v285_v30, 0.0  ;;  %v294_v39 = vmax.f32 %v286_v31, 0.0 }
  0x18   : > { %v295_v40 = vmax.f32 %v287_v32, 0.0  ;;  %v296_v41 = vmax.f32 %v288_v33, 0.0  ;;  %v297_v42 = vmax.f32 %v289_v34, 0.0  ;;  %v298_v43 = vmax.f32 %v290_v35, 0.0  ;;  %v1391_v32 = vld [vmem:[%s1914_s3 + $0x20] sm:$0xf] }
  0x19   : > { %v299_v44 = vmax.f32 %v291_v36, 0.0  ;;  %329 = vst.msk [vmem:[#allocation2 + $0x11] sm:$0xff] %vm300_vm1, %v292_v37  ;;  %330 = vst.msk [vmem:[#allocation2 + $0x21] sm:$0xff] %vm300_vm1, %v293_v38  ;;  %v337_v2 = vld [vmem:[#allocation2] sm:$0xff]  ;;  %v552_v23 = vsel %vm376_vm0, %v1361_v62, 0  ;;  %v1063_v31 = vsel %vm376_vm0, %v1386_v18, 0 }
  0x1a   : > { %331 = vst.msk [vmem:[#allocation2 + $0x31] sm:$0xff] %vm300_vm1, %v294_v39  ;;  %332 = vst.msk [vmem:[#allocation2 + $0x41] sm:$0xff] %vm300_vm1, %v295_v40  ;;  %v525_v28 = vld [vmem:[#allocation2 + $0x2] sm:$0xff]  ;;  %v941_v35 = vld [vmem:[#allocation2 + $0x90] sm:$0xff]  ;;  %v654_v37 = vsel %vm376_vm0, %v1366_v24, 0 }
  0x1b   : > { %333 = vst.msk [vmem:[#allocation2 + $0x51] sm:$0xff] %vm300_vm1, %v296_v41  ;;  %334 = vst.msk [vmem:[#allocation2 + $0x61] sm:$0xff] %vm300_vm1, %v297_v42  ;;  %v1165_v41 = vsel %vm376_vm0, %v1391_v32, 0 }
  0x1c   : > { %335 = vst.msk [vmem:[#allocation2 + $0x71] sm:$0xff] %vm300_vm1, %v298_v43  ;;  %336 = vst.msk [vmem:[#allocation2 + $0x81] sm:$0xff] %vm300_vm1, %v299_v44  ;;  %v1043_v43 = vld [vmem:[#allocation2 + $0x91] sm:$0xff] }
  0x20   : > { %v351_v46 = vld [vmem:[#allocation2 + $0x11] sm:$0xff]  ;;  %v730_v47 = vld [vmem:[#allocation2 + $0x21] sm:$0xff] }
  0x21   : > { %v353_v48 = vld [vmem:[#allocation2 + $0x31] sm:$0xff]  ;;  %v358_v49 = vpack.c.bf16 %v351_v46, %v350_v45  ;;  %v737_v50 = vpack.c.bf16 %v730_v47, %v351_v46  ;;  %v732_v52 = vld [vmem:[#allocation2 + $0x41] sm:$0xff] }
  0x22   : > { %v1781_v51 = vpack.c.bf16 %v353_v48, %v730_v47  ;;  %v1783_v53 = vld [vmem:[#allocation2 + $0x51] sm:$0xff]  ;;  %v738_v55 = vpack.c.bf16 %v732_v52, %v353_v48  ;;  %v832_v59 = vld [vmem:[#allocation2 + $0x22] sm:$0xff] }
  0x23   : > { %v1790_v57 = vpack.c.bf16 %v1783_v53, %v732_v52  ;;  %v831_v58 = vld [vmem:[#allocation2 + $0x12] sm:$0xff]  ;;  %1486 = vmatprep.mubr.msk.bf16.mxu1 %vm300_vm1, %v358_v49  ;;  %1526 = vmatprep.mubr.msk.bf16.mxu0 %vm300_vm1, %v737_v50  ;;  %v1803_v63 = vld [vmem:[#allocation2 + $0x61] sm:$0xff] }
  0x24   : > { %v839_v60 = vpack.c.bf16 %v832_v59, %v831_v58  ;;  %1487 = vmatmul.mubr.msk.bf16.vlgmr.msra.gmra.mrb[0].mxu1 %vm300_vm1, %v1781_v51  ;;  %1527 = vmatmul.mubr.msk.bf16.vlgmr.msra.gmra.mrb[0].mxu0 %vm300_vm1, %v738_v55  ;;  %v1805_v0 = vld [vmem:[#allocation2 + $0x71] sm:$0xff]  ;;  %v834_v7 = vld [vmem:[#allocation2 + $0x42] sm:$0xff]  ;;  %v533_v30 = vpack.c.bf16 %v831_v58, %v525_v28  ;;  %v739_v47 = vpack.c.bf16 %v1803_v63, %v1783_v53 }
  0x25   : > { %1495 = vmatpush3.bf16.msra.mxu1 %v458_v54  ;;  %1535 = vmatpush3.bf16.msra.mxu0 %v858_v56  ;;  %v1810_v4 = vld [vmem:[#allocation2 + $0x10] sm:$0xff]  ;;  %v1816_v5 = vpack.c.bf16 %v1805_v0, %v1803_v63  ;;  %v836_v10 = vld [vmem:[#allocation2 + $0x62] sm:$0xff] }
  0x26   : > { %1490 = vmatprep.mubr.msk.bf16.mxu1 %vm300_vm1, %v1790_v57  ;;  %1536 = vmatprep.mubr.msk.bf16.mxu0 %vm300_vm1, %v839_v60  ;;  %v833_v6 = vld [vmem:[#allocation2 + $0x32] sm:$0xff]  ;;  %v345_v8 = vpack.c.bf16 %v1810_v4, %v337_v2  ;;  %v339_v12 = vld [vmem:[#allocation2 + $0x20] sm:$0xff]  ;;  %v1436_v54 = vld [vmem:[%s239_s25 + $0x8] sm:$0xff]  }
  0x27   : > { %1647 = vmatprep.subr.msk.bf16.mxu0 %vm376_vm0, %v1381_v61  ;;  %1642 = vmatprep.subr.msk.bf16.mxu1 %vm376_vm0, %v1361_v62  ;;  %v835_v9 = vld [vmem:[#allocation2 + $0x52] sm:$0xff]  ;;  %v840_v11 = vpack.c.bf16 %v834_v7, %v833_v6  ;;  %v341_v16 = vld [vmem:[#allocation2 + $0x40] sm:$0xff]  ;;  %v534_v33 = vpack.c.bf16 %v833_v6, %v832_v59  ;;  %v635_v40 = vpack.c.bf16 %v339_v12, %v1810_v4  ;;  %v1423_v56 = vunpack.c.l.bf16 %v1436_v54 }
  0x28   : > { %v340_v13 = vld [vmem:[#allocation2 + $0x30] sm:$0xff]  ;;  %v841_v14 = vpack.c.bf16 %v836_v10, %v835_v9  ;;  %v1828_v21 = vld [vmem:[#allocation2 + $0x82] sm:$0xff]  ;;  %v535_v36 = vpack.c.bf16 %v835_v9, %v834_v7  ;;  %v1424_v61 = vunpack.c.h.bf16 %v1436_v54 }
  0x29   : > { %v342_v17 = vld [vmem:[#allocation2 + $0x50] sm:$0xff]  ;;  %v346_v19 = vpack.c.bf16 %v340_v13, %v339_v12  ;;  %v343_v26 = vld [vmem:[#allocation2 + $0x60] sm:$0xff]  ;;  %v636_v42 = vpack.c.bf16 %v341_v16, %v340_v13 }
  0x2a   : > { %v837_v20 = vld [vmem:[#allocation2 + $0x72] sm:$0xff]  ;;  %v347_v22 = vpack.c.bf16 %v342_v17, %v341_v16  ;;  %v940_v34 = vld [vmem:[#allocation2 + $0x80] sm:$0xff]  ;;  %v637_v44 = vpack.c.bf16 %v343_v26, %v342_v17 }
  0x2b   : > { %v842_v25 = vpack.c.bf16 %v1828_v21, %v837_v20  ;;  %v344_v27 = vld [vmem:[#allocation2 + $0x70] sm:$0xff]  ;;  %v945_v38 = vpack.c.bf16 %v941_v35, %v940_v34  ;;  %v536_v39 = vpack.c.bf16 %v837_v20, %v836_v10  ;;  %v1418_v55 = vld [vmem:[%s239_s25] sm:$0xff]  }
  0x2c   : > { %1491 = vmatmul.mubr.msk.bf16.gmra.mrb[4].mxu1 %vm300_vm1, %v1816_v5  ;;  %v348_v29 = vpack.c.bf16 %v344_v27, %v343_v26  ;;  %v638_v46 = vpack.c.bf16 %v940_v34, %v344_v27  ;;  %v1419_v58 = vunpack.c.l.bf16 %v1418_v55  ;;  %v1437_v10 = vld [vmem:[%s239_s25 + $0x10] sm:$0xff]  }
  0x2d   : > { %1496 = vmatprep.mubr.msk.bf16.mxu1 %vm300_vm1, %v345_v8  ;;  %v1438_v8 = vld [vmem:[%s239_s25 + $0x18] sm:$0xff]  }
  0x2e   : > { %v1431_v12 = vunpack.c.l.bf16 %v1438_v8 }
  0x30   : > { %1537 = vmatmul.mubr.msk.bf16.vlgmr.msra.gmra.mrb[0].mxu0 %vm300_vm1, %v840_v11 }
  0x31   : > { %1545 = vmatpush3.bf16.msra.mxu0 %v961_v15  ;;  %1540 = vmatprep.mubr.msk.bf16.mxu0 %vm300_vm1, %v841_v14  ;;  %v1427_v15 = vunpack.c.l.bf16 %v1437_v10 }
  0x32   : > { %1648 = vmatprep.subr.msk.bf16.mxu0 %vm376_vm0, %v1386_v18 }
  0x34   : > { %1497 = vmatmul.mubr.msk.bf16.vlgmr.msra.gmra.mrb[0].mxu1 %vm300_vm1, %v346_v19 }
  0x35   : > { %1505 = vmatpush3.bf16.msra.mxu1 %v552_v23  ;;  %1500 = vmatprep.mubr.msk.bf16.mxu1 %vm300_vm1, %v347_v22  ;;  %v1428_v23 = vunpack.c.h.bf16 %v1437_v10 }
  0x36   : > { %1643 = vmatprep.subr.msk.bf16.mxu1 %vm376_vm0, %v1366_v24 }
  0x38   : > { %1541 = vmatmul.mubr.msk.bf16.gmra.mrb[4].mxu0 %vm300_vm1, %v842_v25 }
  0x39   : > { %1546 = vmatprep.mubr.msk.bf16.mxu0 %vm300_vm1, %v346_v19  ;;  %v1432_v19 = vunpack.c.h.bf16 %v1438_v8 }
  0x3c   : > { %1501 = vmatmul.mubr.msk.bf16.gmra.mrb[4].mxu1 %vm300_vm1, %v348_v29 }
  0x3d   : > { %1506 = vmatprep.mubr.msk.bf16.mxu1 %vm300_vm1, %v533_v30 }
  0x40   : > { %1547 = vmatmul.mubr.msk.bf16.vlgmr.msra.gmra.mrb[0].mxu0 %vm300_vm1, %v347_v22 }
  0x41   : > { %1555 = vmatpush3.bf16.msra.mxu0 %v1063_v31  ;;  %1550 = vmatprep.mubr.msk.bf16.mxu0 %vm300_vm1, %v348_v29 }
  0x42   : > { %1649 = vmatprep.subr.msk.bf16.mxu0 %vm376_vm0, %v1391_v32 }
  0x44   : > { %1507 = vmatmul.mubr.msk.bf16.vlgmr.msra.gmra.mrb[0].mxu1 %vm300_vm1, %v534_v33 }
  0x45   : > { %1515 = vmatpush3.bf16.msra.mxu1 %v654_v37  ;;  %1510 = vmatprep.mubr.msk.bf16.mxu1 %vm300_vm1, %v535_v36 }
  0x46   : > { %1645 = vmatprep.subr.msk.bf16.mxu1 %vm376_vm0, %v1712_v1  ;;  %v1042_v1 = vld [vmem:[#allocation2 + $0x81] sm:$0xff] }
  0x47   : > { %v1047_v45 = vpack.c.bf16 %v1043_v43, %v1042_v1  ;;  %v740_v48 = vpack.c.bf16 %v1042_v1, %v1805_v0  ;;  %v1420_v0 = vunpack.c.h.bf16 %v1418_v55 }
  0x48   : > { %1551 = vmatmul.mubr.msk.bf16.gmra.mrb[4].mxu0 %vm300_vm1, %v945_v38 }
  0x49   : > { %1556 = vmatprep.mubr.msk.bf16.mxu0 %vm300_vm1, %v1781_v51 }
  0x4c   : > { %1511 = vmatmul.mubr.msk.bf16.gmra.mrb[4].mxu1 %vm300_vm1, %v536_v39 }
  0x4d   : > { %1516 = vmatprep.mubr.msk.bf16.mxu1 %vm300_vm1, %v635_v40 }
  0x50   : > { %1557 = vmatmul.mubr.msk.bf16.vlgmr.msra.gmra.mrb[0].mxu0 %vm300_vm1, %v1790_v57 }
  0x51   : > { %1565 = vmatpush3.bf16.msra.mxu0 %v1165_v41  ;;  %1560 = vmatprep.mubr.msk.bf16.mxu0 %vm300_vm1, %v1816_v5 }
  0x54   : > { %1517 = vmatmul.mubr.msk.bf16.vlgmr.msra.gmra.mrb[0].mxu1 %vm300_vm1, %v636_v42 }
  0x55   : > { %1575 = vmatpush3.bf16.msra.mxu1 %v1720_v3  ;;  %1520 = vmatprep.mubr.msk.bf16.mxu1 %vm300_vm1, %v637_v44  ;;  %v1145_v3 = vld [vmem:[#allocation2 + $0x92] sm:$0xff] }
  0x56   : > { %v1149_v49 = vpack.c.bf16 %v1145_v3, %v1828_v21 }
  0x58   : > { %1561 = vmatmul.mubr.msk.bf16.gmra.mrb[4].mxu0 %vm300_vm1, %v1047_v45 }
  0x59   : > { %1566 = vmatprep.mubr.msk.bf16.mxu0 %vm300_vm1, %v534_v33 }
  0x5c   : > { %1521 = vmatmul.mubr.msk.bf16.gmra.mrb[4].mxu1 %vm300_vm1, %v638_v46 }
  0x5d   : > { %1530 = vmatprep.mubr.msk.bf16.mxu1 %vm300_vm1, %v739_v47 }
  0x60   : > { %1567 = vmatmul.mubr.msk.bf16.vlgmr.msra.gmra.mrb[0].mxu0 %vm300_vm1, %v535_v36 }
  0x61   : > { %1570 = vmatprep.mubr.msk.bf16.mxu0 %vm300_vm1, %v536_v39 }
  0x68   : > { %1531 = vmatmul.mubr.msk.bf16.vlgmr.msra.gmra.mrb[4].mxu1 %vm300_vm1, %v740_v48  ;;  %1571 = vmatmul.mubr.msk.bf16.gmra.mrb[4].mxu0 %vm300_vm1, %v1149_v49 }
 0x127   : > { %v1518_v50 = vpop.f32.mrb[0].mxu1 }
 0x128   : > { %v690_v51 = vpop.f32.mrb[1].mxu1 }
 0x129   : > { %v1519_v52 = vpop.f32.mrb[2].mxu1 }
 0x12a   : > { %v693_v53 = vpop.f32.mrb[3].mxu1 }
 0x133   : > { %v1568_v57 = vpop.f32.mrb[0].mxu0 }
 0x134   : > { %v1576_v59 = vadd.f32 %v1568_v57, %v1518_v50  ;;  %v1201_v60 = vpop.f32.mrb[1].mxu0 }
 0x135   : > { %v1577_v62 = vadd.f32 %v1201_v60, %v690_v51  ;;  %v1569_v63 = vpop.f32.mrb[2].mxu0 }
 0x136   : > { %v1258_v2 = vadd.f32 %v1576_v59, %v1423_v56  ;;  %v1578_v4 = vadd.f32 %v1569_v63, %v1519_v52  ;;  %v1204_v5 = vpop.f32.mrb[3].mxu0 }
 0x137   : > { %v1256_v6 = vadd.f32 %v1577_v62, %v1419_v58  ;;  %v1579_v7 = vadd.f32 %v1204_v5, %v693_v53 }
 0x138   : > { %1266 = vst.msk [vmem:[%s1890_s30 + $0x10] sm:$0xff] %vm300_vm1, %v1258_v2  ;;  %v1259_v9 = vadd.f32 %v1578_v4, %v1424_v61 }
 0x139   : > { %1264 = vst.msk [vmem:[%s1890_s30] sm:$0xff] %vm300_vm1, %v1256_v6  ;;  %v1257_v11 = vadd.f32 %v1579_v7, %v1420_v0 }
 0x13a   : > { %1267 = vst.msk [vmem:[%s1890_s30 + $0x18] sm:$0xff] %vm300_vm1, %v1259_v9 }
 0x13b   : > { %1265 = vst.msk [vmem:[%s1890_s30 + $0x8] sm:$0xff] %vm300_vm1, %v1257_v11  ;;  %v1532_v13 = vpop.f32.mrb[4].mxu1  ;;  %v1572_v14 = vpop.f32.mrb[4].mxu0 }
 0x13c   : > { %v1580_v16 = vadd.f32 %v1572_v14, %v1532_v13  ;;  %v808_v17 = vpop.f32.mrb[5].mxu1  ;;  %v1217_v18 = vpop.f32.mrb[5].mxu0 }
 0x13d   : > { %v1581_v20 = vadd.f32 %v1217_v18, %v808_v17  ;;  %v1533_v21 = vpop.f32.mrb[6].mxu1  ;;  %v1573_v22 = vpop.f32.mrb[6].mxu0 }
 0x13e   : > { %v1262_v24 = vadd.f32 %v1580_v16, %v1431_v12  ;;  %v1582_v25 = vadd.f32 %v1573_v22, %v1533_v21  ;;  %v811_v26 = vpop.f32.mrb[7].mxu1  ;;  %v1220_v27 = vpop.f32.mrb[7].mxu0 }
 0x13f   : > { %v1260_v28 = vadd.f32 %v1581_v20, %v1427_v15  ;;  %v1583_v29 = vadd.f32 %v1220_v27, %v811_v26 }
 0x140   : > { %1270 = vst.msk [vmem:[%s1890_s30 + $0x30] sm:$0xff] %vm300_vm1, %v1262_v24  ;;  %v1263_v30 = vadd.f32 %v1582_v25, %v1432_v19 }
 0x141   : > { %1268 = vst.msk [vmem:[%s1890_s30 + $0x20] sm:$0xff] %vm300_vm1, %v1260_v28  ;;  %v1261_v31 = vadd.f32 %v1583_v29, %v1428_v23 }
 0x142   : > { %1271 = vst.msk [vmem:[%s1890_s30 + $0x38] sm:$0xff] %vm300_vm1, %v1263_v30 }
 0x143   : > { %1269 = vst.msk [vmem:[%s1890_s30 + $0x28] sm:$0xff] %vm300_vm1, %v1261_v31 }
 0x144 PF: > { %s15_s18 = sadd.s32 1, %s1665_s18  }
 0x145   : > { %p12_p4 = scmp.ge.s32.totalorder %s15_s18, 4  }
 0x147   :  { %14 = sbr.rel (!%p12_p4) target bundleno = 1 (0x1), region = 84 }

// kernel: _network_block_fwd.8
= control target key start
LH: loop header
LB: loop body
LE: loop exit
PB: predicated region body
PF: predicated region fallthrough
CT: control target
= control target key end

     0   :  { %s1766_s18 = smov 0   ;;  %s1997_s0 = inlined_call_operand.vmem [shape: bf16[2,64,8], index: 0, kind: input, shape index: {}]   ;;  %s1998_s1 = inlined_call_operand.vmem [shape: f32[1,8], index: 1, kind: input, shape index: {}]   ;;  %s1999_s2 = inlined_call_operand.vmem [shape: f32[1,8], index: 2, kind: input, shape index: {}]   ;;  %s2000_s3 = inlined_call_operand.vmem [shape: bf16[9,8,8], index: 3, kind: input, shape index: {}]   ;;  %s2001_s4 = inlined_call_operand.vmem [shape: bf16[2,64,8], index: 4, kind: output, shape index: {0}]   ;;  %s2002_s5 = inlined_call_operand.vmem [shape: f32[2,2,8], index: 5, kind: output, shape index: {1}]  }
   0x1 LB: > { %s1412_s19 = sadd.s32 4294967295, %s1733_s18   ;;  %p1416_p0 = scmp.ge.s32.totalorder %s1733_s18, 1  ;;  %s1733_s18 = sphi %s1766_s18, %s16_s18  }
   0x2   : > { %p190_p1 = scmp.lt.s32.totalorder %s1733_s18, 3 }
   0x4   : > { %p191_p2 = pnand %p1416_p0, %p190_p1 }
   0x5   : > { %v1424_v0 = vld [vmem:[%s2000_s3 + $0x4] sm:$0xf] (!%p191_p2)  ;;  %vm367_vm0 = vcmask (!%p191_p2), 1043456   ;;  %v1780_v1 = vld [vmem:[%s2000_s3 + $0x10] sm:$0xf] (!%p191_p2)  ;;  %p222_p3 = scmp.lt.s32.totalorder (!%p191_p2), %s1412_s19, 1 }
   0x6   : > { %194 = sbr.rel (%p191_p2) target bundleno = 343 (0x157), region = 36  ;;  %1708 = vmatprep.subr.msk.bf16.mxu1 (!%p191_p2), %vm367_vm0, %v1424_v0  ;;  %1712 = vmatprep.subr.msk.bf16.mxu0 (!%p191_p2), %vm367_vm0, %v1780_v1  ;;  %v369_v2 = vsel (!%p191_p2), %vm367_vm0, %v1424_v0, 0  ;;  %v1788_v3 = vsel (!%p191_p2), %vm367_vm0, %v1780_v1, 0  ;;  %vm291_vm1 = vcmask (!%p191_p2), 64512   ;;  %vm293_vm2 = vcmask (!%p191_p2), 58368  }
   0x7   : > { %1553 = vmatpush3.bf16.msra.mxu1 (!%p191_p2), %v369_v2  ;;  %1593 = vmatpush3.bf16.msra.mxu0 (!%p191_p2), %v1788_v3  ;;  %vm298_vm3 = vcmask (!%p191_p2), 57344   ;;  %v1735_v4 = vmov (!%p191_p2), 0.0   ;;  %v1814_v5 = vld [vmem:[%s2000_s3] sm:$0xf] (!%p191_p2)  ;;  %v1819_v6 = vld [vmem:[%s2000_s3 + $0x14] sm:$0xf] (!%p191_p2) }
   0x8   : > { %292 = vst.msk [vmem:[#allocation2] sm:$0xff] (!%p191_p2), %vm291_vm1, %v1735_v4  ;;  %296 = vst.msk [vmem:[#allocation2 + $0x90] sm:$0xff] (!%p191_p2), %vm291_vm1, %v1735_v4  ;;  %1709 = vmatprep.subr.msk.bf16.mxu1 (!%p191_p2), %vm367_vm0, %v1814_v5  ;;  %1714 = vmatprep.subr.msk.bf16.mxu0 (!%p191_p2), %vm367_vm0, %v1819_v6  ;;  %v1422_v7 = vld [vmem:[%s1998_s1] ss:$0 sm:$0xff] (!%p191_p2)  ;;  %v449_v54 = vsel (!%p191_p2), %vm367_vm0, %v1814_v5, 0  ;;  %v849_v56 = vsel (!%p191_p2), %vm367_vm0, %v1819_v6, 0 }
   0x9   : > { %294 = vst.msk [vmem:[#allocation2 + $0x8] sm:$0x3] (!%p191_p2), %vm293_vm2, %v1735_v4  ;;  %297 = vst.msk [vmem:[#allocation2 + $0x98] sm:$0x3] (!%p191_p2), %vm293_vm2, %v1735_v4  ;;  %v1423_v16 = vld [vmem:[%s1999_s2] ss:$0 sm:$0xff] (!%p191_p2) }
   0xa   : > { %300 = vst.msk [vmem:[#allocation2 + $0x10] sm:$0x1] (!%p191_p2), %vm298_vm3, %v1735_v4  ;;  %301 = vst.msk [vmem:[#allocation2 + $0x20] sm:$0x1] (!%p191_p2), %vm298_vm3, %v1735_v4  ;;  %v1453_v61 = vld [vmem:[%s2000_s3 + $0x18] sm:$0xf] (!%p191_p2) }
   0xb   : > { %302 = vst.msk [vmem:[#allocation2 + $0x30] sm:$0x1] (!%p191_p2), %vm298_vm3, %v1735_v4  ;;  %303 = vst.msk [vmem:[#allocation2 + $0x40] sm:$0x1] (!%p191_p2), %vm298_vm3, %v1735_v4  ;;  %v1433_v62 = vld [vmem:[%s2000_s3 + $0x8] sm:$0xf] (!%p191_p2) }
   0xc   : > { %304 = vst.msk [vmem:[#allocation2 + $0x50] sm:$0x1] (!%p191_p2), %vm298_vm3, %v1735_v4  ;;  %305 = vst.msk [vmem:[#allocation2 + $0x60] sm:$0x1] (!%p191_p2), %vm298_vm3, %v1735_v4  ;;  %vm1263_vm4 = vcmask (!%p191_p2), 60416  }
   0xd   : > { %s2004_s19 = smov (!%p222_p3, %s1412_s19), 1  ;;  %306 = vst.msk [vmem:[#allocation2 + $0x70] sm:$0x1] %vm298_vm3, %v1735_v4  ;;  %307 = vst.msk [vmem:[#allocation2 + $0x80] sm:$0x1] %vm298_vm3, %v1735_v4 }
   0xe   : > { %310 = vst.msk [vmem:[#allocation2 + $0x19] sm:$0x1] %vm298_vm3, %v1735_v4  ;;  %311 = vst.msk [vmem:[#allocation2 + $0x29] sm:$0x1] %vm298_vm3, %v1735_v4  ;;  %s1478_s28 = sshll.u32 %s2004_s19, 5  ;;  %s1421_s26 = sshll.u32 %s2004_s19, 1 }
   0xf   : > { %312 = vst.msk [vmem:[#allocation2 + $0x39] sm:$0x1] %vm298_vm3, %v1735_v4  ;;  %313 = vst.msk [vmem:[#allocation2 + $0x49] sm:$0x1] %vm298_vm3, %v1735_v4  ;;  %s226_s6 = scalar_lea.vmem %s1997_s0, %s1478_s28  ;;  %s1954_s25 = scalar_lea.vmem %s2001_s4, %s1478_s28 }
  0x10   : > { %314 = vst.msk [vmem:[#allocation2 + $0x59] sm:$0x1] %vm298_vm3, %v1735_v4  ;;  %315 = vst.msk [vmem:[#allocation2 + $0x69] sm:$0x1] %vm298_vm3, %v1735_v4  ;;  %v1489_v8 = vld [vmem:[%s226_s6] sm:$0xff]   ;;  %v1504_v9 = vld [vmem:[%s226_s6 + $0x8] sm:$0xff]   ;;  %s235_s29 = scalar_lea.vmem %s2002_s5, %s1421_s26 }
  0x11   : > { %316 = vst.msk [vmem:[#allocation2 + $0x79] sm:$0x1] %vm298_vm3, %v1735_v4  ;;  %317 = vst.msk [vmem:[#allocation2 + $0x89] sm:$0x1] %vm298_vm3, %v1735_v4  ;;  %v1505_v10 = vld [vmem:[%s226_s6 + $0x10] sm:$0xff]   ;;  %v1490_v11 = vunpack.c.l.bf16 %v1489_v8  ;;  %v1491_v12 = vunpack.c.h.bf16 %v1489_v8  ;;  %v1494_v13 = vunpack.c.l.bf16 %v1504_v9  ;;  %v1495_v14 = vunpack.c.h.bf16 %v1504_v9  ;;  %v1506_v15 = vld [vmem:[%s226_s6 + $0x18] sm:$0xff]  }
  0x12   : > { %299 = vst.msk [vmem:[#allocation2] sm:$0x1] %vm298_vm3, %v1735_v4  ;;  %309 = vst.msk [vmem:[#allocation2 + $0x9] sm:$0x1] %vm298_vm3, %v1735_v4  ;;  %v1498_v17 = vunpack.c.l.bf16 %v1505_v10  ;;  %v1499_v18 = vunpack.c.h.bf16 %v1505_v10  ;;  %v1502_v19 = vunpack.c.l.bf16 %v1506_v15  ;;  %v1503_v20 = vunpack.c.h.bf16 %v1506_v15  ;;  %v341_v45 = vld [vmem:[#allocation2 + $0x1] sm:$0xff] }
  0x13   : > { %318 = vst.msk [vmem:[#allocation2 + $0x99] sm:$0x1] %vm298_vm3, %v1735_v4  ;;  %308 = vst.msk [vmem:[#allocation2 + $0x90] sm:$0x1] %vm298_vm3, %v1735_v4  ;;  %v260_v21 = vmul.f32 %v1490_v11, %v1422_v7  ;;  %v261_v22 = vmul.f32 %v1491_v12, %v1422_v7  ;;  %v262_v23 = vmul.f32 %v1494_v13, %v1422_v7  ;;  %v952_v15 = vsel %vm367_vm0, %v1453_v61, 0 }
  0x14   : > { %v263_v24 = vmul.f32 %v1495_v14, %v1422_v7  ;;  %v264_v25 = vmul.f32 %v1498_v17, %v1422_v7  ;;  %v265_v26 = vmul.f32 %v1499_v18, %v1422_v7  ;;  %v266_v27 = vmul.f32 %v1502_v19, %v1422_v7  ;;  %v1458_v18 = vld [vmem:[%s2000_s3 + $0x1c] sm:$0xf] }
  0x15   : > { %v267_v28 = vmul.f32 %v1503_v20, %v1422_v7  ;;  %v275_v29 = vadd.f32 %v1423_v16, %v260_v21  ;;  %v276_v30 = vadd.f32 %v1423_v16, %v261_v22  ;;  %v277_v31 = vadd.f32 %v1423_v16, %v262_v23 }
  0x16   : > { %v278_v32 = vadd.f32 %v1423_v16, %v263_v24  ;;  %v279_v33 = vadd.f32 %v1423_v16, %v264_v25  ;;  %v280_v34 = vadd.f32 %v1423_v16, %v265_v26  ;;  %v281_v35 = vadd.f32 %v1423_v16, %v266_v27  ;;  %v1438_v24 = vld [vmem:[%s2000_s3 + $0xc] sm:$0xf] }
  0x17   : > { %v282_v36 = vadd.f32 %v1423_v16, %v267_v28  ;;  %v283_v37 = vmax.f32 %v275_v29, 0.0  ;;  %v284_v38 = vmax.f32 %v276_v30, 0.0  ;;  %v285_v39 = vmax.f32 %v277_v31, 0.0 }
  0x18   : > { %v286_v40 = vmax.f32 %v278_v32, 0.0  ;;  %v287_v41 = vmax.f32 %v279_v33, 0.0  ;;  %v288_v42 = vmax.f32 %v280_v34, 0.0  ;;  %v289_v43 = vmax.f32 %v281_v35, 0.0  ;;  %v1463_v32 = vld [vmem:[%s2000_s3 + $0x20] sm:$0xf] }
  0x19   : > { %v290_v44 = vmax.f32 %v282_v36, 0.0  ;;  %320 = vst.msk [vmem:[#allocation2 + $0x11] sm:$0xff] %vm291_vm1, %v283_v37  ;;  %321 = vst.msk [vmem:[#allocation2 + $0x21] sm:$0xff] %vm291_vm1, %v284_v38  ;;  %v328_v2 = vld [vmem:[#allocation2] sm:$0xff]  ;;  %v543_v23 = vsel %vm367_vm0, %v1433_v62, 0  ;;  %v1054_v31 = vsel %vm367_vm0, %v1458_v18, 0 }
  0x1a   : > { %322 = vst.msk [vmem:[#allocation2 + $0x31] sm:$0xff] %vm291_vm1, %v285_v39  ;;  %323 = vst.msk [vmem:[#allocation2 + $0x41] sm:$0xff] %vm291_vm1, %v286_v40  ;;  %v516_v28 = vld [vmem:[#allocation2 + $0x2] sm:$0xff]  ;;  %v932_v35 = vld [vmem:[#allocation2 + $0x90] sm:$0xff]  ;;  %v645_v37 = vsel %vm367_vm0, %v1438_v24, 0 }
  0x1b   : > { %324 = vst.msk [vmem:[#allocation2 + $0x51] sm:$0xff] %vm291_vm1, %v287_v41  ;;  %325 = vst.msk [vmem:[#allocation2 + $0x61] sm:$0xff] %vm291_vm1, %v288_v42  ;;  %v1156_v41 = vsel %vm367_vm0, %v1463_v32, 0 }
  0x1c   : > { %326 = vst.msk [vmem:[#allocation2 + $0x71] sm:$0xff] %vm291_vm1, %v289_v43  ;;  %327 = vst.msk [vmem:[#allocation2 + $0x81] sm:$0xff] %vm291_vm1, %v290_v44  ;;  %v1034_v43 = vld [vmem:[#allocation2 + $0x91] sm:$0xff] }
  0x20   : > { %v342_v46 = vld [vmem:[#allocation2 + $0x11] sm:$0xff]  ;;  %v721_v47 = vld [vmem:[#allocation2 + $0x21] sm:$0xff] }
  0x21   : > { %v344_v48 = vld [vmem:[#allocation2 + $0x31] sm:$0xff]  ;;  %v349_v49 = vpack.c.bf16 %v342_v46, %v341_v45  ;;  %v728_v50 = vpack.c.bf16 %v721_v47, %v342_v46  ;;  %v723_v52 = vld [vmem:[#allocation2 + $0x41] sm:$0xff] }
  0x22   : > { %v1849_v51 = vpack.c.bf16 %v344_v48, %v721_v47  ;;  %v1851_v53 = vld [vmem:[#allocation2 + $0x51] sm:$0xff]  ;;  %v729_v55 = vpack.c.bf16 %v723_v52, %v344_v48  ;;  %v823_v59 = vld [vmem:[#allocation2 + $0x22] sm:$0xff] }
  0x23   : > { %v1858_v57 = vpack.c.bf16 %v1851_v53, %v723_v52  ;;  %v822_v58 = vld [vmem:[#allocation2 + $0x12] sm:$0xff]  ;;  %1554 = vmatprep.mubr.msk.bf16.mxu1 %vm291_vm1, %v349_v49  ;;  %1594 = vmatprep.mubr.msk.bf16.mxu0 %vm291_vm1, %v728_v50  ;;  %v1871_v63 = vld [vmem:[#allocation2 + $0x61] sm:$0xff] }
  0x24   : > { %v830_v60 = vpack.c.bf16 %v823_v59, %v822_v58  ;;  %1555 = vmatmul.mubr.msk.bf16.vlgmr.msra.gmra.mrb[0].mxu1 %vm291_vm1, %v1849_v51  ;;  %1595 = vmatmul.mubr.msk.bf16.vlgmr.msra.gmra.mrb[0].mxu0 %vm291_vm1, %v729_v55  ;;  %v1873_v0 = vld [vmem:[#allocation2 + $0x71] sm:$0xff]  ;;  %v825_v7 = vld [vmem:[#allocation2 + $0x42] sm:$0xff]  ;;  %v524_v30 = vpack.c.bf16 %v822_v58, %v516_v28  ;;  %v730_v47 = vpack.c.bf16 %v1871_v63, %v1851_v53 }
  0x25   : > { %1563 = vmatpush3.bf16.msra.mxu1 %v449_v54  ;;  %1603 = vmatpush3.bf16.msra.mxu0 %v849_v56  ;;  %v1878_v4 = vld [vmem:[#allocation2 + $0x10] sm:$0xff]  ;;  %v1884_v5 = vpack.c.bf16 %v1873_v0, %v1871_v63  ;;  %v827_v10 = vld [vmem:[#allocation2 + $0x62] sm:$0xff] }
  0x26   : > { %1558 = vmatprep.mubr.msk.bf16.mxu1 %vm291_vm1, %v1858_v57  ;;  %1604 = vmatprep.mubr.msk.bf16.mxu0 %vm291_vm1, %v830_v60  ;;  %v824_v6 = vld [vmem:[#allocation2 + $0x32] sm:$0xff]  ;;  %v336_v8 = vpack.c.bf16 %v1878_v4, %v328_v2  ;;  %v330_v12 = vld [vmem:[#allocation2 + $0x20] sm:$0xff] }
  0x27   : > { %1715 = vmatprep.subr.msk.bf16.mxu0 %vm367_vm0, %v1453_v61  ;;  %1710 = vmatprep.subr.msk.bf16.mxu1 %vm367_vm0, %v1433_v62  ;;  %v826_v9 = vld [vmem:[#allocation2 + $0x52] sm:$0xff]  ;;  %v831_v11 = vpack.c.bf16 %v825_v7, %v824_v6  ;;  %v332_v16 = vld [vmem:[#allocation2 + $0x40] sm:$0xff]  ;;  %v525_v33 = vpack.c.bf16 %v824_v6, %v823_v59  ;;  %v626_v40 = vpack.c.bf16 %v330_v12, %v1878_v4 }
  0x28   : > { %v331_v13 = vld [vmem:[#allocation2 + $0x30] sm:$0xff]  ;;  %v832_v14 = vpack.c.bf16 %v827_v10, %v826_v9  ;;  %v1896_v21 = vld [vmem:[#allocation2 + $0x82] sm:$0xff]  ;;  %v526_v36 = vpack.c.bf16 %v826_v9, %v825_v7 }
  0x29   : > { %v333_v17 = vld [vmem:[#allocation2 + $0x50] sm:$0xff]  ;;  %v337_v19 = vpack.c.bf16 %v331_v13, %v330_v12  ;;  %v334_v26 = vld [vmem:[#allocation2 + $0x60] sm:$0xff]  ;;  %v627_v42 = vpack.c.bf16 %v332_v16, %v331_v13 }
  0x2a   : > { %v828_v20 = vld [vmem:[#allocation2 + $0x72] sm:$0xff]  ;;  %v338_v22 = vpack.c.bf16 %v333_v17, %v332_v16  ;;  %v931_v34 = vld [vmem:[#allocation2 + $0x80] sm:$0xff]  ;;  %v628_v44 = vpack.c.bf16 %v334_v26, %v333_v17 }
  0x2b   : > { %v833_v25 = vpack.c.bf16 %v1896_v21, %v828_v20  ;;  %v335_v27 = vld [vmem:[#allocation2 + $0x70] sm:$0xff]  ;;  %v936_v38 = vpack.c.bf16 %v932_v35, %v931_v34  ;;  %v527_v39 = vpack.c.bf16 %v828_v20, %v827_v10 }
  0x2c   : > { %1559 = vmatmul.mubr.msk.bf16.gmra.mrb[4].mxu1 %vm291_vm1, %v1884_v5  ;;  %v339_v29 = vpack.c.bf16 %v335_v27, %v334_v26  ;;  %v629_v46 = vpack.c.bf16 %v931_v34, %v335_v27 }
  0x2d   : > { %1564 = vmatprep.mubr.msk.bf16.mxu1 %vm291_vm1, %v336_v8 }
  0x30   : > { %1605 = vmatmul.mubr.msk.bf16.vlgmr.msra.gmra.mrb[0].mxu0 %vm291_vm1, %v831_v11 }
  0x31   : > { %1613 = vmatpush3.bf16.msra.mxu0 %v952_v15  ;;  %1608 = vmatprep.mubr.msk.bf16.mxu0 %vm291_vm1, %v832_v14 }
  0x32   : > { %1716 = vmatprep.subr.msk.bf16.mxu0 %vm367_vm0, %v1458_v18 }
  0x34   : > { %1565 = vmatmul.mubr.msk.bf16.vlgmr.msra.gmra.mrb[0].mxu1 %vm291_vm1, %v337_v19 }
  0x35   : > { %1573 = vmatpush3.bf16.msra.mxu1 %v543_v23  ;;  %1568 = vmatprep.mubr.msk.bf16.mxu1 %vm291_vm1, %v338_v22 }
  0x36   : > { %1711 = vmatprep.subr.msk.bf16.mxu1 %vm367_vm0, %v1438_v24 }
  0x38   : > { %1609 = vmatmul.mubr.msk.bf16.gmra.mrb[4].mxu0 %vm291_vm1, %v833_v25 }
  0x39   : > { %1614 = vmatprep.mubr.msk.bf16.mxu0 %vm291_vm1, %v337_v19 }
  0x3c   : > { %1569 = vmatmul.mubr.msk.bf16.gmra.mrb[4].mxu1 %vm291_vm1, %v339_v29 }
  0x3d   : > { %1574 = vmatprep.mubr.msk.bf16.mxu1 %vm291_vm1, %v524_v30 }
  0x40   : > { %1615 = vmatmul.mubr.msk.bf16.vlgmr.msra.gmra.mrb[0].mxu0 %vm291_vm1, %v338_v22 }
  0x41   : > { %1623 = vmatpush3.bf16.msra.mxu0 %v1054_v31  ;;  %1618 = vmatprep.mubr.msk.bf16.mxu0 %vm291_vm1, %v339_v29 }
  0x42   : > { %1717 = vmatprep.subr.msk.bf16.mxu0 %vm367_vm0, %v1463_v32 }
  0x44   : > { %1575 = vmatmul.mubr.msk.bf16.vlgmr.msra.gmra.mrb[0].mxu1 %vm291_vm1, %v525_v33 }
  0x45   : > { %1583 = vmatpush3.bf16.msra.mxu1 %v645_v37  ;;  %1578 = vmatprep.mubr.msk.bf16.mxu1 %vm291_vm1, %v526_v36 }
  0x46   : > { %1713 = vmatprep.subr.msk.bf16.mxu1 %vm367_vm0, %v1780_v1  ;;  %v1033_v1 = vld [vmem:[#allocation2 + $0x81] sm:$0xff] }
  0x47   : > { %v1038_v45 = vpack.c.bf16 %v1034_v43, %v1033_v1  ;;  %v731_v48 = vpack.c.bf16 %v1033_v1, %v1873_v0 }
  0x48   : > { %1619 = vmatmul.mubr.msk.bf16.gmra.mrb[4].mxu0 %vm291_vm1, %v936_v38 }
  0x49   : > { %1624 = vmatprep.mubr.msk.bf16.mxu0 %vm291_vm1, %v1849_v51 }
  0x4c   : > { %1579 = vmatmul.mubr.msk.bf16.gmra.mrb[4].mxu1 %vm291_vm1, %v527_v39 }
  0x4d   : > { %1584 = vmatprep.mubr.msk.bf16.mxu1 %vm291_vm1, %v626_v40 }
  0x50   : > { %1625 = vmatmul.mubr.msk.bf16.vlgmr.msra.gmra.mrb[0].mxu0 %vm291_vm1, %v1858_v57 }
  0x51   : > { %1633 = vmatpush3.bf16.msra.mxu0 %v1156_v41  ;;  %1628 = vmatprep.mubr.msk.bf16.mxu0 %vm291_vm1, %v1884_v5 }
  0x54   : > { %1585 = vmatmul.mubr.msk.bf16.vlgmr.msra.gmra.mrb[0].mxu1 %vm291_vm1, %v627_v42 }
  0x55   : > { %1643 = vmatpush3.bf16.msra.mxu1 %v1788_v3  ;;  %1588 = vmatprep.mubr.msk.bf16.mxu1 %vm291_vm1, %v628_v44  ;;  %v1136_v3 = vld [vmem:[#allocation2 + $0x92] sm:$0xff] }
  0x56   : > { %v1140_v49 = vpack.c.bf16 %v1136_v3, %v1896_v21 }
  0x58   : > { %1629 = vmatmul.mubr.msk.bf16.gmra.mrb[4].mxu0 %vm291_vm1, %v1038_v45 }
  0x59   : > { %1634 = vmatprep.mubr.msk.bf16.mxu0 %vm291_vm1, %v525_v33 }
  0x5c   : > { %1589 = vmatmul.mubr.msk.bf16.gmra.mrb[4].mxu1 %vm291_vm1, %v629_v46 }
  0x5d   : > { %1598 = vmatprep.mubr.msk.bf16.mxu1 %vm291_vm1, %v730_v47 }
  0x60   : > { %1635 = vmatmul.mubr.msk.bf16.vlgmr.msra.gmra.mrb[0].mxu0 %vm291_vm1, %v526_v36 }
  0x61   : > { %1638 = vmatprep.mubr.msk.bf16.mxu0 %vm291_vm1, %v527_v39 }
  0x68   : > { %1599 = vmatmul.mubr.msk.bf16.vlgmr.msra.gmra.mrb[4].mxu1 %vm291_vm1, %v731_v48  ;;  %1639 = vmatmul.mubr.msk.bf16.gmra.mrb[4].mxu0 %vm291_vm1, %v1140_v49 }
 0x127   : > { %v1586_v50 = vpop.f32.mrb[0].mxu1 }
 0x128   : > { %v681_v51 = vpop.f32.mrb[1].mxu1 }
 0x129   : > { %v1587_v52 = vpop.f32.mrb[2].mxu1 }
 0x12a   : > { %v684_v53 = vpop.f32.mrb[3].mxu1 }
 0x133   : > { %v1636_v54 = vpop.f32.mrb[0].mxu0 }
 0x134   : > { %v1644_v55 = vadd.f32 %v1636_v54, %v1586_v50  ;;  %v1192_v56 = vpop.f32.mrb[1].mxu0 }
 0x135   : > { %v1645_v57 = vadd.f32 %v1192_v56, %v681_v51  ;;  %v1637_v58 = vpop.f32.mrb[2].mxu0 }
 0x136   : > { %v1482_v59 = vpack.c.bf16 %v1644_v55, %v1644_v55  ;;  %v1646_v60 = vadd.f32 %v1637_v58, %v1587_v52  ;;  %v1195_v61 = vpop.f32.mrb[3].mxu0  ;;  %v1296_v2 = vmul.f32 %v1644_v55, %v1644_v55  ;;  %v1275_v11 = vsel %vm291_vm1, %v1644_v55, 0.0 }
 0x137   : > { %v1480_v62 = vpack.c.bf16 %v1645_v57, %v1645_v57  ;;  %v1294_v63 = vmul.f32 %v1645_v57, %v1645_v57  ;;  %v1647_v0 = vadd.f32 %v1195_v61, %v684_v53  ;;  %v1272_v5 = vsel %vm291_vm1, %v1645_v57, 0.0 }
 0x138   : > { %1266 = vst.msk [vmem:[%s1954_s25 + $0x8] sm:$0xf] %vm1263_vm4, %v1482_v59  ;;  %v1483_v4 = vpack.c.bf16 %v1646_v60, %v1646_v60  ;;  %v1297_v9 = vmul.f32 %v1646_v60, %v1646_v60  ;;  %v1305_v21 = vsel %vm291_vm1, %v1296_v2, 0.0  ;;  %v1277_v25 = vsel %vm291_vm1, %v1646_v60, 0.0 }
 0x139   : > { %1264 = vst.msk [vmem:[%s1954_s25] sm:$0xf] %vm1263_vm4, %v1480_v62  ;;  %v1481_v6 = vpack.c.bf16 %v1647_v0, %v1647_v0  ;;  %v1273_v7 = vsel %vm291_vm1, %v1647_v0, 0.0  ;;  %v1295_v8 = vmul.f32 %v1647_v0, %v1647_v0  ;;  %v1302_v12 = vsel %vm291_vm1, %v1294_v63, 0.0 }
 0x13a   : > { %1267 = vst.msk [vmem:[%s1954_s25 + $0xc] sm:$0xf] %vm1263_vm4, %v1483_v4  ;;  %v1274_v10 = vadd.f32 %v1273_v7, %v1272_v5  ;;  %v1307_v26 = vsel %vm291_vm1, %v1297_v9, 0.0 }
 0x13b   : > { %1265 = vst.msk [vmem:[%s1954_s25 + $0x4] sm:$0xf] %vm1263_vm4, %v1481_v6  ;;  %v1303_v13 = vsel %vm291_vm1, %v1295_v8, 0.0  ;;  %v1600_v14 = vpop.f32.mrb[4].mxu1  ;;  %v1640_v15 = vpop.f32.mrb[4].mxu0 }
 0x13c   : > { %v1276_v16 = vadd.f32 %v1275_v11, %v1274_v10  ;;  %v1304_v17 = vadd.f32 %v1303_v13, %v1302_v12  ;;  %v1648_v18 = vadd.f32 %v1640_v15, %v1600_v14  ;;  %v799_v19 = vpop.f32.mrb[5].mxu1  ;;  %v1208_v20 = vpop.f32.mrb[5].mxu0 }
 0x13d   : > { %v1649_v22 = vadd.f32 %v1208_v20, %v799_v19  ;;  %v1601_v23 = vpop.f32.mrb[6].mxu1  ;;  %v1641_v24 = vpop.f32.mrb[6].mxu0 }
 0x13e   : > { %v1306_v27 = vadd.f32 %v1305_v21, %v1304_v17  ;;  %v1486_v28 = vpack.c.bf16 %v1648_v18, %v1648_v18  ;;  %v802_v29 = vpop.f32.mrb[7].mxu1  ;;  %v1211_v30 = vpop.f32.mrb[7].mxu0  ;;  %v1278_v32 = vadd.f32 %v1277_v25, %v1276_v16  ;;  %v1650_v36 = vadd.f32 %v1641_v24, %v1601_v23 }
 0x13f   : > { %v1484_v31 = vpack.c.bf16 %v1649_v22, %v1649_v22  ;;  %v1279_v33 = vsel %vm291_vm1, %v1649_v22, 0.0  ;;  %v1298_v34 = vmul.f32 %v1649_v22, %v1649_v22  ;;  %v1651_v37 = vadd.f32 %v1211_v30, %v802_v29 }
 0x140   : > { %1270 = vst.msk [vmem:[%s1954_s25 + $0x18] sm:$0xf] %vm1263_vm4, %v1486_v28  ;;  %v1308_v35 = vadd.f32 %v1307_v26, %v1306_v27  ;;  %v1280_v38 = vadd.f32 %v1279_v33, %v1278_v32  ;;  %v1487_v41 = vpack.c.bf16 %v1650_v36, %v1650_v36  ;;  %v1300_v42 = vmul.f32 %v1648_v18, %v1648_v18 }
 0x141   : > { %1268 = vst.msk [vmem:[%s1954_s25 + $0x10] sm:$0xf] %vm1263_vm4, %v1484_v31  ;;  %v1309_v39 = vsel %vm291_vm1, %v1298_v34, 0.0  ;;  %v1485_v1 = vpack.c.bf16 %v1651_v37, %v1651_v37  ;;  %v1281_v43 = vsel %vm291_vm1, %v1651_v37, 0.0  ;;  %v1299_v44 = vmul.f32 %v1651_v37, %v1651_v37 }
 0x142   : > { %v1310_v40 = vadd.f32 %v1309_v39, %v1308_v35  ;;  %1271 = vst.msk [vmem:[%s1954_s25 + $0x1c] sm:$0xf] %vm1263_vm4, %v1487_v41  ;;  %v1282_v45 = vadd.f32 %v1281_v43, %v1280_v38  ;;  %v1283_v46 = vsel %vm291_vm1, %v1648_v18, 0.0  ;;  %v1301_v47 = vmul.f32 %v1650_v36, %v1650_v36 }
 0x143   : > { %1269 = vst.msk [vmem:[%s1954_s25 + $0x14] sm:$0xf] %vm1263_vm4, %v1485_v1  ;;  %v1311_v3 = vsel %vm291_vm1, %v1299_v44, 0.0  ;;  %v1313_v50 = vsel %vm291_vm1, %v1300_v42, 0.0  ;;  %v1285_v51 = vsel %vm291_vm1, %v1650_v36, 0.0 }
 0x144   : > { %v1284_v48 = vadd.f32 %v1283_v46, %v1282_v45  ;;  %v1312_v49 = vadd.f32 %v1311_v3, %v1310_v40  ;;  %v1315_v54 = vsel %vm291_vm1, %v1301_v47, 0.0 }
 0x146   : > { %v1286_v52 = vadd.f32 %v1285_v51, %v1284_v48  ;;  %v1314_v53 = vadd.f32 %v1313_v50, %v1312_v49 }
 0x148   : > { %v1287_v55 = vrot.slane %v1286_v52, 4  ;;  %v1316_v56 = vadd.f32 %v1315_v54, %v1314_v53 }
 0x14a   : > { %v1288_v57 = vadd.f32 %v1287_v55, %v1286_v52  ;;  %v1317_v58 = vrot.slane %v1316_v56, 4 }
 0x14c   : > { %v1289_v59 = vrot.slane %v1288_v57, 2  ;;  %v1318_v60 = vadd.f32 %v1317_v58, %v1316_v56 }
 0x14e   : > { %v1290_v61 = vadd.f32 %v1289_v59, %v1288_v57  ;;  %v1319_v62 = vrot.slane %v1318_v60, 2 }
 0x150   : > { %v1291_v63 = vrot.slane %v1290_v61, 1  ;;  %v1320_v0 = vadd.f32 %v1319_v62, %v1318_v60 }
 0x152   : > { %v1292_v2 = vadd.f32 %v1291_v63, %v1290_v61  ;;  %v1321_v4 = vrot.slane %v1320_v0, 1 }
 0x154   : > { %v1322_v5 = vadd.f32 %v1321_v4, %v1320_v0  ;;  %1324 = vst.msk [vmem:[%s235_s29] sm:$0x1] %vm298_vm3, %v1292_v2 }
 0x156   : > { %1325 = vst.msk [vmem:[%s235_s29 + $0x1] sm:$0x1] %vm298_vm3, %v1322_v5 }
 0x157 PF: > { %s16_s18 = sadd.s32 1, %s1733_s18  }
 0x158   : > { %p13_p4 = scmp.ge.s32.totalorder %s16_s18, 4  }
 0x15a   :  { %15 = sbr.rel (!%p13_p4) target bundleno = 1 (0x1), region = 89 }

// kernel: _network_block_fwd.6
= control target key start
LH: loop header
LB: loop body
LE: loop exit
PB: predicated region body
PF: predicated region fallthrough
CT: control target
= control target key end

     0   :  { %s2224_s24 = smov 0   ;;  %s2589_s0 = inlined_call_operand.vmem [shape: f32[2,256,4], index: 0, kind: input, shape index: {}]   ;;  %s2590_s1 = inlined_call_operand.vmem [shape: f32[1,4], index: 1, kind: input, shape index: {}]   ;;  %s2591_s2 = inlined_call_operand.vmem [shape: f32[1,4], index: 2, kind: input, shape index: {}]   ;;  %s2592_s3 = inlined_call_operand.vmem [shape: bf16[9,4,8], index: 3, kind: input, shape index: {}]   ;;  %s2593_s4 = inlined_call_operand.vmem [shape: bf16[4,8], index: 4, kind: input, shape index: {}]   ;;  %s2594_s5 = inlined_call_operand.vmem [shape: bf16[2,64,8], index: 5, kind: output, shape index: {0}]   ;;  %s2595_s6 = inlined_call_operand.vmem [shape: bf16[2,64,8], index: 6, kind: output, shape index: {1}]   ;;  %s2596_s7 = inlined_call_operand.vmem [shape: f32[2,2,8], index: 7, kind: output, shape index: {2}]  }
   0x1 LB: > { %s1843_s25 = sadd.s32 4294967295, %s2181_s24   ;;  %p1847_p0 = scmp.ge.s32.totalorder %s2181_s24, 1  ;;  %s2181_s24 = sphi %s2224_s24, %s18_s24  }
   0x2   : > { %p242_p1 = scmp.lt.s32.totalorder %s2181_s24, 3 }
   0x4   : > { %p243_p2 = pnand %p1847_p0, %p242_p1 }
   0x5   : > { %vm578_vm0 = vcmask (!%p243_p2), 1041408   ;;  %v1876_v0 = vld [vmem:[%s2592_s3 + $0x8] sm:$0x3] (!%p243_p2)  ;;  %v1857_v1 = vld [vmem:[%s2592_s3 + $0x2] sm:$0x3] (!%p243_p2)  ;;  %p283_p3 = scmp.lt.s32.totalorder (!%p243_p2), %s1843_s25, 1 }
   0x6   : > { %246 = sbr.rel (%p243_p2) target bundleno = 358 (0x166), region = 40  ;;  %2160 = vmatprep.subr.msk.bf16.mxu0 (!%p243_p2), %vm578_vm0, %v1876_v0  ;;  %2156 = vmatprep.subr.msk.bf16.mxu1 (!%p243_p2), %vm578_vm0, %v1857_v1  ;;  %v981_v2 = vsel (!%p243_p2), %vm578_vm0, %v1876_v0, 0  ;;  %v580_v3 = vsel (!%p243_p2), %vm578_vm0, %v1857_v1, 0  ;;  %vm445_vm1 = vcmask (!%p243_p2), 31744   ;;  %vm467_vm2 = vcmask (!%p243_p2), 24576  }
   0x7   : > { %2033 = vmatpush3.bf16.msra.mxu0 (!%p243_p2), %v981_v2  ;;  %1993 = vmatpush3.bf16.msra.mxu1 (!%p243_p2), %v580_v3  ;;  %v1881_v4 = vld [vmem:[%s2592_s3 + $0xa] sm:$0x3] (!%p243_p2)  ;;  %v2183_v5 = vmov (!%p243_p2), 0.0   ;;  %v543_v6 = vld [vmem:[%s2592_s3] sm:$0x3] (!%p243_p2)  ;;  %vm465_vm3 = vcmask (!%p243_p2), 25600  }
   0x8   : > { %503 = vst.msk [vmem:[#allocation2] sm:$0xff] (!%p243_p2), %vm445_vm1, %v2183_v5  ;;  %504 = vst.msk [vmem:[#allocation2 + $0x8] sm:$0xff] (!%p243_p2), %vm445_vm1, %v2183_v5  ;;  %2161 = vmatprep.subr.msk.bf16.mxu0 (!%p243_p2), %vm578_vm0, %v1881_v4  ;;  %v2273_v7 = vld [vmem:[%s2590_s1] ss:$0 sm:$0xff] (!%p243_p2)  ;;  %2157 = vmatprep.subr.msk.bf16.mxu1 (!%p243_p2), %vm578_vm0, %v543_v6  ;;  %v2297_v18 = vsel (!%p243_p2), %vm578_vm0, %v1881_v4, 0  ;;  %v2306_v25 = vsel (!%p243_p2), %vm578_vm0, %v543_v6, 0 }
   0x9   : > { %468 = vst.msk [vmem:[#allocation3] sm:$0x1] (!%p243_p2), %vm467_vm2, %v2183_v5  ;;  %469 = vst.msk [vmem:[#allocation3 + $0x18] sm:$0x1] (!%p243_p2), %vm467_vm2, %v2183_v5  ;;  %v2285_v8 = vld [vmem:[%s2591_s2] ss:$0 sm:$0xff] (!%p243_p2) }
   0xa   : > { %470 = vst.msk [vmem:[#allocation3 + $0x30] sm:$0x1] (!%p243_p2), %vm467_vm2, %v2183_v5  ;;  %471 = vst.msk [vmem:[#allocation3 + $0x48] sm:$0x1] (!%p243_p2), %vm467_vm2, %v2183_v5  ;;  %vm1527_vm4 = vcmask (!%p243_p2), 60416   ;;  %vm1536_vm5 = vcmask (!%p243_p2), 64512  }
   0xb   : > { %472 = vst.msk [vmem:[#allocation3 + $0x60] sm:$0x1] (!%p243_p2), %vm467_vm2, %v2183_v5  ;;  %473 = vst.msk [vmem:[#allocation3 + $0x78] sm:$0x1] (!%p243_p2), %vm467_vm2, %v2183_v5  ;;  %vm1698_vm6 = vcmask (!%p243_p2), 57344  }
   0xc   : > { %474 = vst.msk [vmem:[#allocation3 + $0x90] sm:$0x1] (!%p243_p2), %vm467_vm2, %v2183_v5  ;;  %475 = vst.msk [vmem:[#allocation3 + $0xa8] sm:$0x1] (!%p243_p2), %vm467_vm2, %v2183_v5 }
   0xd   : > { %s2598_s25 = smov (!%p283_p3, %s1843_s25), 1  ;;  %507 = vst.msk [vmem:[#allocation2 + $0x18] sm:$0x1] %vm467_vm2, %v2183_v5  ;;  %508 = vst.msk [vmem:[#allocation2 + $0x30] sm:$0x1] %vm467_vm2, %v2183_v5 }
   0xe   : > { %509 = vst.msk [vmem:[#allocation2 + $0x48] sm:$0x1] %vm467_vm2, %v2183_v5  ;;  %510 = vst.msk [vmem:[#allocation2 + $0x60] sm:$0x1] %vm467_vm2, %v2183_v5  ;;  %s1923_s11 = sshll.u32 %s2598_s25, 8  ;;  %s1924_s10 = sshll.u32 %s2598_s25, 5 }
   0xf   : > { %511 = vst.msk [vmem:[#allocation2 + $0x78] sm:$0x1] %vm467_vm2, %v2183_v5  ;;  %512 = vst.msk [vmem:[#allocation2 + $0x90] sm:$0x1] %vm467_vm2, %v2183_v5  ;;  %s2280_s16 = scalar_lea.vmem %s2589_s0, %s1923_s11  ;;  %s2525_s13 = scalar_lea.vmem %s2595_s6, %s1924_s10 }
  0x10   : > { %513 = vst.msk [vmem:[#allocation2 + $0xa8] sm:$0x1] %vm467_vm2, %v2183_v5  ;;  %514 = vst.msk [vmem:[#allocation2 + $0xc0] sm:$0x1] %vm467_vm2, %v2183_v5  ;;  %v305_v9 = vld [vmem:[%s2280_s16 + $0x10] sm:$0xff]  ;;  %v306_v10 = vld [vmem:[%s2280_s16 + $0x18] sm:$0xff] }
  0x11   : > { %506 = vst.msk [vmem:[#allocation2] sm:$0x1] %vm467_vm2, %v2183_v5  ;;  %v303_v11 = vld [vmem:[%s2280_s16] sm:$0xff]  ;;  %v344_v12 = vmul.f32 %v2273_v7, %v305_v9  ;;  %v345_v13 = vmul.f32 %v2273_v7, %v306_v10  ;;  %v304_v14 = vld [vmem:[%s2280_s16 + $0x8] sm:$0xff]  ;;  %v309_v22 = vld [vmem:[%s2280_s16 + $0x30] sm:$0xff]  ;;  %s1854_s17 = sshll.u32 %s2598_s25, 1 }
  0x12   : > { %505 = vst.msk [vmem:[#allocation2 + $0x10] sm:$0x3] %vm465_vm3, %v2183_v5  ;;  %v307_v15 = vld [vmem:[%s2280_s16 + $0x20] sm:$0xff]  ;;  %v308_v16 = vld [vmem:[%s2280_s16 + $0x28] sm:$0xff]  ;;  %v342_v17 = vmul.f32 %v2273_v7, %v303_v11  ;;  %v343_v19 = vmul.f32 %v2273_v7, %v304_v14  ;;  %v310_v23 = vld [vmem:[%s2280_s16 + $0x38] sm:$0xff]  ;;  %v348_v30 = vmul.f32 %v2273_v7, %v309_v22  ;;  %s301_s20 = scalar_lea.vmem %s2596_s7, %s1854_s17 }
  0x13   : > { %v346_v20 = vmul.f32 %v2273_v7, %v307_v15  ;;  %v347_v21 = vmul.f32 %v2273_v7, %v308_v16  ;;  %v313_v24 = vld [vmem:[%s2280_s16 + $0x50] sm:$0xff]  ;;  %v383_v26 = vadd.f32 %v2285_v8, %v344_v12  ;;  %v384_v27 = vadd.f32 %v2285_v8, %v345_v13  ;;  %v314_v29 = vld [vmem:[%s2280_s16 + $0x58] sm:$0xff]  ;;  %v311_v35 = vld [vmem:[%s2280_s16 + $0x40] sm:$0xff] }
  0x14   : > { %v381_v28 = vadd.f32 %v2285_v8, %v342_v17  ;;  %v382_v31 = vadd.f32 %v2285_v8, %v343_v19  ;;  %v349_v34 = vmul.f32 %v2273_v7, %v310_v23  ;;  %v352_v39 = vmul.f32 %v2273_v7, %v313_v24  ;;  %v312_v40 = vld [vmem:[%s2280_s16 + $0x48] sm:$0xff]  ;;  %v315_v41 = vld [vmem:[%s2280_s16 + $0x60] sm:$0xff]  ;;  %v317_v55 = vld [vmem:[%s2280_s16 + $0x70] sm:$0xff] }
  0x15   : > { %v385_v32 = vadd.f32 %v2285_v8, %v346_v20  ;;  %v386_v33 = vadd.f32 %v2285_v8, %v347_v21  ;;  %v415_v36 = vmax.f32 %v383_v26, 0.0  ;;  %v416_v37 = vmax.f32 %v384_v27, 0.0  ;;  %v316_v42 = vld [vmem:[%s2280_s16 + $0x68] sm:$0xff]  ;;  %v318_v56 = vld [vmem:[%s2280_s16 + $0x78] sm:$0xff]  ;;  %v321_v57 = vld [vmem:[%s2280_s16 + $0x90] sm:$0xff] }
  0x16   : > { %v413_v38 = vmax.f32 %v381_v28, 0.0  ;;  %v414_v43 = vmax.f32 %v382_v31, 0.0  ;;  %v353_v46 = vmul.f32 %v2273_v7, %v314_v29  ;;  %v387_v47 = vadd.f32 %v2285_v8, %v348_v30  ;;  %v322_v62 = vld [vmem:[%s2280_s16 + $0x98] sm:$0xff]  ;;  %v319_v3 = vld [vmem:[%s2280_s16 + $0x80] sm:$0xff]  ;;  %v320_v10 = vld [vmem:[%s2280_s16 + $0x88] sm:$0xff] }
  0x17   : > { %v417_v44 = vmax.f32 %v385_v32, 0.0  ;;  %v418_v45 = vmax.f32 %v386_v33, 0.0  ;;  %487 = vst.msk [vmem:[#allocation2 + $0x19] sm:$0xff] %vm445_vm1, %v415_v36  ;;  %488 = vst.msk [vmem:[#allocation2 + $0x21] sm:$0xff] %vm445_vm1, %v416_v37  ;;  %v388_v48 = vadd.f32 %v2285_v8, %v349_v34  ;;  %v391_v49 = vadd.f32 %v2285_v8, %v352_v39  ;;  %v323_v11 = vld [vmem:[%s2280_s16 + $0xa0] sm:$0xff]  ;;  %v324_v12 = vld [vmem:[%s2280_s16 + $0xa8] sm:$0xff] }
  0x18   : > { %446 = vst.msk [vmem:[#allocation3 + $0x1] sm:$0xff] %vm445_vm1, %v413_v38  ;;  %v350_v50 = vmul.f32 %v2273_v7, %v311_v35  ;;  %447 = vst.msk [vmem:[#allocation3 + $0x9] sm:$0xff] %vm445_vm1, %v414_v43  ;;  %v392_v51 = vadd.f32 %v2285_v8, %v353_v46  ;;  %v351_v52 = vmul.f32 %v2273_v7, %v312_v40  ;;  %v419_v58 = vmax.f32 %v387_v47, 0.0  ;;  %v545_v13 = vld [vmem:[#allocation2 + $0x1] ss:$2 sm:$0xff]  ;;  %v325_v23 = vld [vmem:[%s2280_s16 + $0xb0] sm:$0xff] }
  0x19   : > { %448 = vst.msk [vmem:[#allocation3 + $0x19] sm:$0xff] %vm445_vm1, %v417_v44  ;;  %449 = vst.msk [vmem:[#allocation3 + $0x21] sm:$0xff] %vm445_vm1, %v418_v45  ;;  %v354_v53 = vmul.f32 %v2273_v7, %v315_v41  ;;  %v355_v54 = vmul.f32 %v2273_v7, %v316_v42  ;;  %v420_v59 = vmax.f32 %v388_v48, 0.0  ;;  %v423_v60 = vmax.f32 %v391_v49, 0.0  ;;  %v326_v24 = vld [vmem:[%s2280_s16 + $0xb8] sm:$0xff]  ;;  %v329_v31 = vld [vmem:[%s2280_s16 + $0xd0] sm:$0xff] }
  0x1a   : > { %v389_v61 = vadd.f32 %v2285_v8, %v350_v50  ;;  %v424_v63 = vmax.f32 %v392_v51, 0.0  ;;  %v390_v0 = vadd.f32 %v2285_v8, %v351_v52  ;;  %489 = vst.msk [vmem:[#allocation2 + $0x31] sm:$0xff] %vm445_vm1, %v419_v58  ;;  %v356_v5 = vmul.f32 %v2273_v7, %v317_v55  ;;  %v330_v32 = vld [vmem:[%s2280_s16 + $0xd8] sm:$0xff]  ;;  %v327_v43 = vld [vmem:[%s2280_s16 + $0xc0] sm:$0xff]  ;;  %v328_v48 = vld [vmem:[%s2280_s16 + $0xc8] sm:$0xff] }
  0x1b   : > { %v393_v1 = vadd.f32 %v2285_v8, %v354_v53  ;;  %v394_v2 = vadd.f32 %v2285_v8, %v355_v54  ;;  %490 = vst.msk [vmem:[#allocation2 + $0x39] sm:$0xff] %vm445_vm1, %v420_v59  ;;  %491 = vst.msk [vmem:[#allocation2 + $0x49] sm:$0xff] %vm445_vm1, %v423_v60  ;;  %v357_v6 = vmul.f32 %v2273_v7, %v318_v56  ;;  %v331_v54 = vld [vmem:[%s2280_s16 + $0xe0] sm:$0xff]  ;;  %v332_v55 = vld [vmem:[%s2280_s16 + $0xe8] sm:$0xff] }
  0x1c   : > { %v421_v4 = vmax.f32 %v389_v61, 0.0  ;;  %v360_v9 = vmul.f32 %v2273_v7, %v321_v57  ;;  %492 = vst.msk [vmem:[#allocation2 + $0x51] sm:$0xff] %vm445_vm1, %v424_v63  ;;  %v422_v14 = vmax.f32 %v390_v0, 0.0  ;;  %v361_v17 = vmul.f32 %v2273_v7, %v322_v62 }
  0x1d   : > { %v425_v15 = vmax.f32 %v393_v1, 0.0  ;;  %v426_v16 = vmax.f32 %v394_v2, 0.0  ;;  %v395_v19 = vadd.f32 %v2285_v8, %v356_v5  ;;  %v396_v20 = vadd.f32 %v2285_v8, %v357_v6 }
  0x1e   : > { %450 = vst.msk [vmem:[#allocation3 + $0x31] sm:$0xff] %vm445_vm1, %v421_v4  ;;  %v399_v21 = vadd.f32 %v2285_v8, %v360_v9  ;;  %v358_v22 = vmul.f32 %v2273_v7, %v319_v3  ;;  %v547_v26 = vld [vmem:[#allocation2 + $0x19] ss:$2 sm:$0xff]  ;;  %451 = vst.msk [vmem:[#allocation3 + $0x39] sm:$0xff] %vm445_vm1, %v422_v14  ;;  %v400_v27 = vadd.f32 %v2285_v8, %v361_v17 }
  0x1f   : > { %452 = vst.msk [vmem:[#allocation3 + $0x49] sm:$0xff] %vm445_vm1, %v425_v15  ;;  %453 = vst.msk [vmem:[#allocation3 + $0x51] sm:$0xff] %vm445_vm1, %v426_v16  ;;  %v359_v28 = vmul.f32 %v2273_v7, %v320_v10  ;;  %v362_v29 = vmul.f32 %v2273_v7, %v323_v11  ;;  %v363_v30 = vmul.f32 %v2273_v7, %v324_v12  ;;  %v947_v34 = vld [vmem:[#allocation3 + $0x1] ss:$2 sm:$0xff]  ;;  %v427_v36 = vmax.f32 %v395_v19, 0.0 }
  0x20   : > { %v560_v33 = vpack.c.bf16 %v547_v26, %v545_v13  ;;  %v949_v35 = vld [vmem:[#allocation3 + $0x19] ss:$2 sm:$0xff]  ;;  %v428_v37 = vmax.f32 %v396_v20, 0.0  ;;  %v397_v38 = vadd.f32 %v2285_v8, %v358_v22  ;;  %v431_v40 = vmax.f32 %v399_v21, 0.0  ;;  %v2412_v13 = vld [vmem:[%s2592_s3 + $0x4] sm:$0x3] }
  0x21   : > { %v2374_v39 = vpack.c.bf16 %v949_v35, %v947_v34  ;;  %v432_v41 = vmax.f32 %v400_v27, 0.0  ;;  %v398_v42 = vadd.f32 %v2285_v8, %v359_v28  ;;  %493 = vst.msk [vmem:[#allocation2 + $0x61] sm:$0xff] %vm445_vm1, %v427_v36  ;;  %v401_v44 = vadd.f32 %v2285_v8, %v362_v29  ;;  %v2423_v19 = vld [vmem:[%s2592_s3 + $0xc] sm:$0x3]  ;;  %v333_v21 = vld [vmem:[%s2280_s16 + $0xf0] sm:$0xff]  ;;  %v334_v22 = vld [vmem:[%s2280_s16 + $0xf8] sm:$0xff]  ;;  %s2534_s16 = scalar_lea.vmem %s2594_s5, %s1924_s10 }
  0x22   : > { %1994 = vmatprep.mubr.msk.bf16.mxu1 %vm445_vm1, %v560_v33  ;;  %494 = vst.msk [vmem:[#allocation2 + $0x69] sm:$0xff] %vm445_vm1, %v428_v37  ;;  %v402_v45 = vadd.f32 %v2285_v8, %v363_v30  ;;  %v429_v46 = vmax.f32 %v397_v38, 0.0  ;;  %v364_v47 = vmul.f32 %v2273_v7, %v325_v23  ;;  %v549_v49 = vld [vmem:[#allocation2 + $0x31] ss:$2 sm:$0xff]  ;;  %495 = vst.msk [vmem:[#allocation2 + $0x79] sm:$0xff] %vm445_vm1, %v431_v40 }
  0x23   : > { %2034 = vmatprep.mubr.msk.bf16.mxu0 %vm445_vm1, %v2374_v39  ;;  %496 = vst.msk [vmem:[#allocation2 + $0x81] sm:$0xff] %vm445_vm1, %v432_v41  ;;  %v430_v50 = vmax.f32 %v398_v42, 0.0  ;;  %v365_v51 = vmul.f32 %v2273_v7, %v326_v24  ;;  %v368_v52 = vmul.f32 %v2273_v7, %v329_v31  ;;  %v369_v53 = vmul.f32 %v2273_v7, %v330_v32  ;;  %v551_v56 = vld [vmem:[#allocation2 + $0x49] ss:$2 sm:$0xff]  ;;  %v524_v31 = vld [vmem:[#allocation2] ss:$2 sm:$0xff] }
  0x24   : > { %v433_v57 = vmax.f32 %v401_v44, 0.0  ;;  %v434_v58 = vmax.f32 %v402_v45, 0.0  ;;  %454 = vst.msk [vmem:[#allocation3 + $0x61] sm:$0xff] %vm445_vm1, %v429_v46  ;;  %v403_v59 = vadd.f32 %v2285_v8, %v364_v47  ;;  %v366_v60 = vmul.f32 %v2273_v7, %v327_v43  ;;  %v526_v32 = vld [vmem:[#allocation2 + $0x18] ss:$2 sm:$0xff] }
  0x25   : > { %v561_v61 = vpack.c.bf16 %v551_v56, %v549_v49  ;;  %455 = vst.msk [vmem:[#allocation3 + $0x69] sm:$0xff] %vm445_vm1, %v430_v50  ;;  %v404_v62 = vadd.f32 %v2285_v8, %v365_v51  ;;  %v407_v63 = vadd.f32 %v2285_v8, %v368_v52  ;;  %v408_v0 = vadd.f32 %v2285_v8, %v369_v53  ;;  %v951_v1 = vld [vmem:[#allocation3 + $0x31] ss:$2 sm:$0xff]  ;;  %v1057_v36 = vld [vmem:[#allocation3 + $0x2] ss:$2 sm:$0xff] }
  0x26   : > { %v953_v2 = vld [vmem:[#allocation3 + $0x49] ss:$2 sm:$0xff]  ;;  %456 = vst.msk [vmem:[#allocation3 + $0x79] sm:$0xff] %vm445_vm1, %v433_v57  ;;  %457 = vst.msk [vmem:[#allocation3 + $0x81] sm:$0xff] %vm445_vm1, %v434_v58  ;;  %v435_v3 = vmax.f32 %v403_v59, 0.0  ;;  %v367_v4 = vmul.f32 %v2273_v7, %v328_v48  ;;  %v370_v5 = vmul.f32 %v2273_v7, %v331_v54  ;;  %v371_v6 = vmul.f32 %v2273_v7, %v332_v55 }
  0x27   : > { %1995 = vmatmul.mubr.msk.bf16.vlgmr.msra.gmra.mrb[0].mxu1 %vm445_vm1, %v561_v61  ;;  %v2407_v9 = vpack.c.bf16 %v953_v2, %v951_v1  ;;  %v436_v10 = vmax.f32 %v404_v62, 0.0  ;;  %v439_v11 = vmax.f32 %v407_v63, 0.0  ;;  %v440_v12 = vmax.f32 %v408_v0, 0.0  ;;  %v1059_v42 = vld [vmem:[#allocation3 + $0x1a] ss:$2 sm:$0xff] }
  0x28   : > { %497 = vst.msk [vmem:[#allocation2 + $0x91] sm:$0xff] %vm445_vm1, %v435_v3  ;;  %v405_v14 = vadd.f32 %v2285_v8, %v366_v60  ;;  %v406_v15 = vadd.f32 %v2285_v8, %v367_v4  ;;  %v409_v16 = vadd.f32 %v2285_v8, %v370_v5  ;;  %v410_v17 = vadd.f32 %v2285_v8, %v371_v6  ;;  %v530_v49 = vld [vmem:[#allocation2 + $0x48] ss:$2 sm:$0xff]  ;;  %v1871_v60 = vld [vmem:[%s2592_s3 + $0x6] sm:$0x3] }
  0x29   : > { %2003 = vmatpush3.bf16.msra.mxu1 %v2306_v25  ;;  %2035 = vmatmul.mubr.msk.bf16.vlgmr.msra.gmra.mrb[0].mxu0 %vm445_vm1, %v2407_v9  ;;  %v553_v20 = vld [vmem:[#allocation2 + $0x61] ss:$2 sm:$0xff]  ;;  %498 = vst.msk [vmem:[#allocation2 + $0x99] sm:$0xff] %vm445_vm1, %v436_v10  ;;  %499 = vst.msk [vmem:[#allocation2 + $0xa9] sm:$0xff] %vm445_vm1, %v439_v11  ;;  %v373_v33 = vmul.f32 %v2273_v7, %v334_v22  ;;  %v539_v41 = vpack.c.bf16 %v526_v32, %v524_v31  ;;  %v532_v50 = vld [vmem:[#allocation2 + $0x60] ss:$2 sm:$0xff] }
  0x2a   : > { %500 = vst.msk [vmem:[#allocation2 + $0xb1] sm:$0xff] %vm445_vm1, %v440_v12  ;;  %2043 = vmatpush3.bf16.msra.mxu0 %v2297_v18  ;;  %v555_v25 = vld [vmem:[#allocation2 + $0x79] ss:$2 sm:$0xff]  ;;  %v437_v23 = vmax.f32 %v405_v14, 0.0  ;;  %v438_v24 = vmax.f32 %v406_v15, 0.0  ;;  %v441_v26 = vmax.f32 %v409_v16, 0.0  ;;  %2158 = vmatprep.subr.msk.bf16.mxu1 %vm578_vm0, %v2412_v13  ;;  %v372_v18 = vmul.f32 %v2273_v7, %v333_v21 }
  0x2b   : > { %v442_v27 = vmax.f32 %v410_v17, 0.0  ;;  %v562_v28 = vpack.c.bf16 %v555_v25, %v553_v20  ;;  %2162 = vmatprep.subr.msk.bf16.mxu0 %vm578_vm0, %v2423_v19  ;;  %v412_v37 = vadd.f32 %v2285_v8, %v373_v33  ;;  %v1072_v47 = vpack.c.bf16 %v1059_v42, %v1057_v36  ;;  %v534_v51 = vld [vmem:[#allocation2 + $0x78] ss:$2 sm:$0xff]  ;;  %v1891_v3 = vld [vmem:[%s2592_s3 + $0xe] sm:$0x3] }
  0x2c   : > { %v955_v29 = vld [vmem:[#allocation3 + $0x61] ss:$2 sm:$0xff]  ;;  %458 = vst.msk [vmem:[#allocation3 + $0x91] sm:$0xff] %vm445_vm1, %v437_v23  ;;  %459 = vst.msk [vmem:[#allocation3 + $0x99] sm:$0xff] %vm445_vm1, %v438_v24  ;;  %v411_v35 = vadd.f32 %v2285_v8, %v372_v18  ;;  %v528_v8 = vld [vmem:[#allocation2 + $0x30] ss:$2 sm:$0xff]  ;;  %v541_v55 = vpack.c.bf16 %v534_v51, %v532_v50 }
  0x2d   : > { %460 = vst.msk [vmem:[#allocation3 + $0xa9] sm:$0xff] %vm445_vm1, %v441_v26  ;;  %461 = vst.msk [vmem:[#allocation3 + $0xb1] sm:$0xff] %vm445_vm1, %v442_v27  ;;  %1998 = vmatprep.mubr.msk.bf16.mxu1 %vm445_vm1, %v562_v28  ;;  %v957_v30 = vld [vmem:[#allocation3 + $0x79] ss:$2 sm:$0xff]  ;;  %v444_v45 = vmax.f32 %v412_v37, 0.0  ;;  %v540_v52 = vpack.c.bf16 %v530_v49, %v528_v8  ;;  %v762_v58 = vsel %vm578_vm0, %v2412_v13, 0 }
  0x2e   : > { %v2444_v34 = vpack.c.bf16 %v957_v30, %v955_v29  ;;  %v443_v44 = vmax.f32 %v411_v35, 0.0  ;;  %v1061_v53 = vld [vmem:[#allocation3 + $0x32] ss:$2 sm:$0xff]  ;;  %v1065_v56 = vld [vmem:[#allocation3 + $0x62] ss:$2 sm:$0xff]  ;;  %v1200_v62 = vsel %vm578_vm0, %v2423_v19, 0 }
  0x2f   : > { %502 = vst.msk [vmem:[#allocation2 + $0xc9] sm:$0xff] %vm445_vm1, %v444_v45  ;;  %v1063_v54 = vld [vmem:[#allocation3 + $0x4a] ss:$2 sm:$0xff]  ;;  %v1067_v57 = vld [vmem:[#allocation3 + $0x7a] ss:$2 sm:$0xff]  ;;  %v871_v26 = vsel %vm578_vm0, %v1871_v60, 0 }
  0x30   : > { %2038 = vmatprep.mubr.msk.bf16.mxu0 %vm445_vm1, %v2444_v34  ;;  %v557_v38 = vld [vmem:[#allocation2 + $0x91] ss:$2 sm:$0xff]  ;;  %501 = vst.msk [vmem:[#allocation2 + $0xc1] sm:$0xff] %vm445_vm1, %v443_v44  ;;  %v1073_v59 = vpack.c.bf16 %v1063_v54, %v1061_v53  ;;  %v1074_v61 = vpack.c.bf16 %v1067_v57, %v1065_v56  ;;  %v536_v63 = vld [vmem:[#allocation2 + $0x90] ss:$2 sm:$0xff]  ;;  %v1310_v18 = vsel %vm578_vm0, %v1891_v3, 0 }
  0x31   : > { %v559_v40 = vld [vmem:[#allocation2 + $0xa9] ss:$2 sm:$0xff]  ;;  %v538_v0 = vld [vmem:[#allocation2 + $0xa8] ss:$2 sm:$0xff]  ;;  %v1166_v11 = vld [vmem:[#allocation2 + $0x18] ss:$2 sm:$0xff] }
  0x32   : > { %v563_v43 = vpack.c.bf16 %v559_v40, %v557_v38  ;;  %v728_v1 = vld [vmem:[#allocation2 + $0x2] ss:$2 sm:$0xff]  ;;  %v542_v4 = vpack.c.bf16 %v538_v0, %v536_v63  ;;  %v732_v15 = vld [vmem:[#allocation2 + $0x32] ss:$2 sm:$0xff]  ;;  %v1278_v42 = vld [vmem:[#allocation2 + $0x31] ss:$2 sm:$0xff] }
  0x33   : > { %v959_v7 = vld [vmem:[#allocation3 + $0x91] ss:$2 sm:$0xff]  ;;  %v730_v2 = vld [vmem:[#allocation2 + $0x1a] ss:$2 sm:$0xff]  ;;  %v1069_v5 = vld [vmem:[#allocation3 + $0x92] ss:$2 sm:$0xff] }
  0x34   : > { %1999 = vmatmul.mubr.msk.bf16.gmra.mrb[4].mxu1 %vm445_vm1, %v563_v43  ;;  %v961_v46 = vld [vmem:[#allocation3 + $0xa9] ss:$2 sm:$0xff]  ;;  %v1071_v6 = vld [vmem:[#allocation3 + $0xaa] ss:$2 sm:$0xff]  ;;  %v743_v10 = vpack.c.bf16 %v730_v2, %v728_v1  ;;  %v740_v30 = vld [vmem:[#allocation2 + $0x92] ss:$2 sm:$0xff] }
  0x35   : > { %v2451_v48 = vpack.c.bf16 %v961_v46, %v959_v7  ;;  %2004 = vmatprep.mubr.msk.bf16.mxu1 %vm445_vm1, %v539_v41  ;;  %v1168_v12 = vld [vmem:[#allocation2 + $0x30] ss:$2 sm:$0xff]  ;;  %v1075_v13 = vpack.c.bf16 %v1071_v6, %v1069_v5  ;;  %v1172_v22 = vld [vmem:[#allocation2 + $0x60] ss:$2 sm:$0xff]  ;;  %v1276_v41 = vld [vmem:[#allocation2 + $0x19] ss:$2 sm:$0xff] }
  0x36   : > { %v1181_v14 = vpack.c.bf16 %v1168_v12, %v1166_v11  ;;  %v734_v16 = vld [vmem:[#allocation2 + $0x4a] ss:$2 sm:$0xff]  ;;  %v738_v19 = vld [vmem:[#allocation2 + $0x7a] ss:$2 sm:$0xff]  ;;  %v1291_v44 = vpack.c.bf16 %v1278_v42, %v1276_v41  ;;  %v1280_v49 = vld [vmem:[#allocation2 + $0x49] ss:$2 sm:$0xff] }
  0x37   : > { %2039 = vmatmul.mubr.msk.bf16.gmra.mrb[4].mxu0 %vm445_vm1, %v2451_v48  ;;  %v736_v17 = vld [vmem:[#allocation2 + $0x62] ss:$2 sm:$0xff]  ;;  %v744_v20 = vpack.c.bf16 %v734_v16, %v732_v15  ;;  %v1589_v28 = vld [vmem:[%s2593_s4] sm:$0x3]  ;;  %v1286_v53 = vld [vmem:[#allocation2 + $0x91] ss:$2 sm:$0xff] }
  0x38   : > { %2044 = vmatprep.mubr.msk.bf16.mxu0 %vm445_vm1, %v1072_v47  ;;  %v1170_v21 = vld [vmem:[#allocation2 + $0x48] ss:$2 sm:$0xff]  ;;  %v745_v25 = vpack.c.bf16 %v738_v19, %v736_v17  ;;  %v1174_v23 = vld [vmem:[#allocation2 + $0x78] ss:$2 sm:$0xff]  ;;  %v1282_v50 = vld [vmem:[#allocation2 + $0x61] ss:$2 sm:$0xff] }
  0x39   : > { %v1176_v24 = vld [vmem:[#allocation2 + $0x90] ss:$2 sm:$0xff]  ;;  %v1182_v27 = vpack.c.bf16 %v1172_v22, %v1170_v21  ;;  %v1180_v38 = vld [vmem:[#allocation2 + $0xc0] ss:$2 sm:$0xff]  ;;  %v1591_v54 = vsel %vm578_vm0, %v1589_v28, 0 }
  0x3a   : > { %v1183_v29 = vpack.c.bf16 %v1176_v24, %v1174_v23  ;;  %v742_v31 = vld [vmem:[#allocation2 + $0xaa] ss:$2 sm:$0xff]  ;;  %v1386_v63 = vld [vmem:[#allocation2 + $0x1a] ss:$2 sm:$0xff] }
  0x3b   : > { %v837_v32 = vld [vmem:[#allocation3] ss:$2 sm:$0xff]  ;;  %v1896_v35 = vld [vmem:[%s2592_s3 + $0x10] sm:$0x3]  ;;  %v746_v36 = vpack.c.bf16 %v742_v31, %v740_v30 }
  0x3c   : > { %2005 = vmatmul.mubr.msk.bf16.vlgmr.msra.gmra.mrb[0].mxu1 %vm445_vm1, %v540_v52  ;;  %v839_v33 = vld [vmem:[#allocation3 + $0x18] ss:$2 sm:$0xff]  ;;  %v843_v7 = vld [vmem:[#allocation3 + $0x48] ss:$2 sm:$0xff]  ;;  %v1284_v52 = vld [vmem:[#allocation2 + $0x79] ss:$2 sm:$0xff] }
  0x3d   : > { %2008 = vmatprep.mubr.msk.bf16.mxu1 %vm445_vm1, %v541_v55  ;;  %2013 = vmatpush3.bf16.msra.mxu1 %v762_v58  ;;  %v1178_v37 = vld [vmem:[#allocation2 + $0xa8] ss:$2 sm:$0xff]  ;;  %v852_v40 = vpack.c.bf16 %v839_v33, %v837_v32  ;;  %v845_v46 = vld [vmem:[#allocation3 + $0x60] ss:$2 sm:$0xff]  ;;  %v1292_v55 = vpack.c.bf16 %v1282_v50, %v1280_v49  ;;  %v1293_v56 = vpack.c.bf16 %v1286_v53, %v1284_v52  ;;  %v1420_v57 = vsel %vm578_vm0, %v1896_v35, 0 }
  0x3e   : > { %2159 = vmatprep.subr.msk.bf16.mxu1 %vm578_vm0, %v1871_v60  ;;  %v1184_v43 = vpack.c.bf16 %v1180_v38, %v1178_v37  ;;  %v841_v45 = vld [vmem:[#allocation3 + $0x30] ss:$2 sm:$0xff] }
  0x3f   : > { %2045 = vmatmul.mubr.msk.bf16.vlgmr.msra.gmra.mrb[0].mxu0 %vm445_vm1, %v1073_v59  ;;  %v847_v47 = vld [vmem:[#allocation3 + $0x78] ss:$2 sm:$0xff]  ;;  %v853_v8 = vpack.c.bf16 %v843_v7, %v841_v45  ;;  %v851_v59 = vld [vmem:[#allocation3 + $0xa8] ss:$2 sm:$0xff] }
  0x40   : > { %2053 = vmatpush3.bf16.msra.mxu0 %v1200_v62  ;;  %2048 = vmatprep.mubr.msk.bf16.mxu0 %vm445_vm1, %v1074_v61  ;;  %v854_v51 = vpack.c.bf16 %v847_v47, %v845_v46  ;;  %v849_v58 = vld [vmem:[#allocation3 + $0x90] ss:$2 sm:$0xff]  ;;  %v1288_v61 = vld [vmem:[#allocation2 + $0xa9] ss:$2 sm:$0xff] }
  0x41   : > { %2163 = vmatprep.subr.msk.bf16.mxu0 %vm578_vm0, %v1891_v3  ;;  %v855_v60 = vpack.c.bf16 %v851_v59, %v849_v58  ;;  %v1290_v62 = vld [vmem:[#allocation2 + $0xc1] ss:$2 sm:$0xff]  ;;  %v1388_v0 = vld [vmem:[#allocation2 + $0x32] ss:$2 sm:$0xff]  ;;  %v1400_v12 = vld [vmem:[#allocation2 + $0xc2] ss:$2 sm:$0xff] }
  0x42   : > { %v1294_v1 = vpack.c.bf16 %v1290_v62, %v1288_v61  ;;  %v1401_v2 = vpack.c.bf16 %v1388_v0, %v1386_v63  ;;  %v1390_v3 = vld [vmem:[#allocation2 + $0x4a] ss:$2 sm:$0xff]  ;;  %v1394_v5 = vld [vmem:[#allocation2 + $0x7a] ss:$2 sm:$0xff] }
  0x43   : > { %v1396_v6 = vld [vmem:[#allocation2 + $0x92] ss:$2 sm:$0xff] }
  0x44   : > { %2009 = vmatmul.mubr.msk.bf16.gmra.mrb[4].mxu1 %vm445_vm1, %v542_v4  ;;  %v1392_v4 = vld [vmem:[#allocation2 + $0x62] ss:$2 sm:$0xff]  ;;  %v1403_v11 = vpack.c.bf16 %v1396_v6, %v1394_v5 }
  0x45   : > { %2014 = vmatprep.mubr.msk.bf16.mxu1 %vm445_vm1, %v743_v10  ;;  %v1402_v10 = vpack.c.bf16 %v1392_v4, %v1390_v3 }
  0x47   : > { %2049 = vmatmul.mubr.msk.bf16.gmra.mrb[4].mxu0 %vm445_vm1, %v1075_v13 }
  0x48   : > { %2054 = vmatprep.mubr.msk.bf16.mxu0 %vm445_vm1, %v1181_v14 }
  0x4c   : > { %2015 = vmatmul.mubr.msk.bf16.vlgmr.msra.gmra.mrb[0].mxu1 %vm445_vm1, %v744_v20 }
  0x4d   : > { %2018 = vmatprep.mubr.msk.bf16.mxu1 %vm445_vm1, %v745_v25  ;;  %2023 = vmatpush3.bf16.msra.mxu1 %v871_v26 }
  0x4e   : > { %2165 = vmatprep.subr.msk.bf16.mxu1 %vm578_vm0, %v1589_v28 }
  0x4f   : > { %2055 = vmatmul.mubr.msk.bf16.vlgmr.msra.gmra.mrb[0].mxu0 %vm445_vm1, %v1182_v27 }
  0x50   : > { %2063 = vmatpush3.bf16.msra.mxu0 %v1310_v18  ;;  %2058 = vmatprep.mubr.msk.bf16.mxu0 %vm445_vm1, %v1183_v29 }
  0x51   : > { %2164 = vmatprep.subr.msk.bf16.mxu0 %vm578_vm0, %v1896_v35 }
  0x54   : > { %2019 = vmatmul.mubr.msk.bf16.gmra.mrb[4].mxu1 %vm445_vm1, %v746_v36 }
  0x55   : > { %2024 = vmatprep.mubr.msk.bf16.mxu1 %vm445_vm1, %v852_v40 }
  0x57   : > { %2059 = vmatmul.mubr.msk.bf16.gmra.mrb[4].mxu0 %vm445_vm1, %v1184_v43 }
  0x58   : > { %2064 = vmatprep.mubr.msk.bf16.mxu0 %vm445_vm1, %v1291_v44 }
  0x5c   : > { %2025 = vmatmul.mubr.msk.bf16.vlgmr.msra.gmra.mrb[0].mxu1 %vm445_vm1, %v853_v8 }
  0x5d   : > { %2028 = vmatprep.mubr.msk.bf16.mxu1 %vm445_vm1, %v854_v51  ;;  %2083 = vmatpush3.bf16.msra.mxu1 %v1591_v54 }
  0x5f   : > { %2065 = vmatmul.mubr.msk.bf16.vlgmr.msra.gmra.mrb[0].mxu0 %vm445_vm1, %v1292_v55 }
  0x60   : > { %2073 = vmatpush3.bf16.msra.mxu0 %v1420_v57  ;;  %2068 = vmatprep.mubr.msk.bf16.mxu0 %vm445_vm1, %v1293_v56 }
  0x64   : > { %2029 = vmatmul.mubr.msk.bf16.gmra.mrb[4].mxu1 %vm445_vm1, %v855_v60 }
  0x65   : > { %2084 = vmatprep.mubr.msk.bf16.mxu1 %vm445_vm1, %v2374_v39  ;;  %v1398_v39 = vld [vmem:[#allocation2 + $0xaa] ss:$2 sm:$0xff] }
  0x66   : > { %v1404_v13 = vpack.c.bf16 %v1400_v12, %v1398_v39 }
  0x67   : > { %2069 = vmatmul.mubr.msk.bf16.gmra.mrb[4].mxu0 %vm445_vm1, %v1294_v1 }
  0x68   : > { %2074 = vmatprep.mubr.msk.bf16.mxu0 %vm445_vm1, %v1401_v2 }
  0x6c   : > { %2085 = vmatmul.mubr.msk.bf16.vlgmr.msra.gmra.mrb[8].mxu1 %vm445_vm1, %v2407_v9 }
  0x6d   : > { %2088 = vmatprep.mubr.msk.bf16.mxu1 %vm445_vm1, %v2444_v34 }
  0x6f   : > { %2075 = vmatmul.mubr.msk.bf16.vlgmr.msra.gmra.mrb[0].mxu0 %vm445_vm1, %v1402_v10 }
  0x70   : > { %2078 = vmatprep.mubr.msk.bf16.mxu0 %vm445_vm1, %v1403_v11 }
  0x74   : > { %2089 = vmatmul.mubr.msk.bf16.gmra.mrb[12].mxu1 %vm445_vm1, %v2451_v48 }
  0x77   : > { %2079 = vmatmul.mubr.msk.bf16.gmra.mrb[4].mxu0 %vm445_vm1, %v1404_v13 }
 0x12f   : > { %v2026_v14 = vpop.f32.mrb[0].mxu1 }
 0x130   : > { %v907_v15 = vpop.f32.mrb[1].mxu1 }
 0x131   : > { %v2027_v16 = vpop.f32.mrb[2].mxu1 }
 0x132   : > { %v910_v9 = vpop.f32.mrb[3].mxu1 }
 0x137   : > { %v2030_v17 = vpop.f32.mrb[4].mxu1 }
 0x138   : > { %v923_v19 = vpop.f32.mrb[5].mxu1 }
 0x139   : > { %v2517_v34 = vpop.f32.mrb[6].mxu1 }
 0x13a   : > { %v2519_v20 = vpop.f32.mrb[7].mxu1 }
 0x13f   : > { %v2086_v48 = vpop.f32.mrb[8].mxu1 }
 0x140   : > { %v1936_v21 = vpack.c.bf16 %v2086_v48, %v2086_v48  ;;  %v1627_v22 = vpop.f32.mrb[9].mxu1 }
 0x141   : > { %v1934_v25 = vpack.c.bf16 %v1627_v22, %v1627_v22  ;;  %v2087_v23 = vpop.f32.mrb[10].mxu1 }
 0x142   : > { %v2076_v24 = vpop.f32.mrb[0].mxu0  ;;  %1692 = vst.msk [vmem:[%s2525_s13 + $0x8] sm:$0xf] %vm1527_vm4, %v1936_v21  ;;  %v1937_v26 = vpack.c.bf16 %v2087_v23, %v2087_v23  ;;  %v1630_v27 = vpop.f32.mrb[11].mxu1 }
 0x143   : > { %v2092_v28 = vadd.f32 %v2076_v24, %v2026_v14  ;;  %v1456_v29 = vpop.f32.mrb[1].mxu0  ;;  %1690 = vst.msk [vmem:[%s2525_s13] sm:$0xf] %vm1527_vm4, %v1934_v25  ;;  %v1935_v18 = vpack.c.bf16 %v1630_v27, %v1630_v27 }
 0x144   : > { %v2093_v30 = vadd.f32 %v1456_v29, %v907_v15  ;;  %v2077_v31 = vpop.f32.mrb[2].mxu0  ;;  %1693 = vst.msk [vmem:[%s2525_s13 + $0xc] sm:$0xf] %vm1527_vm4, %v1937_v26 }
 0x145   : > { %v1928_v32 = vpack.c.bf16 %v2092_v28, %v2092_v28  ;;  %v2094_v33 = vadd.f32 %v2077_v31, %v2027_v16  ;;  %v1459_v35 = vpop.f32.mrb[3].mxu0  ;;  %1691 = vst.msk [vmem:[%s2525_s13 + $0x4] sm:$0xf] %vm1527_vm4, %v1935_v18  ;;  %v1561_v40 = vmul.f32 %v2092_v28, %v2092_v28  ;;  %v1540_v52 = vsel %vm1536_vm5, %v2092_v28, 0.0 }
 0x146   : > { %v1926_v36 = vpack.c.bf16 %v2093_v30, %v2093_v30  ;;  %v1559_v37 = vmul.f32 %v2093_v30, %v2093_v30  ;;  %v2095_v38 = vadd.f32 %v1459_v35, %v910_v9  ;;  %v1537_v43 = vsel %vm1536_vm5, %v2093_v30, 0.0 }
 0x147   : > { %1530 = vst.msk [vmem:[%s2534_s16 + $0x8] sm:$0xf] %vm1527_vm4, %v1928_v32  ;;  %v1929_v41 = vpack.c.bf16 %v2094_v33, %v2094_v33  ;;  %v2090_v42 = vpop.f32.mrb[12].mxu1  ;;  %v1562_v47 = vmul.f32 %v2094_v33, %v2094_v33  ;;  %v1570_v63 = vsel %vm1536_vm5, %v1561_v40, 0.0  ;;  %v1542_v2 = vsel %vm1536_vm5, %v2094_v33, 0.0 }
 0x148   : > { %1528 = vst.msk [vmem:[%s2534_s16] sm:$0xf] %vm1527_vm4, %v1926_v36  ;;  %v1927_v44 = vpack.c.bf16 %v2095_v38, %v2095_v38  ;;  %v1538_v45 = vsel %vm1536_vm5, %v2095_v38, 0.0  ;;  %v1560_v7 = vmul.f32 %v2095_v38, %v2095_v38  ;;  %v1643_v46 = vpop.f32.mrb[13].mxu1  ;;  %v1940_v49 = vpack.c.bf16 %v2090_v42, %v2090_v42 }
 0x149   : > { %1531 = vst.msk [vmem:[%s2534_s16 + $0xc] sm:$0xf] %vm1527_vm4, %v1929_v41  ;;  %v1539_v8 = vadd.f32 %v1538_v45, %v1537_v43  ;;  %v1938_v50 = vpack.c.bf16 %v1643_v46, %v1643_v46  ;;  %v2091_v51 = vpop.f32.mrb[14].mxu1  ;;  %v1567_v53 = vsel %vm1536_vm5, %v1559_v37, 0.0  ;;  %v1572_v3 = vsel %vm1536_vm5, %v1562_v47, 0.0 }
 0x14a   : > { %1529 = vst.msk [vmem:[%s2534_s16 + $0x4] sm:$0xf] %vm1527_vm4, %v1927_v44  ;;  %v1568_v54 = vsel %vm1536_vm5, %v1560_v7, 0.0  ;;  %v2080_v55 = vpop.f32.mrb[4].mxu0  ;;  %v1941_v56 = vpack.c.bf16 %v2091_v51, %v2091_v51  ;;  %v1646_v57 = vpop.f32.mrb[15].mxu1 }
 0x14b   : > { %v1541_v58 = vadd.f32 %v1540_v52, %v1539_v8  ;;  %v1569_v59 = vadd.f32 %v1568_v54, %v1567_v53  ;;  %v2096_v60 = vadd.f32 %v2080_v55, %v2030_v17  ;;  %v1472_v61 = vpop.f32.mrb[5].mxu0  ;;  %1696 = vst.msk [vmem:[%s2525_s13 + $0x18] sm:$0xf] %vm1527_vm4, %v1940_v49  ;;  %1694 = vst.msk [vmem:[%s2525_s13 + $0x10] sm:$0xf] %vm1527_vm4, %v1938_v50 }
 0x14c   : > { %v1939_v62 = vpack.c.bf16 %v1646_v57, %v1646_v57  ;;  %v2097_v0 = vadd.f32 %v1472_v61, %v923_v19  ;;  %v2081_v1 = vpop.f32.mrb[6].mxu0  ;;  %1697 = vst.msk [vmem:[%s2525_s13 + $0x1c] sm:$0xf] %vm1527_vm4, %v1941_v56 }
 0x14d   : > { %v1571_v4 = vadd.f32 %v1570_v63, %v1569_v59  ;;  %v1932_v5 = vpack.c.bf16 %v2096_v60, %v2096_v60  ;;  %v1475_v6 = vpop.f32.mrb[7].mxu0  ;;  %v1543_v11 = vadd.f32 %v1542_v2, %v1541_v58  ;;  %v2098_v14 = vadd.f32 %v2081_v1, %v2517_v34 }
 0x14e   : > { %1695 = vst.msk [vmem:[%s2525_s13 + $0x14] sm:$0xf] %vm1527_vm4, %v1939_v62  ;;  %v1930_v10 = vpack.c.bf16 %v2097_v0, %v2097_v0  ;;  %v1544_v39 = vsel %vm1536_vm5, %v2097_v0, 0.0  ;;  %v1563_v12 = vmul.f32 %v2097_v0, %v2097_v0  ;;  %v2099_v15 = vadd.f32 %v1475_v6, %v2519_v20 }
 0x14f   : > { %1534 = vst.msk [vmem:[%s2534_s16 + $0x18] sm:$0xf] %vm1527_vm4, %v1932_v5  ;;  %v1573_v13 = vadd.f32 %v1572_v3, %v1571_v4  ;;  %v1545_v16 = vadd.f32 %v1544_v39, %v1543_v11  ;;  %v1933_v19 = vpack.c.bf16 %v2098_v14, %v2098_v14  ;;  %v1565_v48 = vmul.f32 %v2096_v60, %v2096_v60 }
 0x150   : > { %1532 = vst.msk [vmem:[%s2534_s16 + $0x10] sm:$0xf] %vm1527_vm4, %v1930_v10  ;;  %v1574_v9 = vsel %vm1536_vm5, %v1563_v12, 0.0  ;;  %v1931_v21 = vpack.c.bf16 %v2099_v15, %v2099_v15  ;;  %v1546_v22 = vsel %vm1536_vm5, %v2099_v15, 0.0  ;;  %v1564_v25 = vmul.f32 %v2099_v15, %v2099_v15 }
 0x151   : > { %v1575_v17 = vadd.f32 %v1574_v9, %v1573_v13  ;;  %1535 = vst.msk [vmem:[%s2534_s16 + $0x1c] sm:$0xf] %vm1527_vm4, %v1933_v19  ;;  %v1547_v23 = vadd.f32 %v1546_v22, %v1545_v16  ;;  %v1548_v24 = vsel %vm1536_vm5, %v2096_v60, 0.0  ;;  %v1566_v34 = vmul.f32 %v2098_v14, %v2098_v14 }
 0x152   : > { %1533 = vst.msk [vmem:[%s2534_s16 + $0x14] sm:$0xf] %vm1527_vm4, %v1931_v21  ;;  %v1576_v20 = vsel %vm1536_vm5, %v1564_v25, 0.0  ;;  %v1578_v28 = vsel %vm1536_vm5, %v1565_v48, 0.0  ;;  %v1550_v29 = vsel %vm1536_vm5, %v2098_v14, 0.0 }
 0x153   : > { %v1549_v26 = vadd.f32 %v1548_v24, %v1547_v23  ;;  %v1577_v27 = vadd.f32 %v1576_v20, %v1575_v17  ;;  %v1580_v31 = vsel %vm1536_vm5, %v1566_v34, 0.0 }
 0x155   : > { %v1551_v18 = vadd.f32 %v1550_v29, %v1549_v26  ;;  %v1579_v30 = vadd.f32 %v1578_v28, %v1577_v27 }
 0x157   : > { %v1552_v32 = vrot.slane %v1551_v18, 4  ;;  %v1581_v33 = vadd.f32 %v1580_v31, %v1579_v30 }
 0x159   : > { %v1553_v35 = vadd.f32 %v1552_v32, %v1551_v18  ;;  %v1582_v36 = vrot.slane %v1581_v33, 4 }
 0x15b   : > { %v1554_v37 = vrot.slane %v1553_v35, 2  ;;  %v1583_v38 = vadd.f32 %v1582_v36, %v1581_v33 }
 0x15d   : > { %v1555_v40 = vadd.f32 %v1554_v37, %v1553_v35  ;;  %v1584_v41 = vrot.slane %v1583_v38, 2 }
 0x15f   : > { %v1556_v42 = vrot.slane %v1555_v40, 1  ;;  %v1585_v43 = vadd.f32 %v1584_v41, %v1583_v38 }
 0x161   : > { %v1557_v44 = vadd.f32 %v1556_v42, %v1555_v40  ;;  %v1586_v45 = vrot.slane %v1585_v43, 1 }
 0x163   : > { %v1587_v7 = vadd.f32 %v1586_v45, %v1585_v43  ;;  %1699 = vst.msk [vmem:[%s301_s20] sm:$0x1] %vm1698_vm6, %v1557_v44 }
 0x165   : > { %1700 = vst.msk [vmem:[%s301_s20 + $0x1] sm:$0x1] %vm1698_vm6, %v1587_v7 }
 0x166 PF: > { %s18_s24 = sadd.s32 1, %s2181_s24  }
 0x167   : > { %p15_p4 = scmp.ge.s32.totalorder %s18_s24, 4  }
 0x169   :  { %17 = sbr.rel (!%p15_p4) target bundleno = 1 (0x1), region = 173 }

// kernel: _network_block_fwd.7
= control target key start
LH: loop header
LB: loop body
LE: loop exit
PB: predicated region body
PF: predicated region fallthrough
CT: control target
= control target key end

     0   :  { %s1876_s21 = smov 0   ;;  %s2111_s0 = inlined_call_operand.vmem [shape: bf16[2,64,8], index: 0, kind: input, shape index: {}]   ;;  %s2112_s1 = inlined_call_operand.vmem [shape: f32[1,8], index: 1, kind: input, shape index: {}]   ;;  %s2113_s2 = inlined_call_operand.vmem [shape: f32[1,8], index: 2, kind: input, shape index: {}]   ;;  %s2114_s3 = inlined_call_operand.vmem [shape: bf16[9,8,8], index: 3, kind: input, shape index: {}]   ;;  %s2115_s4 = inlined_call_operand.vmem [shape: bf16[2,64,8], index: 4, kind: input, shape index: {}]   ;;  %s2116_s5 = inlined_call_operand.vmem [shape: bf16[2,64,8], index: 5, kind: output, shape index: {0}]   ;;  %s2117_s6 = inlined_call_operand.vmem [shape: f32[2,2,8], index: 6, kind: output, shape index: {1}]  }
   0x1 LB: > { %s1495_s22 = sadd.s32 4294967295, %s1838_s21   ;;  %p1499_p0 = scmp.ge.s32.totalorder %s1838_s21, 1  ;;  %s1838_s21 = sphi %s1876_s21, %s17_s21  }
   0x2   : > { %p225_p1 = scmp.lt.s32.totalorder %s1838_s21, 3 }
   0x4   : > { %p226_p2 = pnand %p1499_p0, %p225_p1 }
   0x5   : > { %v1509_v0 = vld [vmem:[%s2114_s3 + $0x4] sm:$0xf] (!%p226_p2)  ;;  %vm414_vm0 = vcmask (!%p226_p2), 1043456   ;;  %v1890_v1 = vld [vmem:[%s2114_s3 + $0x10] sm:$0xf] (!%p226_p2)  ;;  %p264_p3 = scmp.lt.s32.totalorder (!%p226_p2), %s1495_s22, 1 }
   0x6   : > { %229 = sbr.rel (%p226_p2) target bundleno = 345 (0x159), region = 40  ;;  %1813 = vmatprep.subr.msk.bf16.mxu1 (!%p226_p2), %vm414_vm0, %v1509_v0  ;;  %1817 = vmatprep.subr.msk.bf16.mxu0 (!%p226_p2), %vm414_vm0, %v1890_v1  ;;  %v416_v2 = vsel (!%p226_p2), %vm414_vm0, %v1509_v0, 0  ;;  %v1898_v3 = vsel (!%p226_p2), %vm414_vm0, %v1890_v1, 0  ;;  %vm338_vm1 = vcmask (!%p226_p2), 64512   ;;  %vm340_vm2 = vcmask (!%p226_p2), 58368  }
   0x7   : > { %1658 = vmatpush3.bf16.msra.mxu1 (!%p226_p2), %v416_v2  ;;  %1698 = vmatpush3.bf16.msra.mxu0 (!%p226_p2), %v1898_v3  ;;  %vm345_vm3 = vcmask (!%p226_p2), 57344   ;;  %v1840_v4 = vmov (!%p226_p2), 0.0   ;;  %v1924_v5 = vld [vmem:[%s2114_s3] sm:$0xf] (!%p226_p2)  ;;  %v1929_v6 = vld [vmem:[%s2114_s3 + $0x14] sm:$0xf] (!%p226_p2) }
   0x8   : > { %339 = vst.msk [vmem:[#allocation2] sm:$0xff] (!%p226_p2), %vm338_vm1, %v1840_v4  ;;  %343 = vst.msk [vmem:[#allocation2 + $0x90] sm:$0xff] (!%p226_p2), %vm338_vm1, %v1840_v4  ;;  %1814 = vmatprep.subr.msk.bf16.mxu1 (!%p226_p2), %vm414_vm0, %v1924_v5  ;;  %1819 = vmatprep.subr.msk.bf16.mxu0 (!%p226_p2), %vm414_vm0, %v1929_v6  ;;  %v1507_v7 = vld [vmem:[%s2112_s1] ss:$0 sm:$0xff] (!%p226_p2)  ;;  %v496_v54 = vsel (!%p226_p2), %vm414_vm0, %v1924_v5, 0  ;;  %v896_v56 = vsel (!%p226_p2), %vm414_vm0, %v1929_v6, 0 }
   0x9   : > { %341 = vst.msk [vmem:[#allocation2 + $0x8] sm:$0x3] (!%p226_p2), %vm340_vm2, %v1840_v4  ;;  %344 = vst.msk [vmem:[#allocation2 + $0x98] sm:$0x3] (!%p226_p2), %vm340_vm2, %v1840_v4  ;;  %v1508_v16 = vld [vmem:[%s2113_s2] ss:$0 sm:$0xff] (!%p226_p2) }
   0xa   : > { %347 = vst.msk [vmem:[#allocation2 + $0x10] sm:$0x1] (!%p226_p2), %vm345_vm3, %v1840_v4  ;;  %348 = vst.msk [vmem:[#allocation2 + $0x20] sm:$0x1] (!%p226_p2), %vm345_vm3, %v1840_v4  ;;  %v1538_v61 = vld [vmem:[%s2114_s3 + $0x18] sm:$0xf] (!%p226_p2) }
   0xb   : > { %349 = vst.msk [vmem:[#allocation2 + $0x30] sm:$0x1] (!%p226_p2), %vm345_vm3, %v1840_v4  ;;  %350 = vst.msk [vmem:[#allocation2 + $0x40] sm:$0x1] (!%p226_p2), %vm345_vm3, %v1840_v4  ;;  %v1518_v62 = vld [vmem:[%s2114_s3 + $0x8] sm:$0xf] (!%p226_p2) }
   0xc   : > { %351 = vst.msk [vmem:[#allocation2 + $0x50] sm:$0x1] (!%p226_p2), %vm345_vm3, %v1840_v4  ;;  %352 = vst.msk [vmem:[#allocation2 + $0x60] sm:$0x1] (!%p226_p2), %vm345_vm3, %v1840_v4  ;;  %vm1334_vm4 = vcmask (!%p226_p2), 60416  }
   0xd   : > { %s2119_s22 = smov (!%p264_p3, %s1495_s22), 1  ;;  %353 = vst.msk [vmem:[#allocation2 + $0x70] sm:$0x1] %vm345_vm3, %v1840_v4  ;;  %354 = vst.msk [vmem:[#allocation2 + $0x80] sm:$0x1] %vm345_vm3, %v1840_v4 }
   0xe   : > { %357 = vst.msk [vmem:[#allocation2 + $0x19] sm:$0x1] %vm345_vm3, %v1840_v4  ;;  %358 = vst.msk [vmem:[#allocation2 + $0x29] sm:$0x1] %vm345_vm3, %v1840_v4  ;;  %s1932_s7 = sshll.u32 %s2119_s22, 5 }
   0xf   : > { %359 = vst.msk [vmem:[#allocation2 + $0x39] sm:$0x1] %vm345_vm3, %v1840_v4  ;;  %360 = vst.msk [vmem:[#allocation2 + $0x49] sm:$0x1] %vm345_vm3, %v1840_v4  ;;  %s268_s10 = scalar_lea.vmem %s2111_s0, %s1932_s7  ;;  %s273_s29 = scalar_lea.vmem %s2115_s4, %s1932_s7 }
  0x10   : > { %361 = vst.msk [vmem:[#allocation2 + $0x59] sm:$0x1] %vm345_vm3, %v1840_v4  ;;  %362 = vst.msk [vmem:[#allocation2 + $0x69] sm:$0x1] %vm345_vm3, %v1840_v4  ;;  %v1575_v8 = vld [vmem:[%s268_s10] sm:$0xff]   ;;  %v1606_v9 = vld [vmem:[%s268_s10 + $0x8] sm:$0xff]   ;;  %s2068_s9 = scalar_lea.vmem %s2116_s5, %s1932_s7 }
  0x11   : > { %363 = vst.msk [vmem:[#allocation2 + $0x79] sm:$0x1] %vm345_vm3, %v1840_v4  ;;  %364 = vst.msk [vmem:[#allocation2 + $0x89] sm:$0x1] %vm345_vm3, %v1840_v4  ;;  %v1607_v10 = vld [vmem:[%s268_s10 + $0x10] sm:$0xff]   ;;  %v1576_v11 = vunpack.c.l.bf16 %v1575_v8  ;;  %v1577_v12 = vunpack.c.h.bf16 %v1575_v8  ;;  %v1580_v13 = vunpack.c.l.bf16 %v1606_v9  ;;  %v1581_v14 = vunpack.c.h.bf16 %v1606_v9  ;;  %v1608_v15 = vld [vmem:[%s268_s10 + $0x18] sm:$0xff]  }
  0x12   : > { %346 = vst.msk [vmem:[#allocation2] sm:$0x1] %vm345_vm3, %v1840_v4  ;;  %356 = vst.msk [vmem:[#allocation2 + $0x9] sm:$0x1] %vm345_vm3, %v1840_v4  ;;  %v1584_v17 = vunpack.c.l.bf16 %v1607_v10  ;;  %v1585_v18 = vunpack.c.h.bf16 %v1607_v10  ;;  %v1588_v19 = vunpack.c.l.bf16 %v1608_v15  ;;  %v1589_v20 = vunpack.c.h.bf16 %v1608_v15  ;;  %v388_v45 = vld [vmem:[#allocation2 + $0x1] sm:$0xff]  ;;  %s1506_s7 = sshll.u32 %s2119_s22, 1 }
  0x13   : > { %365 = vst.msk [vmem:[#allocation2 + $0x99] sm:$0x1] %vm345_vm3, %v1840_v4  ;;  %355 = vst.msk [vmem:[#allocation2 + $0x90] sm:$0x1] %vm345_vm3, %v1840_v4  ;;  %v307_v21 = vmul.f32 %v1576_v11, %v1507_v7  ;;  %v308_v22 = vmul.f32 %v1577_v12, %v1507_v7  ;;  %v309_v23 = vmul.f32 %v1580_v13, %v1507_v7  ;;  %v999_v15 = vsel %vm414_vm0, %v1538_v61, 0  ;;  %s282_s12 = scalar_lea.vmem %s2117_s6, %s1506_s7 }
  0x14   : > { %v310_v24 = vmul.f32 %v1581_v14, %v1507_v7  ;;  %v311_v25 = vmul.f32 %v1584_v17, %v1507_v7  ;;  %v312_v26 = vmul.f32 %v1585_v18, %v1507_v7  ;;  %v313_v27 = vmul.f32 %v1588_v19, %v1507_v7  ;;  %v1543_v18 = vld [vmem:[%s2114_s3 + $0x1c] sm:$0xf] }
  0x15   : > { %v314_v28 = vmul.f32 %v1589_v20, %v1507_v7  ;;  %v322_v29 = vadd.f32 %v1508_v16, %v307_v21  ;;  %v323_v30 = vadd.f32 %v1508_v16, %v308_v22  ;;  %v324_v31 = vadd.f32 %v1508_v16, %v309_v23 }
  0x16   : > { %v325_v32 = vadd.f32 %v1508_v16, %v310_v24  ;;  %v326_v33 = vadd.f32 %v1508_v16, %v311_v25  ;;  %v327_v34 = vadd.f32 %v1508_v16, %v312_v26  ;;  %v328_v35 = vadd.f32 %v1508_v16, %v313_v27  ;;  %v1523_v24 = vld [vmem:[%s2114_s3 + $0xc] sm:$0xf] }
  0x17   : > { %v329_v36 = vadd.f32 %v1508_v16, %v314_v28  ;;  %v330_v37 = vmax.f32 %v322_v29, 0.0  ;;  %v331_v38 = vmax.f32 %v323_v30, 0.0  ;;  %v332_v39 = vmax.f32 %v324_v31, 0.0 }
  0x18   : > { %v333_v40 = vmax.f32 %v325_v32, 0.0  ;;  %v334_v41 = vmax.f32 %v326_v33, 0.0  ;;  %v335_v42 = vmax.f32 %v327_v34, 0.0  ;;  %v336_v43 = vmax.f32 %v328_v35, 0.0  ;;  %v1548_v32 = vld [vmem:[%s2114_s3 + $0x20] sm:$0xf] }
  0x19   : > { %v337_v44 = vmax.f32 %v329_v36, 0.0  ;;  %367 = vst.msk [vmem:[#allocation2 + $0x11] sm:$0xff] %vm338_vm1, %v330_v37  ;;  %368 = vst.msk [vmem:[#allocation2 + $0x21] sm:$0xff] %vm338_vm1, %v331_v38  ;;  %v375_v2 = vld [vmem:[#allocation2] sm:$0xff]  ;;  %v590_v23 = vsel %vm414_vm0, %v1518_v62, 0  ;;  %v1101_v31 = vsel %vm414_vm0, %v1543_v18, 0 }
  0x1a   : > { %369 = vst.msk [vmem:[#allocation2 + $0x31] sm:$0xff] %vm338_vm1, %v332_v39  ;;  %370 = vst.msk [vmem:[#allocation2 + $0x41] sm:$0xff] %vm338_vm1, %v333_v40  ;;  %v563_v28 = vld [vmem:[#allocation2 + $0x2] sm:$0xff]  ;;  %v979_v35 = vld [vmem:[#allocation2 + $0x90] sm:$0xff]  ;;  %v692_v37 = vsel %vm414_vm0, %v1523_v24, 0 }
  0x1b   : > { %371 = vst.msk [vmem:[#allocation2 + $0x51] sm:$0xff] %vm338_vm1, %v334_v41  ;;  %372 = vst.msk [vmem:[#allocation2 + $0x61] sm:$0xff] %vm338_vm1, %v335_v42  ;;  %v1203_v41 = vsel %vm414_vm0, %v1548_v32, 0 }
  0x1c   : > { %373 = vst.msk [vmem:[#allocation2 + $0x71] sm:$0xff] %vm338_vm1, %v336_v43  ;;  %374 = vst.msk [vmem:[#allocation2 + $0x81] sm:$0xff] %vm338_vm1, %v337_v44  ;;  %v1081_v43 = vld [vmem:[#allocation2 + $0x91] sm:$0xff] }
  0x20   : > { %v389_v46 = vld [vmem:[#allocation2 + $0x11] sm:$0xff]  ;;  %v768_v47 = vld [vmem:[#allocation2 + $0x21] sm:$0xff] }
  0x21   : > { %v391_v48 = vld [vmem:[#allocation2 + $0x31] sm:$0xff]  ;;  %v396_v49 = vpack.c.bf16 %v389_v46, %v388_v45  ;;  %v775_v50 = vpack.c.bf16 %v768_v47, %v389_v46  ;;  %v770_v52 = vld [vmem:[#allocation2 + $0x41] sm:$0xff] }
  0x22   : > { %v1960_v51 = vpack.c.bf16 %v391_v48, %v768_v47  ;;  %v1962_v53 = vld [vmem:[#allocation2 + $0x51] sm:$0xff]  ;;  %v776_v55 = vpack.c.bf16 %v770_v52, %v391_v48  ;;  %v870_v59 = vld [vmem:[#allocation2 + $0x22] sm:$0xff] }
  0x23   : > { %v1969_v57 = vpack.c.bf16 %v1962_v53, %v770_v52  ;;  %v869_v58 = vld [vmem:[#allocation2 + $0x12] sm:$0xff]  ;;  %1659 = vmatprep.mubr.msk.bf16.mxu1 %vm338_vm1, %v396_v49  ;;  %1699 = vmatprep.mubr.msk.bf16.mxu0 %vm338_vm1, %v775_v50  ;;  %v1982_v63 = vld [vmem:[#allocation2 + $0x61] sm:$0xff] }
  0x24   : > { %v877_v60 = vpack.c.bf16 %v870_v59, %v869_v58  ;;  %1660 = vmatmul.mubr.msk.bf16.vlgmr.msra.gmra.mrb[0].mxu1 %vm338_vm1, %v1960_v51  ;;  %1700 = vmatmul.mubr.msk.bf16.vlgmr.msra.gmra.mrb[0].mxu0 %vm338_vm1, %v776_v55  ;;  %v1984_v0 = vld [vmem:[#allocation2 + $0x71] sm:$0xff]  ;;  %v872_v7 = vld [vmem:[#allocation2 + $0x42] sm:$0xff]  ;;  %v571_v30 = vpack.c.bf16 %v869_v58, %v563_v28  ;;  %v777_v47 = vpack.c.bf16 %v1982_v63, %v1962_v53 }
  0x25   : > { %1668 = vmatpush3.bf16.msra.mxu1 %v496_v54  ;;  %1708 = vmatpush3.bf16.msra.mxu0 %v896_v56  ;;  %v1989_v4 = vld [vmem:[#allocation2 + $0x10] sm:$0xff]  ;;  %v1995_v5 = vpack.c.bf16 %v1984_v0, %v1982_v63  ;;  %v874_v10 = vld [vmem:[#allocation2 + $0x62] sm:$0xff] }
  0x26   : > { %1663 = vmatprep.mubr.msk.bf16.mxu1 %vm338_vm1, %v1969_v57  ;;  %1709 = vmatprep.mubr.msk.bf16.mxu0 %vm338_vm1, %v877_v60  ;;  %v871_v6 = vld [vmem:[#allocation2 + $0x32] sm:$0xff]  ;;  %v383_v8 = vpack.c.bf16 %v1989_v4, %v375_v2  ;;  %v377_v12 = vld [vmem:[#allocation2 + $0x20] sm:$0xff]  ;;  %v1609_v54 = vld [vmem:[%s273_s29 + $0x8] sm:$0xff]  }
  0x27   : > { %1820 = vmatprep.subr.msk.bf16.mxu0 %vm414_vm0, %v1538_v61  ;;  %1815 = vmatprep.subr.msk.bf16.mxu1 %vm414_vm0, %v1518_v62  ;;  %v873_v9 = vld [vmem:[#allocation2 + $0x52] sm:$0xff]  ;;  %v878_v11 = vpack.c.bf16 %v872_v7, %v871_v6  ;;  %v379_v16 = vld [vmem:[#allocation2 + $0x40] sm:$0xff]  ;;  %v572_v33 = vpack.c.bf16 %v871_v6, %v870_v59  ;;  %v673_v40 = vpack.c.bf16 %v377_v12, %v1989_v4  ;;  %v1596_v56 = vunpack.c.l.bf16 %v1609_v54 }
  0x28   : > { %v378_v13 = vld [vmem:[#allocation2 + $0x30] sm:$0xff]  ;;  %v879_v14 = vpack.c.bf16 %v874_v10, %v873_v9  ;;  %v2007_v21 = vld [vmem:[#allocation2 + $0x82] sm:$0xff]  ;;  %v573_v36 = vpack.c.bf16 %v873_v9, %v872_v7  ;;  %v1597_v61 = vunpack.c.h.bf16 %v1609_v54  ;;  %v1611_v6 = vld [vmem:[%s273_s29 + $0x18] sm:$0xff]  }
  0x29   : > { %v380_v17 = vld [vmem:[#allocation2 + $0x50] sm:$0xff]  ;;  %v384_v19 = vpack.c.bf16 %v378_v13, %v377_v12  ;;  %v381_v26 = vld [vmem:[#allocation2 + $0x60] sm:$0xff]  ;;  %v674_v42 = vpack.c.bf16 %v379_v16, %v378_v13 }
  0x2a   : > { %v875_v20 = vld [vmem:[#allocation2 + $0x72] sm:$0xff]  ;;  %v385_v22 = vpack.c.bf16 %v380_v17, %v379_v16  ;;  %v978_v34 = vld [vmem:[#allocation2 + $0x80] sm:$0xff]  ;;  %v675_v44 = vpack.c.bf16 %v381_v26, %v380_v17 }
  0x2b   : > { %v880_v25 = vpack.c.bf16 %v2007_v21, %v875_v20  ;;  %v382_v27 = vld [vmem:[#allocation2 + $0x70] sm:$0xff]  ;;  %v983_v38 = vpack.c.bf16 %v979_v35, %v978_v34  ;;  %v574_v39 = vpack.c.bf16 %v875_v20, %v874_v10  ;;  %v1591_v55 = vld [vmem:[%s273_s29] sm:$0xff]  }
  0x2c   : > { %1664 = vmatmul.mubr.msk.bf16.gmra.mrb[4].mxu1 %vm338_vm1, %v1995_v5  ;;  %v386_v29 = vpack.c.bf16 %v382_v27, %v381_v26  ;;  %v676_v46 = vpack.c.bf16 %v978_v34, %v382_v27  ;;  %v1592_v58 = vunpack.c.l.bf16 %v1591_v55  ;;  %v1610_v9 = vld [vmem:[%s273_s29 + $0x10] sm:$0xff]  }
  0x2d   : > { %1669 = vmatprep.mubr.msk.bf16.mxu1 %vm338_vm1, %v383_v8 }
  0x30   : > { %1710 = vmatmul.mubr.msk.bf16.vlgmr.msra.gmra.mrb[0].mxu0 %vm338_vm1, %v878_v11 }
  0x31   : > { %1718 = vmatpush3.bf16.msra.mxu0 %v999_v15  ;;  %1713 = vmatprep.mubr.msk.bf16.mxu0 %vm338_vm1, %v879_v14  ;;  %v1604_v15 = vunpack.c.l.bf16 %v1611_v6 }
  0x32   : > { %1821 = vmatprep.subr.msk.bf16.mxu0 %vm414_vm0, %v1543_v18  ;;  %v1600_v18 = vunpack.c.l.bf16 %v1610_v9 }
  0x34   : > { %1670 = vmatmul.mubr.msk.bf16.vlgmr.msra.gmra.mrb[0].mxu1 %vm338_vm1, %v384_v19 }
  0x35   : > { %1678 = vmatpush3.bf16.msra.mxu1 %v590_v23  ;;  %1673 = vmatprep.mubr.msk.bf16.mxu1 %vm338_vm1, %v385_v22 }
  0x36   : > { %1816 = vmatprep.subr.msk.bf16.mxu1 %vm414_vm0, %v1523_v24 }
  0x38   : > { %1714 = vmatmul.mubr.msk.bf16.gmra.mrb[4].mxu0 %vm338_vm1, %v880_v25 }
  0x39   : > { %1719 = vmatprep.mubr.msk.bf16.mxu0 %vm338_vm1, %v384_v19  ;;  %v1605_v19 = vunpack.c.h.bf16 %v1611_v6 }
  0x3c   : > { %1674 = vmatmul.mubr.msk.bf16.gmra.mrb[4].mxu1 %vm338_vm1, %v386_v29 }
  0x3d   : > { %1679 = vmatprep.mubr.msk.bf16.mxu1 %vm338_vm1, %v571_v30 }
  0x40   : > { %1720 = vmatmul.mubr.msk.bf16.vlgmr.msra.gmra.mrb[0].mxu0 %vm338_vm1, %v385_v22 }
  0x41   : > { %1728 = vmatpush3.bf16.msra.mxu0 %v1101_v31  ;;  %1723 = vmatprep.mubr.msk.bf16.mxu0 %vm338_vm1, %v386_v29  ;;  %v1601_v31 = vunpack.c.h.bf16 %v1610_v9 }
  0x42   : > { %1822 = vmatprep.subr.msk.bf16.mxu0 %vm414_vm0, %v1548_v32 }
  0x44   : > { %1680 = vmatmul.mubr.msk.bf16.vlgmr.msra.gmra.mrb[0].mxu1 %vm338_vm1, %v572_v33 }
  0x45   : > { %1688 = vmatpush3.bf16.msra.mxu1 %v692_v37  ;;  %1683 = vmatprep.mubr.msk.bf16.mxu1 %vm338_vm1, %v573_v36 }
  0x46   : > { %1818 = vmatprep.subr.msk.bf16.mxu1 %vm414_vm0, %v1890_v1  ;;  %v1080_v1 = vld [vmem:[#allocation2 + $0x81] sm:$0xff] }
  0x47   : > { %v1085_v45 = vpack.c.bf16 %v1081_v43, %v1080_v1  ;;  %v778_v48 = vpack.c.bf16 %v1080_v1, %v1984_v0  ;;  %v1593_v0 = vunpack.c.h.bf16 %v1591_v55 }
  0x48   : > { %1724 = vmatmul.mubr.msk.bf16.gmra.mrb[4].mxu0 %vm338_vm1, %v983_v38 }
  0x49   : > { %1729 = vmatprep.mubr.msk.bf16.mxu0 %vm338_vm1, %v1960_v51 }
  0x4c   : > { %1684 = vmatmul.mubr.msk.bf16.gmra.mrb[4].mxu1 %vm338_vm1, %v574_v39 }
  0x4d   : > { %1689 = vmatprep.mubr.msk.bf16.mxu1 %vm338_vm1, %v673_v40 }
  0x50   : > { %1730 = vmatmul.mubr.msk.bf16.vlgmr.msra.gmra.mrb[0].mxu0 %vm338_vm1, %v1969_v57 }
  0x51   : > { %1738 = vmatpush3.bf16.msra.mxu0 %v1203_v41  ;;  %1733 = vmatprep.mubr.msk.bf16.mxu0 %vm338_vm1, %v1995_v5 }
  0x54   : > { %1690 = vmatmul.mubr.msk.bf16.vlgmr.msra.gmra.mrb[0].mxu1 %vm338_vm1, %v674_v42 }
  0x55   : > { %1748 = vmatpush3.bf16.msra.mxu1 %v1898_v3  ;;  %1693 = vmatprep.mubr.msk.bf16.mxu1 %vm338_vm1, %v675_v44  ;;  %v1183_v3 = vld [vmem:[#allocation2 + $0x92] sm:$0xff] }
  0x56   : > { %v1187_v49 = vpack.c.bf16 %v1183_v3, %v2007_v21 }
  0x58   : > { %1734 = vmatmul.mubr.msk.bf16.gmra.mrb[4].mxu0 %vm338_vm1, %v1085_v45 }
  0x59   : > { %1739 = vmatprep.mubr.msk.bf16.mxu0 %vm338_vm1, %v572_v33 }
  0x5c   : > { %1694 = vmatmul.mubr.msk.bf16.gmra.mrb[4].mxu1 %vm338_vm1, %v676_v46 }
  0x5d   : > { %1703 = vmatprep.mubr.msk.bf16.mxu1 %vm338_vm1, %v777_v47 }
  0x60   : > { %1740 = vmatmul.mubr.msk.bf16.vlgmr.msra.gmra.mrb[0].mxu0 %vm338_vm1, %v573_v36 }
  0x61   : > { %1743 = vmatprep.mubr.msk.bf16.mxu0 %vm338_vm1, %v574_v39 }
  0x68   : > { %1704 = vmatmul.mubr.msk.bf16.vlgmr.msra.gmra.mrb[4].mxu1 %vm338_vm1, %v778_v48  ;;  %1744 = vmatmul.mubr.msk.bf16.gmra.mrb[4].mxu0 %vm338_vm1, %v1187_v49 }
 0x127   : > { %v1691_v50 = vpop.f32.mrb[0].mxu1 }
 0x128   : > { %v728_v51 = vpop.f32.mrb[1].mxu1 }
 0x129   : > { %v1692_v52 = vpop.f32.mrb[2].mxu1 }
 0x12a   : > { %v731_v53 = vpop.f32.mrb[3].mxu1 }
 0x133   : > { %v1741_v57 = vpop.f32.mrb[0].mxu0 }
 0x134   : > { %v1749_v59 = vadd.f32 %v1741_v57, %v1691_v50  ;;  %v1239_v60 = vpop.f32.mrb[1].mxu0 }
 0x135   : > { %v1750_v62 = vadd.f32 %v1239_v60, %v728_v51  ;;  %v1742_v63 = vpop.f32.mrb[2].mxu0 }
 0x136   : > { %v1296_v2 = vadd.f32 %v1749_v59, %v1596_v56  ;;  %v1751_v4 = vadd.f32 %v1742_v63, %v1692_v52  ;;  %v1242_v5 = vpop.f32.mrb[3].mxu0 }
 0x137   : > { %v1294_v7 = vadd.f32 %v1750_v62, %v1592_v58  ;;  %v1752_v8 = vadd.f32 %v1242_v5, %v731_v53 }
 0x138   : > { %v1568_v10 = vpack.c.bf16 %v1296_v2, %v1296_v2  ;;  %v1297_v11 = vadd.f32 %v1751_v4, %v1597_v61  ;;  %v1367_v16 = vmul.f32 %v1296_v2, %v1296_v2  ;;  %v1346_v32 = vsel %vm338_vm1, %v1296_v2, 0.0 }
 0x139   : > { %v1566_v12 = vpack.c.bf16 %v1294_v7, %v1294_v7  ;;  %v1365_v13 = vmul.f32 %v1294_v7, %v1294_v7  ;;  %v1295_v14 = vadd.f32 %v1752_v8, %v1593_v0  ;;  %v1343_v20 = vsel %vm338_vm1, %v1294_v7, 0.0 }
 0x13a   : > { %1337 = vst.msk [vmem:[%s2068_s9 + $0x8] sm:$0xf] %vm1334_vm4, %v1568_v10  ;;  %v1569_v17 = vpack.c.bf16 %v1297_v11, %v1297_v11  ;;  %v1368_v26 = vmul.f32 %v1297_v11, %v1297_v11  ;;  %v1376_v43 = vsel %vm338_vm1, %v1367_v16, 0.0  ;;  %v1348_v46 = vsel %vm338_vm1, %v1297_v11, 0.0 }
 0x13b   : > { %1335 = vst.msk [vmem:[%s2068_s9] sm:$0xf] %vm1334_vm4, %v1566_v12  ;;  %v1567_v21 = vpack.c.bf16 %v1295_v14, %v1295_v14  ;;  %v1344_v22 = vsel %vm338_vm1, %v1295_v14, 0.0  ;;  %v1366_v23 = vmul.f32 %v1295_v14, %v1295_v14  ;;  %v1705_v24 = vpop.f32.mrb[4].mxu1  ;;  %v1745_v25 = vpop.f32.mrb[4].mxu0  ;;  %v1373_v33 = vsel %vm338_vm1, %v1365_v13, 0.0 }
 0x13c   : > { %1338 = vst.msk [vmem:[%s2068_s9 + $0xc] sm:$0xf] %vm1334_vm4, %v1569_v17  ;;  %v1345_v27 = vadd.f32 %v1344_v22, %v1343_v20  ;;  %v1753_v28 = vadd.f32 %v1745_v25, %v1705_v24  ;;  %v846_v29 = vpop.f32.mrb[5].mxu1  ;;  %v1255_v30 = vpop.f32.mrb[5].mxu0  ;;  %v1378_v47 = vsel %vm338_vm1, %v1368_v26, 0.0 }
 0x13d   : > { %1336 = vst.msk [vmem:[%s2068_s9 + $0x4] sm:$0xf] %vm1334_vm4, %v1567_v21  ;;  %v1374_v34 = vsel %vm338_vm1, %v1366_v23, 0.0  ;;  %v1754_v35 = vadd.f32 %v1255_v30, %v846_v29  ;;  %v1706_v36 = vpop.f32.mrb[6].mxu1  ;;  %v1746_v37 = vpop.f32.mrb[6].mxu0 }
 0x13e   : > { %v1347_v38 = vadd.f32 %v1346_v32, %v1345_v27  ;;  %v1375_v39 = vadd.f32 %v1374_v34, %v1373_v33  ;;  %v1300_v40 = vadd.f32 %v1753_v28, %v1604_v15  ;;  %v1755_v41 = vadd.f32 %v1746_v37, %v1706_v36  ;;  %v849_v42 = vpop.f32.mrb[7].mxu1  ;;  %v1258_v1 = vpop.f32.mrb[7].mxu0 }
 0x13f   : > { %v1298_v44 = vadd.f32 %v1754_v35, %v1600_v18  ;;  %v1756_v45 = vadd.f32 %v1258_v1, %v849_v42 }
 0x140   : > { %v1377_v3 = vadd.f32 %v1376_v43, %v1375_v39  ;;  %v1572_v48 = vpack.c.bf16 %v1300_v40, %v1300_v40  ;;  %v1349_v50 = vadd.f32 %v1348_v46, %v1347_v38  ;;  %v1301_v54 = vadd.f32 %v1755_v41, %v1605_v19 }
 0x141   : > { %v1570_v49 = vpack.c.bf16 %v1298_v44, %v1298_v44  ;;  %v1350_v51 = vsel %vm338_vm1, %v1298_v44, 0.0  ;;  %v1369_v52 = vmul.f32 %v1298_v44, %v1298_v44  ;;  %v1299_v55 = vadd.f32 %v1756_v45, %v1601_v31 }
 0x142   : > { %1341 = vst.msk [vmem:[%s2068_s9 + $0x18] sm:$0xf] %vm1334_vm4, %v1572_v48  ;;  %v1379_v53 = vadd.f32 %v1378_v47, %v1377_v3  ;;  %v1351_v56 = vadd.f32 %v1350_v51, %v1349_v50  ;;  %v1573_v59 = vpack.c.bf16 %v1301_v54, %v1301_v54  ;;  %v1371_v60 = vmul.f32 %v1300_v40, %v1300_v40 }
 0x143   : > { %1339 = vst.msk [vmem:[%s2068_s9 + $0x10] sm:$0xf] %vm1334_vm4, %v1570_v49  ;;  %v1380_v57 = vsel %vm338_vm1, %v1369_v52, 0.0  ;;  %v1571_v61 = vpack.c.bf16 %v1299_v55, %v1299_v55  ;;  %v1352_v62 = vsel %vm338_vm1, %v1299_v55, 0.0  ;;  %v1370_v63 = vmul.f32 %v1299_v55, %v1299_v55 }
 0x144   : > { %v1381_v58 = vadd.f32 %v1380_v57, %v1379_v53  ;;  %1342 = vst.msk [vmem:[%s2068_s9 + $0x1c] sm:$0xf] %vm1334_vm4, %v1573_v59  ;;  %v1353_v0 = vadd.f32 %v1352_v62, %v1351_v56  ;;  %v1354_v2 = vsel %vm338_vm1, %v1300_v40, 0.0  ;;  %v1372_v4 = vmul.f32 %v1301_v54, %v1301_v54 }
 0x145   : > { %1340 = vst.msk [vmem:[%s2068_s9 + $0x14] sm:$0xf] %vm1334_vm4, %v1571_v61  ;;  %v1382_v5 = vsel %vm338_vm1, %v1370_v63, 0.0  ;;  %v1384_v8 = vsel %vm338_vm1, %v1371_v60, 0.0  ;;  %v1356_v9 = vsel %vm338_vm1, %v1301_v54, 0.0 }
 0x146   : > { %v1355_v6 = vadd.f32 %v1354_v2, %v1353_v0  ;;  %v1383_v7 = vadd.f32 %v1382_v5, %v1381_v58  ;;  %v1386_v12 = vsel %vm338_vm1, %v1372_v4, 0.0 }
 0x148   : > { %v1357_v10 = vadd.f32 %v1356_v9, %v1355_v6  ;;  %v1385_v11 = vadd.f32 %v1384_v8, %v1383_v7 }
 0x14a   : > { %v1358_v13 = vrot.slane %v1357_v10, 4  ;;  %v1387_v14 = vadd.f32 %v1386_v12, %v1385_v11 }
 0x14c   : > { %v1359_v15 = vadd.f32 %v1358_v13, %v1357_v10  ;;  %v1388_v16 = vrot.slane %v1387_v14, 4 }
 0x14e   : > { %v1360_v17 = vrot.slane %v1359_v15, 2  ;;  %v1389_v18 = vadd.f32 %v1388_v16, %v1387_v14 }
 0x150   : > { %v1361_v19 = vadd.f32 %v1360_v17, %v1359_v15  ;;  %v1390_v20 = vrot.slane %v1389_v18, 2 }
 0x152   : > { %v1362_v21 = vrot.slane %v1361_v19, 1  ;;  %v1391_v22 = vadd.f32 %v1390_v20, %v1389_v18 }
 0x154   : > { %v1363_v23 = vadd.f32 %v1362_v21, %v1361_v19  ;;  %v1392_v24 = vrot.slane %v1391_v22, 1 }
 0x156   : > { %v1393_v25 = vadd.f32 %v1392_v24, %v1391_v22  ;;  %1395 = vst.msk [vmem:[%s282_s12] sm:$0x1] %vm345_vm3, %v1363_v23 }
 0x158   : > { %1396 = vst.msk [vmem:[%s282_s12 + $0x1] sm:$0x1] %vm345_vm3, %v1393_v25 }
 0x159 PF: > { %s17_s21 = sadd.s32 1, %s1838_s21  }
 0x15a   : > { %p14_p4 = scmp.ge.s32.totalorder %s17_s21, 4  }
 0x15c   :  { %16 = sbr.rel (!%p14_p4) target bundleno = 1 (0x1), region = 96 }

</bundles_post_ra>
